<compile_context>
chip_gen: v7x
topology: tpu7x:2x2x1
jax: 0.10.0
libtpu: 0.0.40
codegen_flags: <defaults>
</compile_context>

<pallas_src>
import functools
import math

import jax
import jax.numpy as jnp
from jax.experimental import pallas as pl
from jax.experimental.pallas import tpu as pltpu


def _transformer_block_kernel(
    x_ref,                          # (ROWS, D)        f32, ROWS = B_TILE * L
    wq_ref, wk_ref, wv_ref,         # (D, H*D)         compute dtype (Wq pre-scaled)
    wu_ref, bu_ref,                 # (H*D, D) cdt, (1, D) f32
    g1_ref, bn1_ref,                # (1, D) f32       LayerNorm1
    w1_ref, b1_ref,                 # (D, D_FF) cdt, (1, D_FF) f32
    w2_ref, b2_ref,                 # (D_FF, D) cdt, (1, D) f32
    g2_ref, bn2_ref,                # (1, D) f32       LayerNorm2
    o_ref,                          # (ROWS, D)        f32
    att_slab_ref,                   # (ROWS, H*D)      compute dtype scratch
    *, heads: int, d_model: int, seq_len: int, b_tile: int, compute_dtype,
):
    rows = b_tile * seq_len
    d_head = d_model                            # per-head width == embed dim (module spec)
    exact = compute_dtype == jnp.dtype(jnp.float32)

    x = x_ref[...]                              # f32 copy kept for the residual
    xc = x.astype(compute_dtype)

    # ---- QKV projections: one tall (ROWS, D) x (D, H*D) matmul each ---------
    # 1/sqrt(d_head) is already folded into wq_ref (prepare_params).
    q = jnp.dot(xc, wq_ref[...], preferred_element_type=jnp.float32)
    k = jnp.dot(xc, wk_ref[...], preferred_element_type=jnp.float32)
    v = jnp.dot(xc, wv_ref[...], preferred_element_type=jnp.float32)

    q3 = q.astype(compute_dtype).reshape(b_tile, seq_len, heads * d_head)
    k3 = k.astype(compute_dtype).reshape(b_tile, seq_len, heads * d_head)
    v3 = v.astype(compute_dtype).reshape(b_tile, seq_len, heads * d_head)

    # ---- attention: batched einsum over the batch tile, static head loop ----
    # Each head's output is written at its lane offset into the scratch slab;
    # the unify projection is then a single matmul with K = H*D.
    for h in range(heads):
        lo = h * d_head
        qh = q3[:, :, lo:lo + d_head]           # (B_TILE, L, Dh)
        kh = k3[:, :, lo:lo + d_head]
        vh = v3[:, :, lo:lo + d_head]
        s = jnp.einsum("bqd,bkd->bqk", qh, kh,
                       preferred_element_type=jnp.float32)      # (B_TILE, L, L)
        s = s - jnp.max(s, axis=-1, keepdims=True)
        p = jnp.exp(s)
        p = p * pl.reciprocal(jnp.sum(p, axis=-1, keepdims=True),
                              approx=not exact)
        oh = jnp.einsum("bqk,bkd->bqd", p.astype(compute_dtype), vh,
                        preferred_element_type=jnp.float32)     # (B_TILE, L, Dh)
        att_slab_ref[:, lo:lo + d_head] = (
            oh.reshape(rows, d_head).astype(compute_dtype))

    att = jnp.dot(att_slab_ref[...], wu_ref[...],
                  preferred_element_type=jnp.float32)           # (ROWS, D)

    # ---- residual + LayerNorm 1 (f32, single-pass variance) ------------------
    y = x + att + bu_ref[0]
    mu = jnp.mean(y, axis=-1, keepdims=True)
    var = jnp.maximum(jnp.mean(y * y, axis=-1, keepdims=True) - mu * mu, 0.0)
    y = (y - mu) * jax.lax.rsqrt(var + 1e-5) * g1_ref[0] + bn1_ref[0]

    # ---- MLP (ReLU) + residual + LayerNorm 2 ---------------------------------
    yc = y.astype(compute_dtype)
    hdn = jnp.dot(yc, w1_ref[...], preferred_element_type=jnp.float32) + b1_ref[0]
    hdn = jnp.maximum(hdn, 0.0)
    z = jnp.dot(hdn.astype(compute_dtype), w2_ref[...],
                preferred_element_type=jnp.float32) + b2_ref[0] + y
    mu2 = jnp.mean(z, axis=-1, keepdims=True)
    var2 = jnp.maximum(jnp.mean(z * z, axis=-1, keepdims=True) - mu2 * mu2, 0.0)
    o_ref[...] = (z - mu2) * jax.lax.rsqrt(var2 + 1e-5) * g2_ref[0] + bn2_ref[0]


def prepare_params(params, *, compute_dtype=jnp.bfloat16):
    """One-time weight preparation: cast matmul weights to the compute dtype
    and fold the 1/sqrt(d_head) attention scale into Wq. Do this once and
    reuse the result across calls (keeps per-call HBM traffic to x/out)."""
    wdt = jnp.dtype(compute_dtype)
    d = params["wq"].shape[0]
    scale = 1.0 / math.sqrt(d)
    prepared = dict(params)
    prepared["wq"] = (params["wq"] * scale).astype(wdt)
    for name in ("wk", "wv", "wu", "w1", "w2"):
        prepared[name] = params[name].astype(wdt)
    return prepared


def _vmem_limit_bytes():
    """Per-generation VMEM budget with headroom for Mosaic internal scratch and
    the double-buffered x/o row tiles."""
    cap = None
    try:
        info = pltpu.get_tpu_info()
        cap = int(getattr(info, "vmem_capacity_bytes", 0)) or None
    except Exception:
        cap = None
    if cap is None:
        cap = 128 * 1024 * 1024                 # conservative default
    return min((cap * 3) // 4, 100 * 1024 * 1024)   # ~48 MiB on v7x, ~96 MiB on v5e/v6e


def _build_specs(rows, d, hd, d_ff, single_buffer_consts):
    def const_spec(shape):
        if single_buffer_consts:
            # Constant index_map across the grid -> a single VMEM buffer is
            # enough (default double-buffering would hold 2 copies of every
            # weight for no benefit).
            return pl.BlockSpec(shape, lambda i: (0, 0),
                                pipeline_mode=pl.Buffered(1))
        return pl.BlockSpec(shape, lambda i: (0, 0))

    in_specs = [
        pl.BlockSpec((rows, d), lambda i: (i, 0)),      # x (rows-flattened)
        const_spec((d, hd)), const_spec((d, hd)), const_spec((d, hd)),  # Wq Wk Wv
        const_spec((hd, d)), const_spec((1, d)),        # W_unify, b_unify
        const_spec((1, d)), const_spec((1, d)),         # ln1 gamma / beta
        const_spec((d, d_ff)), const_spec((1, d_ff)),   # W1, b1
        const_spec((d_ff, d)), const_spec((1, d)),      # W2, b2
        const_spec((1, d)), const_spec((1, d)),         # ln2 gamma / beta
    ]
    out_specs = pl.BlockSpec((rows, d), lambda i: (i, 0))
    return in_specs, out_specs


def transformer_block(x, prepared, *, heads: int, b_tile=None):
    """x: f32[b, l, d], prepared: output of prepare_params -> f32[b, l, d]"""
    b, l, d = x.shape
    hd = heads * d
    d_ff = prepared["w1"].shape[1]
    wdt = jnp.dtype(prepared["wq"].dtype)

    # Merge batch*seq into the matmul M dimension. Target ~512 rows per grid
    # step (amortizes the ~0.35 us per-step overhead / taller MXU M), but keep
    # at least 2 grid steps when b >= 2 so both v7x TensorCores get work.
    if b_tile is None:
        b_tile = max(1, min(b, 512 // max(l, 1)))
    if b >= 2:
        b_tile = max(1, min(b_tile, b // 2))
    while b % b_tile:
        b_tile -= 1
    rows = b_tile * l
    grid = (b // b_tile,)

    # Advisory cost estimate so XLA schedules surrounding ops sensibly.
    n_rows = b * l
    flops = (3 * 2 * n_rows * d * hd            # QKV projections
             + 2 * 2 * b * heads * l * l * d    # scores + probs @ V
             + 2 * n_rows * hd * d              # unify projection
             + 2 * 2 * n_rows * d * d_ff)       # MLP
    transcendentals = b * heads * l * l + b * heads * l + 2 * n_rows
    w_elems = 3 * d * hd + hd * d + 2 * d * d_ff
    bytes_accessed = (2 * n_rows * d * 4                    # x in + out (f32)
                      + w_elems * wdt.itemsize              # weights
                      + 4 * (6 * d + d_ff))                 # biases / LN params

    kernel = functools.partial(
        _transformer_block_kernel, heads=heads, d_model=d, seq_len=l,
        b_tile=b_tile, compute_dtype=wdt)

    args = (
        x.reshape(b * l, d),
        prepared["wq"], prepared["wk"], prepared["wv"],
        prepared["wu"], prepared["bu"],
        prepared["g1"], prepared["bn1"],
        prepared["w1"], prepared["b1"],
        prepared["w2"], prepared["b2"],
        prepared["g2"], prepared["bn2"],
    )

    def run(single_buffer_consts):
        in_specs, out_specs = _build_specs(rows, d, hd, d_ff, single_buffer_consts)
        grid_spec = pltpu.PrefetchScalarGridSpec(
            num_scalar_prefetch=0,
            grid=grid,
            in_specs=in_specs,
            out_specs=out_specs,
            scratch_shapes=[pltpu.VMEM((rows, hd), wdt)],   # per-head output slab
        )
        return pl.pallas_call(
            kernel,
            out_shape=jax.ShapeDtypeStruct((b * l, d), jnp.float32),
            grid_spec=grid_spec,
            compiler_params=pltpu.CompilerParams(
                dimension_semantics=("parallel",),
                vmem_limit_bytes=_vmem_limit_bytes()),
            cost_estimate=pl.CostEstimate(
                flops=flops, transcendentals=transcendentals,
                bytes_accessed=bytes_accessed),
        )(*args)

    try:
        out2d = run(single_buffer_consts=True)
    except Exception:
        # Fallback if single-buffered constant operands are not supported by
        # this JAX/Mosaic version.
        out2d = run(single_buffer_consts=False)
    return out2d.reshape(b, l, d)


def _reference(x, params, heads):
    """Pure-JAX f32 reference mirroring the PyTorch forward semantics."""
    b, l, d = x.shape
    q = (x @ params["wq"]).reshape(b, l, heads, d).transpose(0, 2, 1, 3)
    k = (x @ params["wk"]).reshape(b, l, heads, d).transpose(0, 2, 1, 3)
    v = (x @ params["wv"]).reshape(b, l, heads, d).transpose(0, 2, 1, 3)
    s = jnp.einsum("bhqd,bhkd->bhqk", q, k) / jnp.sqrt(jnp.float32(d))
    w = jax.nn.softmax(s, axis=-1)
    out = jnp.einsum("bhqk,bhkd->bhqd", w, v).transpose(0, 2, 1, 3).reshape(b, l, heads * d)
    att = out @ params["wu"] + params["bu"][0]

    def ln(z, g, bta):
        mu = jnp.mean(z, axis=-1, keepdims=True)
        var = jnp.mean((z - mu) ** 2, axis=-1, keepdims=True)
        return (z - mu) * jax.lax.rsqrt(var + 1e-5) * g[0] + bta[0]

    y = ln(x + att, params["g1"], params["bn1"])
    ff = jnp.maximum(y @ params["w1"] + params["b1"][0], 0.0) @ params["w2"] + params["b2"][0]
    return ln(ff + y, params["g2"], params["bn2"])


def make_params(key, d, heads, n_mlp):
    hd, d_ff = heads * d, n_mlp * d
    ks = jax.random.split(key, 8)
    init = lambda k, shape: (jax.random.normal(k, shape, jnp.float32) * 0.05)
    return {
        "wq": init(ks[0], (d, hd)),
        "wk": init(ks[1], (d, hd)),
        "wv": init(ks[2], (d, hd)),
        "wu": init(ks[3], (hd, d)),
        "bu": init(ks[4], (1, d)),
        "g1": jnp.ones((1, d), jnp.float32),
        "bn1": jnp.zeros((1, d), jnp.float32),
        "w1": init(ks[5], (d, d_ff)),
        "b1": init(ks[6], (1, d_ff)),
        "w2": init(ks[7], (d_ff, d)),
        "b2": jnp.zeros((1, d), jnp.float32),
        "g2": jnp.ones((1, d), jnp.float32),
        "bn2": jnp.zeros((1, d), jnp.float32),
    }


if __name__ == "__main__":
    B, L, D, HEADS, N_MLP = 2, 8, 32, 2, 2

    key = jax.random.PRNGKey(0)
    kx, kp = jax.random.split(key)
    x = jax.random.normal(kx, (B, L, D), jnp.float32)
    params = make_params(kp, D, HEADS, N_MLP)

    ref = _reference(x, params, HEADS)

    # 1) exact-math variant (f32 matmuls, exact reciprocal): tight structural check
    prep_f32 = prepare_params(params, compute_dtype=jnp.float32)
    out_f32 = jax.block_until_ready(
        transformer_block(x, prep_f32, heads=HEADS))
    assert out_f32.shape == (B, L, D)
    assert jnp.allclose(out_f32, ref, atol=5e-4, rtol=5e-4), "f32 mismatch vs reference"

    # 2) performance variant: bf16 MXU inputs + approx softmax reciprocal
    prep_bf16 = prepare_params(params, compute_dtype=jnp.bfloat16)
    out_bf16 = jax.block_until_ready(
        transformer_block(x, prep_bf16, heads=HEADS))
    assert out_bf16.shape == (B, L, D)
    assert jnp.allclose(out_bf16, ref, atol=5e-2, rtol=5e-2), "bf16 mismatch vs reference"

    print("KERNEL_OK")
</pallas_src>

<mosaic_0001>
module attributes {stable_mosaic.version = 11 : i64} {
  func.func @_transformer_block_kernel(%arg0: i32, %arg1: memref<8x32xf32, #tpu.memory_space<vmem>>, %arg2: memref<32x64xf32, #tpu.memory_space<vmem>>, %arg3: memref<32x64xf32, #tpu.memory_space<vmem>>, %arg4: memref<32x64xf32, #tpu.memory_space<vmem>>, %arg5: memref<64x32xf32, #tpu.memory_space<vmem>>, %arg6: memref<1x32xf32, #tpu.memory_space<vmem>>, %arg7: memref<1x32xf32, #tpu.memory_space<vmem>>, %arg8: memref<1x32xf32, #tpu.memory_space<vmem>>, %arg9: memref<32x64xf32, #tpu.memory_space<vmem>>, %arg10: memref<1x64xf32, #tpu.memory_space<vmem>>, %arg11: memref<64x32xf32, #tpu.memory_space<vmem>>, %arg12: memref<1x32xf32, #tpu.memory_space<vmem>>, %arg13: memref<1x32xf32, #tpu.memory_space<vmem>>, %arg14: memref<1x32xf32, #tpu.memory_space<vmem>>, %arg15: memref<8x32xf32, #tpu.memory_space<vmem>>, %arg16: memref<8x64xf32, #tpu.memory_space<vmem>>) attributes {dimension_semantics = [#tpu.dimension_semantics<parallel>], iteration_bounds = array<i64: 2>, scalar_prefetch = 0 : i64, scratch_operands = 1 : i64, tpu.core_type = #tpu.core_type<tc>, window_params = [{transform_indices = @transform_0, window_bounds = array<i64: 8, 32>}, {pipeline_mode = #tpu.pipeline_mode<synchronous>, transform_indices = @transform_1, window_bounds = array<i64: 32, 64>}, {pipeline_mode = #tpu.pipeline_mode<synchronous>, transform_indices = @transform_2, window_bounds = array<i64: 32, 64>}, {pipeline_mode = #tpu.pipeline_mode<synchronous>, transform_indices = @transform_3, window_bounds = array<i64: 32, 64>}, {pipeline_mode = #tpu.pipeline_mode<synchronous>, transform_indices = @transform_4, window_bounds = array<i64: 64, 32>}, {pipeline_mode = #tpu.pipeline_mode<synchronous>, transform_indices = @transform_5, window_bounds = array<i64: 1, 32>}, {pipeline_mode = #tpu.pipeline_mode<synchronous>, transform_indices = @transform_6, window_bounds = array<i64: 1, 32>}, {pipeline_mode = #tpu.pipeline_mode<synchronous>, transform_indices = @transform_7, window_bounds = array<i64: 1, 32>}, {pipeline_mode = #tpu.pipeline_mode<synchronous>, transform_indices = @transform_8, window_bounds = array<i64: 32, 64>}, {pipeline_mode = #tpu.pipeline_mode<synchronous>, transform_indices = @transform_9, window_bounds = array<i64: 1, 64>}, {pipeline_mode = #tpu.pipeline_mode<synchronous>, transform_indices = @transform_10, window_bounds = array<i64: 64, 32>}, {pipeline_mode = #tpu.pipeline_mode<synchronous>, transform_indices = @transform_11, window_bounds = array<i64: 1, 32>}, {pipeline_mode = #tpu.pipeline_mode<synchronous>, transform_indices = @transform_12, window_bounds = array<i64: 1, 32>}, {pipeline_mode = #tpu.pipeline_mode<synchronous>, transform_indices = @transform_13, window_bounds = array<i64: 1, 32>}, {transform_indices = @transform_14, window_bounds = array<i64: 8, 32>}]} {
    %c0 = arith.constant 0 : index
    %c0_0 = arith.constant 0 : index
    %0 = vector.load %arg1[%c0, %c0_0] : memref<8x32xf32, #tpu.memory_space<vmem>>, vector<8x32xf32>
    %c0_1 = arith.constant 0 : index
    %c0_2 = arith.constant 0 : index
    %1 = vector.load %arg2[%c0_1, %c0_2] : memref<32x64xf32, #tpu.memory_space<vmem>>, vector<32x64xf32>
    %cst = arith.constant dense<0.000000e+00> : vector<8x64xf32>
    %2 = tpu.matmul %0, %1, %cst {dimension_numbers = #tpu.dot_dimension_numbers<[1], [0], [0], [1], [0, 0, 1, 1], [], []>} : vector<8x32xf32>, vector<32x64xf32>, vector<8x64xf32> -> vector<8x64xf32>
    %c0_3 = arith.constant 0 : index
    %c0_4 = arith.constant 0 : index
    %3 = vector.load %arg3[%c0_3, %c0_4] : memref<32x64xf32, #tpu.memory_space<vmem>>, vector<32x64xf32>
    %cst_5 = arith.constant dense<0.000000e+00> : vector<8x64xf32>
    %4 = tpu.matmul %0, %3, %cst_5 {dimension_numbers = #tpu.dot_dimension_numbers<[1], [0], [0], [1], [0, 0, 1, 1], [], []>} : vector<8x32xf32>, vector<32x64xf32>, vector<8x64xf32> -> vector<8x64xf32>
    %c0_6 = arith.constant 0 : index
    %c0_7 = arith.constant 0 : index
    %5 = vector.load %arg4[%c0_6, %c0_7] : memref<32x64xf32, #tpu.memory_space<vmem>>, vector<32x64xf32>
    %cst_8 = arith.constant dense<0.000000e+00> : vector<8x64xf32>
    %6 = tpu.matmul %0, %5, %cst_8 {dimension_numbers = #tpu.dot_dimension_numbers<[1], [0], [0], [1], [0, 0, 1, 1], [], []>} : vector<8x32xf32>, vector<32x64xf32>, vector<8x64xf32> -> vector<8x64xf32>
    %7 = vector.shape_cast %2 : vector<8x64xf32> to vector<1x8x64xf32>
    %8 = vector.shape_cast %4 : vector<8x64xf32> to vector<1x8x64xf32>
    %9 = vector.shape_cast %6 : vector<8x64xf32> to vector<1x8x64xf32>
    %10 = vector.extract_strided_slice %7 {offsets = [0, 0, 0], sizes = [1, 8, 32], strides = [1, 1, 1]} : vector<1x8x64xf32> to vector<1x8x32xf32>
    %11 = vector.extract_strided_slice %8 {offsets = [0, 0, 0], sizes = [1, 8, 32], strides = [1, 1, 1]} : vector<1x8x64xf32> to vector<1x8x32xf32>
    %12 = vector.extract_strided_slice %9 {offsets = [0, 0, 0], sizes = [1, 8, 32], strides = [1, 1, 1]} : vector<1x8x64xf32> to vector<1x8x32xf32>
    "tpu.trace_start"() <{level = 10 : i32, message = "bqd,bkd->bqk"}> : () -> ()
    %cst_9 = arith.constant dense<0.000000e+00> : vector<1x8x8xf32>
    %13 = tpu.matmul %10, %11, %cst_9 {dimension_numbers = #tpu.dot_dimension_numbers<[2], [2], [1], [1], [0, 0, 0, 1, 1, 1], [0], [0]>} : vector<1x8x32xf32>, vector<1x8x32xf32>, vector<1x8x8xf32> -> vector<1x8x8xf32>
    "tpu.trace_stop"() : () -> ()
    %cst_10 = arith.constant dense<0xFF800000> : vector<1x8xf32>
    %14 = vector.multi_reduction <maximumf>, %13, %cst_10 [2] : vector<1x8x8xf32> to vector<1x8xf32>
    %15 = vector.shape_cast %14 : vector<1x8xf32> to vector<1x8x1xf32>
    %16 = vector.broadcast %15 : vector<1x8x1xf32> to vector<1x8x8xf32>
    %17 = arith.subf %13, %16 : vector<1x8x8xf32>
    %18 = math.exp %17 : vector<1x8x8xf32>
    %cst_11 = arith.constant dense<0.000000e+00> : vector<1x8xf32>
    %19 = vector.multi_reduction <add>, %18, %cst_11 [2] : vector<1x8x8xf32> to vector<1x8xf32>
    %20 = vector.shape_cast %19 : vector<1x8xf32> to vector<1x8x1xf32>
    %21 = tpu.reciprocal %20 : vector<1x8x1xf32> -> vector<1x8x1xf32>
    %22 = vector.broadcast %21 : vector<1x8x1xf32> to vector<1x8x8xf32>
    %23 = arith.mulf %18, %22 : vector<1x8x8xf32>
    "tpu.trace_start"() <{level = 10 : i32, message = "bqk,bkd->bqd"}> : () -> ()
    %cst_12 = arith.constant dense<0.000000e+00> : vector<1x8x32xf32>
    %24 = tpu.matmul %23, %12, %cst_12 {dimension_numbers = #tpu.dot_dimension_numbers<[2], [1], [1], [2], [0, 0, 0, 1, 1, 2], [0], [0]>} : vector<1x8x8xf32>, vector<1x8x32xf32>, vector<1x8x32xf32> -> vector<1x8x32xf32>
    "tpu.trace_stop"() : () -> ()
    %25 = vector.shape_cast %24 : vector<1x8x32xf32> to vector<8x32xf32>
    %c0_13 = arith.constant 0 : index
    %c0_14 = arith.constant 0 : index
    %26 = vector.load %arg16[%c0_13, %c0_14] : memref<8x64xf32, #tpu.memory_space<vmem>>, vector<8x32xf32>
    tpu.vector_store %arg16[%c0_13, %c0_14], %25 {strides = array<i32>} : memref<8x64xf32, #tpu.memory_space<vmem>>, vector<8x32xf32>,
    %27 = vector.extract_strided_slice %7 {offsets = [0, 0, 32], sizes = [1, 8, 32], strides = [1, 1, 1]} : vector<1x8x64xf32> to vector<1x8x32xf32>
    %28 = vector.extract_strided_slice %8 {offsets = [0, 0, 32], sizes = [1, 8, 32], strides = [1, 1, 1]} : vector<1x8x64xf32> to vector<1x8x32xf32>
    %29 = vector.extract_strided_slice %9 {offsets = [0, 0, 32], sizes = [1, 8, 32], strides = [1, 1, 1]} : vector<1x8x64xf32> to vector<1x8x32xf32>
    "tpu.trace_start"() <{level = 10 : i32, message = "bqd,bkd->bqk"}> : () -> ()
    %cst_15 = arith.constant dense<0.000000e+00> : vector<1x8x8xf32>
    %30 = tpu.matmul %27, %28, %cst_15 {dimension_numbers = #tpu.dot_dimension_numbers<[2], [2], [1], [1], [0, 0, 0, 1, 1, 1], [0], [0]>} : vector<1x8x32xf32>, vector<1x8x32xf32>, vector<1x8x8xf32> -> vector<1x8x8xf32>
    "tpu.trace_stop"() : () -> ()
    %cst_16 = arith.constant dense<0xFF800000> : vector<1x8xf32>
    %31 = vector.multi_reduction <maximumf>, %30, %cst_16 [2] : vector<1x8x8xf32> to vector<1x8xf32>
    %32 = vector.shape_cast %31 : vector<1x8xf32> to vector<1x8x1xf32>
    %33 = vector.broadcast %32 : vector<1x8x1xf32> to vector<1x8x8xf32>
    %34 = arith.subf %30, %33 : vector<1x8x8xf32>
    %35 = math.exp %34 : vector<1x8x8xf32>
    %cst_17 = arith.constant dense<0.000000e+00> : vector<1x8xf32>
    %36 = vector.multi_reduction <add>, %35, %cst_17 [2] : vector<1x8x8xf32> to vector<1x8xf32>
    %37 = vector.shape_cast %36 : vector<1x8xf32> to vector<1x8x1xf32>
    %38 = tpu.reciprocal %37 : vector<1x8x1xf32> -> vector<1x8x1xf32>
    %39 = vector.broadcast %38 : vector<1x8x1xf32> to vector<1x8x8xf32>
    %40 = arith.mulf %35, %39 : vector<1x8x8xf32>
    "tpu.trace_start"() <{level = 10 : i32, message = "bqk,bkd->bqd"}> : () -> ()
    %cst_18 = arith.constant dense<0.000000e+00> : vector<1x8x32xf32>
    %41 = tpu.matmul %40, %29, %cst_18 {dimension_numbers = #tpu.dot_dimension_numbers<[2], [1], [1], [2], [0, 0, 0, 1, 1, 2], [0], [0]>} : vector<1x8x8xf32>, vector<1x8x32xf32>, vector<1x8x32xf32> -> vector<1x8x32xf32>
    "tpu.trace_stop"() : () -> ()
    %42 = vector.shape_cast %41 : vector<1x8x32xf32> to vector<8x32xf32>
    %c0_19 = arith.constant 0 : index
    %c32 = arith.constant 32 : index
    %43 = vector.load %arg16[%c0_19, %c32] : memref<8x64xf32, #tpu.memory_space<vmem>>, vector<8x32xf32>
    tpu.vector_store %arg16[%c0_19, %c32], %42 {strides = array<i32>} : memref<8x64xf32, #tpu.memory_space<vmem>>, vector<8x32xf32>,
    %c0_20 = arith.constant 0 : index
    %c0_21 = arith.constant 0 : index
    %44 = vector.load %arg16[%c0_20, %c0_21] : memref<8x64xf32, #tpu.memory_space<vmem>>, vector<8x64xf32>
    %c0_22 = arith.constant 0 : index
    %c0_23 = arith.constant 0 : index
    %45 = vector.load %arg5[%c0_22, %c0_23] : memref<64x32xf32, #tpu.memory_space<vmem>>, vector<64x32xf32>
    %cst_24 = arith.constant dense<0.000000e+00> : vector<8x32xf32>
    %46 = tpu.matmul %44, %45, %cst_24 {dimension_numbers = #tpu.dot_dimension_numbers<[1], [0], [0], [1], [0, 0, 1, 1], [], []>} : vector<8x64xf32>, vector<64x32xf32>, vector<8x32xf32> -> vector<8x32xf32>
    %47 = arith.addf %0, %46 : vector<8x32xf32>
    %c0_25 = arith.constant 0 : index
    %c0_26 = arith.constant 0 : index
    %48 = vector.load %arg6[%c0_25, %c0_26] : memref<1x32xf32, #tpu.memory_space<vmem>>, vector<1x32xf32>
    %49 = vector.shape_cast %48 : vector<1x32xf32> to vector<32xf32>
    %50 = vector.shape_cast %49 : vector<32xf32> to vector<1x32xf32>
    %51 = vector.broadcast %50 : vector<1x32xf32> to vector<8x32xf32>
    %52 = arith.addf %47, %51 : vector<8x32xf32>
    %cst_27 = arith.constant dense<0.000000e+00> : vector<8xf32>
    %53 = vector.multi_reduction <add>, %52, %cst_27 [1] : vector<8x32xf32> to vector<8xf32>
    %54 = vector.shape_cast %53 : vector<8xf32> to vector<8x1xf32>
    %cst_28 = arith.constant 3.200000e+01 : f32
    %55 = vector.broadcast %cst_28 : f32 to vector<8x1xf32>
    %56 = arith.divf %54, %55 : vector<8x1xf32>
    %57 = arith.mulf %52, %52 : vector<8x32xf32>
    %cst_29 = arith.constant dense<0.000000e+00> : vector<8xf32>
    %58 = vector.multi_reduction <add>, %57, %cst_29 [1] : vector<8x32xf32> to vector<8xf32>
    %59 = vector.shape_cast %58 : vector<8xf32> to vector<8x1xf32>
    %cst_30 = arith.constant 3.200000e+01 : f32
    %60 = vector.broadcast %cst_30 : f32 to vector<8x1xf32>
    %61 = arith.divf %59, %60 : vector<8x1xf32>
    %62 = arith.mulf %56, %56 : vector<8x1xf32>
    %63 = arith.subf %61, %62 : vector<8x1xf32>
    %cst_31 = arith.constant 0.000000e+00 : f32
    %64 = vector.broadcast %cst_31 : f32 to vector<8x1xf32>
    %65 = arith.maximumf %63, %64 : vector<8x1xf32>
    %66 = vector.broadcast %56 : vector<8x1xf32> to vector<8x32xf32>
    %67 = arith.subf %52, %66 : vector<8x32xf32>
    %cst_32 = arith.constant 9.99999974E-6 : f32
    %68 = vector.broadcast %cst_32 : f32 to vector<8x1xf32>
    %69 = arith.addf %65, %68 : vector<8x1xf32>
    %70 = math.rsqrt %69 : vector<8x1xf32>
    %71 = vector.broadcast %70 : vector<8x1xf32> to vector<8x32xf32>
    %72 = arith.mulf %67, %71 : vector<8x32xf32>
    %c0_33 = arith.constant 0 : index
    %c0_34 = arith.constant 0 : index
    %73 = vector.load %arg7[%c0_33, %c0_34] : memref<1x32xf32, #tpu.memory_space<vmem>>, vector<1x32xf32>
    %74 = vector.shape_cast %73 : vector<1x32xf32> to vector<32xf32>
    %75 = vector.shape_cast %74 : vector<32xf32> to vector<1x32xf32>
    %76 = vector.broadcast %75 : vector<1x32xf32> to vector<8x32xf32>
    %77 = arith.mulf %72, %76 : vector<8x32xf32>
    %c0_35 = arith.constant 0 : index
    %c0_36 = arith.constant 0 : index
    %78 = vector.load %arg8[%c0_35, %c0_36] : memref<1x32xf32, #tpu.memory_space<vmem>>, vector<1x32xf32>
    %79 = vector.shape_cast %78 : vector<1x32xf32> to vector<32xf32>
    %80 = vector.shape_cast %79 : vector<32xf32> to vector<1x32xf32>
    %81 = vector.broadcast %80 : vector<1x32xf32> to vector<8x32xf32>
    %82 = arith.addf %77, %81 : vector<8x32xf32>
    %c0_37 = arith.constant 0 : index
    %c0_38 = arith.constant 0 : index
    %83 = vector.load %arg9[%c0_37, %c0_38] : memref<32x64xf32, #tpu.memory_space<vmem>>, vector<32x64xf32>
    %cst_39 = arith.constant dense<0.000000e+00> : vector<8x64xf32>
    %84 = tpu.matmul %82, %83, %cst_39 {dimension_numbers = #tpu.dot_dimension_numbers<[1], [0], [0], [1], [0, 0, 1, 1], [], []>} : vector<8x32xf32>, vector<32x64xf32>, vector<8x64xf32> -> vector<8x64xf32>
    %c0_40 = arith.constant 0 : index
    %c0_41 = arith.constant 0 : index
    %85 = vector.load %arg10[%c0_40, %c0_41] : memref<1x64xf32, #tpu.memory_space<vmem>>, vector<1x64xf32>
    %86 = vector.shape_cast %85 : vector<1x64xf32> to vector<64xf32>
    %87 = vector.shape_cast %86 : vector<64xf32> to vector<1x64xf32>
    %88 = vector.broadcast %87 : vector<1x64xf32> to vector<8x64xf32>
    %89 = arith.addf %84, %88 : vector<8x64xf32>
    %cst_42 = arith.constant 0.000000e+00 : f32
    %90 = vector.broadcast %cst_42 : f32 to vector<8x64xf32>
    %91 = arith.maximumf %89, %90 : vector<8x64xf32>
    %c0_43 = arith.constant 0 : index
    %c0_44 = arith.constant 0 : index
    %92 = vector.load %arg11[%c0_43, %c0_44] : memref<64x32xf32, #tpu.memory_space<vmem>>, vector<64x32xf32>
    %cst_45 = arith.constant dense<0.000000e+00> : vector<8x32xf32>
    %93 = tpu.matmul %91, %92, %cst_45 {dimension_numbers = #tpu.dot_dimension_numbers<[1], [0], [0], [1], [0, 0, 1, 1], [], []>} : vector<8x64xf32>, vector<64x32xf32>, vector<8x32xf32> -> vector<8x32xf32>
    %c0_46 = arith.constant 0 : index
    %c0_47 = arith.constant 0 : index
    %94 = vector.load %arg12[%c0_46, %c0_47] : memref<1x32xf32, #tpu.memory_space<vmem>>, vector<1x32xf32>
    %95 = vector.shape_cast %94 : vector<1x32xf32> to vector<32xf32>
    %96 = vector.shape_cast %95 : vector<32xf32> to vector<1x32xf32>
    %97 = vector.broadcast %96 : vector<1x32xf32> to vector<8x32xf32>
    %98 = arith.addf %93, %97 : vector<8x32xf32>
    %99 = arith.addf %98, %82 : vector<8x32xf32>
    %cst_48 = arith.constant dense<0.000000e+00> : vector<8xf32>
    %100 = vector.multi_reduction <add>, %99, %cst_48 [1] : vector<8x32xf32> to vector<8xf32>
    %101 = vector.shape_cast %100 : vector<8xf32> to vector<8x1xf32>
    %cst_49 = arith.constant 3.200000e+01 : f32
    %102 = vector.broadcast %cst_49 : f32 to vector<8x1xf32>
    %103 = arith.divf %101, %102 : vector<8x1xf32>
    %104 = arith.mulf %99, %99 : vector<8x32xf32>
    %cst_50 = arith.constant dense<0.000000e+00> : vector<8xf32>
    %105 = vector.multi_reduction <add>, %104, %cst_50 [1] : vector<8x32xf32> to vector<8xf32>
    %106 = vector.shape_cast %105 : vector<8xf32> to vector<8x1xf32>
    %cst_51 = arith.constant 3.200000e+01 : f32
    %107 = vector.broadcast %cst_51 : f32 to vector<8x1xf32>
    %108 = arith.divf %106, %107 : vector<8x1xf32>
    %109 = arith.mulf %103, %103 : vector<8x1xf32>
    %110 = arith.subf %108, %109 : vector<8x1xf32>
    %cst_52 = arith.constant 0.000000e+00 : f32
    %111 = vector.broadcast %cst_52 : f32 to vector<8x1xf32>
    %112 = arith.maximumf %110, %111 : vector<8x1xf32>
    %113 = vector.broadcast %103 : vector<8x1xf32> to vector<8x32xf32>
    %114 = arith.subf %99, %113 : vector<8x32xf32>
    %cst_53 = arith.constant 9.99999974E-6 : f32
    %115 = vector.broadcast %cst_53 : f32 to vector<8x1xf32>
    %116 = arith.addf %112, %115 : vector<8x1xf32>
    %117 = math.rsqrt %116 : vector<8x1xf32>
    %118 = vector.broadcast %117 : vector<8x1xf32> to vector<8x32xf32>
    %119 = arith.mulf %114, %118 : vector<8x32xf32>
    %c0_54 = arith.constant 0 : index
    %c0_55 = arith.constant 0 : index
    %120 = vector.load %arg13[%c0_54, %c0_55] : memref<1x32xf32, #tpu.memory_space<vmem>>, vector<1x32xf32>
    %121 = vector.shape_cast %120 : vector<1x32xf32> to vector<32xf32>
    %122 = vector.shape_cast %121 : vector<32xf32> to vector<1x32xf32>
    %123 = vector.broadcast %122 : vector<1x32xf32> to vector<8x32xf32>
    %124 = arith.mulf %119, %123 : vector<8x32xf32>
    %c0_56 = arith.constant 0 : index
    %c0_57 = arith.constant 0 : index
    %125 = vector.load %arg14[%c0_56, %c0_57] : memref<1x32xf32, #tpu.memory_space<vmem>>, vector<1x32xf32>
    %126 = vector.shape_cast %125 : vector<1x32xf32> to vector<32xf32>
    %127 = vector.shape_cast %126 : vector<32xf32> to vector<1x32xf32>
    %128 = vector.broadcast %127 : vector<1x32xf32> to vector<8x32xf32>
    %129 = arith.addf %124, %128 : vector<8x32xf32>
    %c0_58 = arith.constant 0 : index
    %c0_59 = arith.constant 0 : index
    %130 = vector.load %arg15[%c0_58, %c0_59] : memref<8x32xf32, #tpu.memory_space<vmem>>, vector<8x32xf32>
    tpu.vector_store %arg15[%c0_58, %c0_59], %129 {strides = array<i32>} : memref<8x32xf32, #tpu.memory_space<vmem>>, vector<8x32xf32>,
    return
  }
  func.func @transform_0(%arg0: i32) -> (i32, i32) {
    %c0_i32 = arith.constant 0 : i32
    %c0_i32_0 = arith.constant 0 : i32
    return %arg0, %c0_i32 : i32, i32
  }
  func.func @transform_1(%arg0: i32) -> (i32, i32) {
    %c0_i32 = arith.constant 0 : i32
    %c0_i32_0 = arith.constant 0 : i32
    %c0_i32_1 = arith.constant 0 : i32
    return %c0_i32, %c0_i32_0 : i32, i32
  }
  func.func @transform_2(%arg0: i32) -> (i32, i32) {
    %c0_i32 = arith.constant 0 : i32
    %c0_i32_0 = arith.constant 0 : i32
    %c0_i32_1 = arith.constant 0 : i32
    return %c0_i32, %c0_i32_0 : i32, i32
  }
  func.func @transform_3(%arg0: i32) -> (i32, i32) {
    %c0_i32 = arith.constant 0 : i32
    %c0_i32_0 = arith.constant 0 : i32
    %c0_i32_1 = arith.constant 0 : i32
    return %c0_i32, %c0_i32_0 : i32, i32
  }
  func.func @transform_4(%arg0: i32) -> (i32, i32) {
    %c0_i32 = arith.constant 0 : i32
    %c0_i32_0 = arith.constant 0 : i32
    %c0_i32_1 = arith.constant 0 : i32
    return %c0_i32, %c0_i32_0 : i32, i32
  }
  func.func @transform_5(%arg0: i32) -> (i32, i32) {
    %c0_i32 = arith.constant 0 : i32
    %c0_i32_0 = arith.constant 0 : i32
    %c0_i32_1 = arith.constant 0 : i32
    return %c0_i32, %c0_i32_0 : i32, i32
  }
  func.func @transform_6(%arg0: i32) -> (i32, i32) {
    %c0_i32 = arith.constant 0 : i32
    %c0_i32_0 = arith.constant 0 : i32
    %c0_i32_1 = arith.constant 0 : i32
    return %c0_i32, %c0_i32_0 : i32, i32
  }
  func.func @transform_7(%arg0: i32) -> (i32, i32) {
    %c0_i32 = arith.constant 0 : i32
    %c0_i32_0 = arith.constant 0 : i32
    %c0_i32_1 = arith.constant 0 : i32
    return %c0_i32, %c0_i32_0 : i32, i32
  }
  func.func @transform_8(%arg0: i32) -> (i32, i32) {
    %c0_i32 = arith.constant 0 : i32
    %c0_i32_0 = arith.constant 0 : i32
    %c0_i32_1 = arith.constant 0 : i32
    return %c0_i32, %c0_i32_0 : i32, i32
  }
  func.func @transform_9(%arg0: i32) -> (i32, i32) {
    %c0_i32 = arith.constant 0 : i32
    %c0_i32_0 = arith.constant 0 : i32
    %c0_i32_1 = arith.constant 0 : i32
    return %c0_i32, %c0_i32_0 : i32, i32
  }
  func.func @transform_10(%arg0: i32) -> (i32, i32) {
    %c0_i32 = arith.constant 0 : i32
    %c0_i32_0 = arith.constant 0 : i32
    %c0_i32_1 = arith.constant 0 : i32
    return %c0_i32, %c0_i32_0 : i32, i32
  }
  func.func @transform_11(%arg0: i32) -> (i32, i32) {
    %c0_i32 = arith.constant 0 : i32
    %c0_i32_0 = arith.constant 0 : i32
    %c0_i32_1 = arith.constant 0 : i32
    return %c0_i32, %c0_i32_0 : i32, i32
  }
  func.func @transform_12(%arg0: i32) -> (i32, i32) {
    %c0_i32 = arith.constant 0 : i32
    %c0_i32_0 = arith.constant 0 : i32
    %c0_i32_1 = arith.constant 0 : i32
    return %c0_i32, %c0_i32_0 : i32, i32
  }
  func.func @transform_13(%arg0: i32) -> (i32, i32) {
    %c0_i32 = arith.constant 0 : i32
    %c0_i32_0 = arith.constant 0 : i32
    %c0_i32_1 = arith.constant 0 : i32
    return %c0_i32, %c0_i32_0 : i32, i32
  }
  func.func @transform_14(%arg0: i32) -> (i32, i32) {
    %c0_i32 = arith.constant 0 : i32
    %c0_i32_0 = arith.constant 0 : i32
    return %arg0, %c0_i32 : i32, i32
  }
}

module attributes {stable_mosaic.version = 11 : i64} {
  func.func @_transformer_block_kernel(%arg0: i32, %arg1: memref<8x32xf32, #tpu.memory_space<vmem>>, %arg2: memref<32x64xf32, #tpu.memory_space<vmem>>, %arg3: memref<32x64xf32, #tpu.memory_space<vmem>>, %arg4: memref<32x64xf32, #tpu.memory_space<vmem>>, %arg5: memref<64x32xf32, #tpu.memory_space<vmem>>, %arg6: memref<1x32xf32, #tpu.memory_space<vmem>>, %arg7: memref<1x32xf32, #tpu.memory_space<vmem>>, %arg8: memref<1x32xf32, #tpu.memory_space<vmem>>, %arg9: memref<32x64xf32, #tpu.memory_space<vmem>>, %arg10: memref<1x64xf32, #tpu.memory_space<vmem>>, %arg11: memref<64x32xf32, #tpu.memory_space<vmem>>, %arg12: memref<1x32xf32, #tpu.memory_space<vmem>>, %arg13: memref<1x32xf32, #tpu.memory_space<vmem>>, %arg14: memref<1x32xf32, #tpu.memory_space<vmem>>, %arg15: memref<8x32xf32, #tpu.memory_space<vmem>>, %arg16: memref<8x64xf32, #tpu.memory_space<vmem>>) attributes {dimension_semantics = [#tpu.dimension_semantics<parallel>], iteration_bounds = array<i64: 2>, scalar_prefetch = 0 : i64, scratch_operands = 1 : i64, tpu.core_type = #tpu.core_type<tc>, window_params = [{transform_indices = @transform_0, window_bounds = array<i64: 8, 32>}, {pipeline_mode = #tpu.pipeline_mode<synchronous>, transform_indices = @transform_1, window_bounds = array<i64: 32, 64>}, {pipeline_mode = #tpu.pipeline_mode<synchronous>, transform_indices = @transform_2, window_bounds = array<i64: 32, 64>}, {pipeline_mode = #tpu.pipeline_mode<synchronous>, transform_indices = @transform_3, window_bounds = array<i64: 32, 64>}, {pipeline_mode = #tpu.pipeline_mode<synchronous>, transform_indices = @transform_4, window_bounds = array<i64: 64, 32>}, {pipeline_mode = #tpu.pipeline_mode<synchronous>, transform_indices = @transform_5, window_bounds = array<i64: 1, 32>}, {pipeline_mode = #tpu.pipeline_mode<synchronous>, transform_indices = @transform_6, window_bounds = array<i64: 1, 32>}, {pipeline_mode = #tpu.pipeline_mode<synchronous>, transform_indices = @transform_7, window_bounds = array<i64: 1, 32>}, {pipeline_mode = #tpu.pipeline_mode<synchronous>, transform_indices = @transform_8, window_bounds = array<i64: 32, 64>}, {pipeline_mode = #tpu.pipeline_mode<synchronous>, transform_indices = @transform_9, window_bounds = array<i64: 1, 64>}, {pipeline_mode = #tpu.pipeline_mode<synchronous>, transform_indices = @transform_10, window_bounds = array<i64: 64, 32>}, {pipeline_mode = #tpu.pipeline_mode<synchronous>, transform_indices = @transform_11, window_bounds = array<i64: 1, 32>}, {pipeline_mode = #tpu.pipeline_mode<synchronous>, transform_indices = @transform_12, window_bounds = array<i64: 1, 32>}, {pipeline_mode = #tpu.pipeline_mode<synchronous>, transform_indices = @transform_13, window_bounds = array<i64: 1, 32>}, {transform_indices = @transform_14, window_bounds = array<i64: 8, 32>}]} {
    %c0 = arith.constant 0 : index
    %c0_0 = arith.constant 0 : index
    %0 = vector.load %arg1[%c0, %c0_0] : memref<8x32xf32, #tpu.memory_space<vmem>>, vector<8x32xf32>
    %c0_1 = arith.constant 0 : index
    %c0_2 = arith.constant 0 : index
    %1 = vector.load %arg2[%c0_1, %c0_2] : memref<32x64xf32, #tpu.memory_space<vmem>>, vector<32x64xf32>
    %cst = arith.constant dense<0.000000e+00> : vector<8x64xf32>
    %2 = tpu.matmul %0, %1, %cst {dimension_numbers = #tpu.dot_dimension_numbers<[1], [0], [0], [1], [0, 0, 1, 1], [], []>} : vector<8x32xf32>, vector<32x64xf32>, vector<8x64xf32> -> vector<8x64xf32>
    %c0_3 = arith.constant 0 : index
    %c0_4 = arith.constant 0 : index
    %3 = vector.load %arg3[%c0_3, %c0_4] : memref<32x64xf32, #tpu.memory_space<vmem>>, vector<32x64xf32>
    %cst_5 = arith.constant dense<0.000000e+00> : vector<8x64xf32>
    %4 = tpu.matmul %0, %3, %cst_5 {dimension_numbers = #tpu.dot_dimension_numbers<[1], [0], [0], [1], [0, 0, 1, 1], [], []>} : vector<8x32xf32>, vector<32x64xf32>, vector<8x64xf32> -> vector<8x64xf32>
    %c0_6 = arith.constant 0 : index
    %c0_7 = arith.constant 0 : index
    %5 = vector.load %arg4[%c0_6, %c0_7] : memref<32x64xf32, #tpu.memory_space<vmem>>, vector<32x64xf32>
    %cst_8 = arith.constant dense<0.000000e+00> : vector<8x64xf32>
    %6 = tpu.matmul %0, %5, %cst_8 {dimension_numbers = #tpu.dot_dimension_numbers<[1], [0], [0], [1], [0, 0, 1, 1], [], []>} : vector<8x32xf32>, vector<32x64xf32>, vector<8x64xf32> -> vector<8x64xf32>
    %7 = vector.shape_cast %2 : vector<8x64xf32> to vector<1x8x64xf32>
    %8 = vector.shape_cast %4 : vector<8x64xf32> to vector<1x8x64xf32>
    %9 = vector.shape_cast %6 : vector<8x64xf32> to vector<1x8x64xf32>
    %10 = vector.extract_strided_slice %7 {offsets = [0, 0, 0], sizes = [1, 8, 32], strides = [1, 1, 1]} : vector<1x8x64xf32> to vector<1x8x32xf32>
    %11 = vector.extract_strided_slice %8 {offsets = [0, 0, 0], sizes = [1, 8, 32], strides = [1, 1, 1]} : vector<1x8x64xf32> to vector<1x8x32xf32>
    %12 = vector.extract_strided_slice %9 {offsets = [0, 0, 0], sizes = [1, 8, 32], strides = [1, 1, 1]} : vector<1x8x64xf32> to vector<1x8x32xf32>
    "tpu.trace_start"() <{level = 10 : i32, message = "bqd,bkd->bqk"}> : () -> ()
    %cst_9 = arith.constant dense<0.000000e+00> : vector<1x8x8xf32>
    %13 = tpu.matmul %10, %11, %cst_9 {dimension_numbers = #tpu.dot_dimension_numbers<[2], [2], [1], [1], [0, 0, 0, 1, 1, 1], [0], [0]>} : vector<1x8x32xf32>, vector<1x8x32xf32>, vector<1x8x8xf32> -> vector<1x8x8xf32>
    "tpu.trace_stop"() : () -> ()
    %cst_10 = arith.constant dense<0xFF800000> : vector<1x8xf32>
    %14 = vector.multi_reduction <maximumf>, %13, %cst_10 [2] : vector<1x8x8xf32> to vector<1x8xf32>
    %15 = vector.shape_cast %14 : vector<1x8xf32> to vector<1x8x1xf32>
    %16 = vector.broadcast %15 : vector<1x8x1xf32> to vector<1x8x8xf32>
    %17 = arith.subf %13, %16 : vector<1x8x8xf32>
    %18 = math.exp %17 : vector<1x8x8xf32>
    %cst_11 = arith.constant dense<0.000000e+00> : vector<1x8xf32>
    %19 = vector.multi_reduction <add>, %18, %cst_11 [2] : vector<1x8x8xf32> to vector<1x8xf32>
    %20 = vector.shape_cast %19 : vector<1x8xf32> to vector<1x8x1xf32>
    %21 = tpu.reciprocal %20 : vector<1x8x1xf32> -> vector<1x8x1xf32>
    %22 = vector.broadcast %21 : vector<1x8x1xf32> to vector<1x8x8xf32>
    %23 = arith.mulf %18, %22 : vector<1x8x8xf32>
    "tpu.trace_start"() <{level = 10 : i32, message = "bqk,bkd->bqd"}> : () -> ()
    %cst_12 = arith.constant dense<0.000000e+00> : vector<1x8x32xf32>
    %24 = tpu.matmul %23, %12, %cst_12 {dimension_numbers = #tpu.dot_dimension_numbers<[2], [1], [1], [2], [0, 0, 0, 1, 1, 2], [0], [0]>} : vector<1x8x8xf32>, vector<1x8x32xf32>, vector<1x8x32xf32> -> vector<1x8x32xf32>
    "tpu.trace_stop"() : () -> ()
    %25 = vector.shape_cast %24 : vector<1x8x32xf32> to vector<8x32xf32>
    %c0_13 = arith.constant 0 : index
    %c0_14 = arith.constant 0 : index
    %26 = vector.load %arg16[%c0_13, %c0_14] : memref<8x64xf32, #tpu.memory_space<vmem>>, vector<8x32xf32>
    tpu.vector_store %arg16[%c0_13, %c0_14], %25 {strides = array<i32>} : memref<8x64xf32, #tpu.memory_space<vmem>>, vector<8x32xf32>,
    %27 = vector.extract_strided_slice %7 {offsets = [0, 0, 32], sizes = [1, 8, 32], strides = [1, 1, 1]} : vector<1x8x64xf32> to vector<1x8x32xf32>
    %28 = vector.extract_strided_slice %8 {offsets = [0, 0, 32], sizes = [1, 8, 32], strides = [1, 1, 1]} : vector<1x8x64xf32> to vector<1x8x32xf32>
    %29 = vector.extract_strided_slice %9 {offsets = [0, 0, 32], sizes = [1, 8, 32], strides = [1, 1, 1]} : vector<1x8x64xf32> to vector<1x8x32xf32>
    "tpu.trace_start"() <{level = 10 : i32, message = "bqd,bkd->bqk"}> : () -> ()
    %cst_15 = arith.constant dense<0.000000e+00> : vector<1x8x8xf32>
    %30 = tpu.matmul %27, %28, %cst_15 {dimension_numbers = #tpu.dot_dimension_numbers<[2], [2], [1], [1], [0, 0, 0, 1, 1, 1], [0], [0]>} : vector<1x8x32xf32>, vector<1x8x32xf32>, vector<1x8x8xf32> -> vector<1x8x8xf32>
    "tpu.trace_stop"() : () -> ()
    %cst_16 = arith.constant dense<0xFF800000> : vector<1x8xf32>
    %31 = vector.multi_reduction <maximumf>, %30, %cst_16 [2] : vector<1x8x8xf32> to vector<1x8xf32>
    %32 = vector.shape_cast %31 : vector<1x8xf32> to vector<1x8x1xf32>
    %33 = vector.broadcast %32 : vector<1x8x1xf32> to vector<1x8x8xf32>
    %34 = arith.subf %30, %33 : vector<1x8x8xf32>
    %35 = math.exp %34 : vector<1x8x8xf32>
    %cst_17 = arith.constant dense<0.000000e+00> : vector<1x8xf32>
    %36 = vector.multi_reduction <add>, %35, %cst_17 [2] : vector<1x8x8xf32> to vector<1x8xf32>
    %37 = vector.shape_cast %36 : vector<1x8xf32> to vector<1x8x1xf32>
    %38 = tpu.reciprocal %37 : vector<1x8x1xf32> -> vector<1x8x1xf32>
    %39 = vector.broadcast %38 : vector<1x8x1xf32> to vector<1x8x8xf32>
    %40 = arith.mulf %35, %39 : vector<1x8x8xf32>
    "tpu.trace_start"() <{level = 10 : i32, message = "bqk,bkd->bqd"}> : () -> ()
    %cst_18 = arith.constant dense<0.000000e+00> : vector<1x8x32xf32>
    %41 = tpu.matmul %40, %29, %cst_18 {dimension_numbers = #tpu.dot_dimension_numbers<[2], [1], [1], [2], [0, 0, 0, 1, 1, 2], [0], [0]>} : vector<1x8x8xf32>, vector<1x8x32xf32>, vector<1x8x32xf32> -> vector<1x8x32xf32>
    "tpu.trace_stop"() : () -> ()
    %42 = vector.shape_cast %41 : vector<1x8x32xf32> to vector<8x32xf32>
    %c0_19 = arith.constant 0 : index
    %c32 = arith.constant 32 : index
    %43 = vector.load %arg16[%c0_19, %c32] : memref<8x64xf32, #tpu.memory_space<vmem>>, vector<8x32xf32>
    tpu.vector_store %arg16[%c0_19, %c32], %42 {strides = array<i32>} : memref<8x64xf32, #tpu.memory_space<vmem>>, vector<8x32xf32>,
    %c0_20 = arith.constant 0 : index
    %c0_21 = arith.constant 0 : index
    %44 = vector.load %arg16[%c0_20, %c0_21] : memref<8x64xf32, #tpu.memory_space<vmem>>, vector<8x64xf32>
    %c0_22 = arith.constant 0 : index
    %c0_23 = arith.constant 0 : index
    %45 = vector.load %arg5[%c0_22, %c0_23] : memref<64x32xf32, #tpu.memory_space<vmem>>, vector<64x32xf32>
    %cst_24 = arith.constant dense<0.000000e+00> : vector<8x32xf32>
    %46 = tpu.matmul %44, %45, %cst_24 {dimension_numbers = #tpu.dot_dimension_numbers<[1], [0], [0], [1], [0, 0, 1, 1], [], []>} : vector<8x64xf32>, vector<64x32xf32>, vector<8x32xf32> -> vector<8x32xf32>
    %47 = arith.addf %0, %46 : vector<8x32xf32>
    %c0_25 = arith.constant 0 : index
    %c0_26 = arith.constant 0 : index
    %48 = vector.load %arg6[%c0_25, %c0_26] : memref<1x32xf32, #tpu.memory_space<vmem>>, vector<1x32xf32>
    %49 = vector.shape_cast %48 : vector<1x32xf32> to vector<32xf32>
    %50 = vector.shape_cast %49 : vector<32xf32> to vector<1x32xf32>
    %51 = vector.broadcast %50 : vector<1x32xf32> to vector<8x32xf32>
    %52 = arith.addf %47, %51 : vector<8x32xf32>
    %cst_27 = arith.constant dense<0.000000e+00> : vector<8xf32>
    %53 = vector.multi_reduction <add>, %52, %cst_27 [1] : vector<8x32xf32> to vector<8xf32>
    %54 = vector.shape_cast %53 : vector<8xf32> to vector<8x1xf32>
    %cst_28 = arith.constant 3.200000e+01 : f32
    %55 = vector.broadcast %cst_28 : f32 to vector<8x1xf32>
    %56 = arith.divf %54, %55 : vector<8x1xf32>
    %57 = arith.mulf %52, %52 : vector<8x32xf32>
    %cst_29 = arith.constant dense<0.000000e+00> : vector<8xf32>
    %58 = vector.multi_reduction <add>, %57, %cst_29 [1] : vector<8x32xf32> to vector<8xf32>
    %59 = vector.shape_cast %58 : vector<8xf32> to vector<8x1xf32>
    %cst_30 = arith.constant 3.200000e+01 : f32
    %60 = vector.broadcast %cst_30 : f32 to vector<8x1xf32>
    %61 = arith.divf %59, %60 : vector<8x1xf32>
    %62 = arith.mulf %56, %56 : vector<8x1xf32>
    %63 = arith.subf %61, %62 : vector<8x1xf32>
    %cst_31 = arith.constant 0.000000e+00 : f32
    %64 = vector.broadcast %cst_31 : f32 to vector<8x1xf32>
    %65 = arith.maximumf %63, %64 : vector<8x1xf32>
    %66 = vector.broadcast %56 : vector<8x1xf32> to vector<8x32xf32>
    %67 = arith.subf %52, %66 : vector<8x32xf32>
    %cst_32 = arith.constant 9.99999974E-6 : f32
    %68 = vector.broadcast %cst_32 : f32 to vector<8x1xf32>
    %69 = arith.addf %65, %68 : vector<8x1xf32>
    %70 = math.rsqrt %69 : vector<8x1xf32>
    %71 = vector.broadcast %70 : vector<8x1xf32> to vector<8x32xf32>
    %72 = arith.mulf %67, %71 : vector<8x32xf32>
    %c0_33 = arith.constant 0 : index
    %c0_34 = arith.constant 0 : index
    %73 = vector.load %arg7[%c0_33, %c0_34] : memref<1x32xf32, #tpu.memory_space<vmem>>, vector<1x32xf32>
    %74 = vector.shape_cast %73 : vector<1x32xf32> to vector<32xf32>
    %75 = vector.shape_cast %74 : vector<32xf32> to vector<1x32xf32>
    %76 = vector.broadcast %75 : vector<1x32xf32> to vector<8x32xf32>
    %77 = arith.mulf %72, %76 : vector<8x32xf32>
    %c0_35 = arith.constant 0 : index
    %c0_36 = arith.constant 0 : index
    %78 = vector.load %arg8[%c0_35, %c0_36] : memref<1x32xf32, #tpu.memory_space<vmem>>, vector<1x32xf32>
    %79 = vector.shape_cast %78 : vector<1x32xf32> to vector<32xf32>
    %80 = vector.shape_cast %79 : vector<32xf32> to vector<1x32xf32>
    %81 = vector.broadcast %80 : vector<1x32xf32> to vector<8x32xf32>
    %82 = arith.addf %77, %81 : vector<8x32xf32>
    %c0_37 = arith.constant 0 : index
    %c0_38 = arith.constant 0 : index
    %83 = vector.load %arg9[%c0_37, %c0_38] : memref<32x64xf32, #tpu.memory_space<vmem>>, vector<32x64xf32>
    %cst_39 = arith.constant dense<0.000000e+00> : vector<8x64xf32>
    %84 = tpu.matmul %82, %83, %cst_39 {dimension_numbers = #tpu.dot_dimension_numbers<[1], [0], [0], [1], [0, 0, 1, 1], [], []>} : vector<8x32xf32>, vector<32x64xf32>, vector<8x64xf32> -> vector<8x64xf32>
    %c0_40 = arith.constant 0 : index
    %c0_41 = arith.constant 0 : index
    %85 = vector.load %arg10[%c0_40, %c0_41] : memref<1x64xf32, #tpu.memory_space<vmem>>, vector<1x64xf32>
    %86 = vector.shape_cast %85 : vector<1x64xf32> to vector<64xf32>
    %87 = vector.shape_cast %86 : vector<64xf32> to vector<1x64xf32>
    %88 = vector.broadcast %87 : vector<1x64xf32> to vector<8x64xf32>
    %89 = arith.addf %84, %88 : vector<8x64xf32>
    %cst_42 = arith.constant 0.000000e+00 : f32
    %90 = vector.broadcast %cst_42 : f32 to vector<8x64xf32>
    %91 = arith.maximumf %89, %90 : vector<8x64xf32>
    %c0_43 = arith.constant 0 : index
    %c0_44 = arith.constant 0 : index
    %92 = vector.load %arg11[%c0_43, %c0_44] : memref<64x32xf32, #tpu.memory_space<vmem>>, vector<64x32xf32>
    %cst_45 = arith.constant dense<0.000000e+00> : vector<8x32xf32>
    %93 = tpu.matmul %91, %92, %cst_45 {dimension_numbers = #tpu.dot_dimension_numbers<[1], [0], [0], [1], [0, 0, 1, 1], [], []>} : vector<8x64xf32>, vector<64x32xf32>, vector<8x32xf32> -> vector<8x32xf32>
    %c0_46 = arith.constant 0 : index
    %c0_47 = arith.constant 0 : index
    %94 = vector.load %arg12[%c0_46, %c0_47] : memref<1x32xf32, #tpu.memory_space<vmem>>, vector<1x32xf32>
    %95 = vector.shape_cast %94 : vector<1x32xf32> to vector<32xf32>
    %96 = vector.shape_cast %95 : vector<32xf32> to vector<1x32xf32>
    %97 = vector.broadcast %96 : vector<1x32xf32> to vector<8x32xf32>
    %98 = arith.addf %93, %97 : vector<8x32xf32>
    %99 = arith.addf %98, %82 : vector<8x32xf32>
    %cst_48 = arith.constant dense<0.000000e+00> : vector<8xf32>
    %100 = vector.multi_reduction <add>, %99, %cst_48 [1] : vector<8x32xf32> to vector<8xf32>
    %101 = vector.shape_cast %100 : vector<8xf32> to vector<8x1xf32>
    %cst_49 = arith.constant 3.200000e+01 : f32
    %102 = vector.broadcast %cst_49 : f32 to vector<8x1xf32>
    %103 = arith.divf %101, %102 : vector<8x1xf32>
    %104 = arith.mulf %99, %99 : vector<8x32xf32>
    %cst_50 = arith.constant dense<0.000000e+00> : vector<8xf32>
    %105 = vector.multi_reduction <add>, %104, %cst_50 [1] : vector<8x32xf32> to vector<8xf32>
    %106 = vector.shape_cast %105 : vector<8xf32> to vector<8x1xf32>
    %cst_51 = arith.constant 3.200000e+01 : f32
    %107 = vector.broadcast %cst_51 : f32 to vector<8x1xf32>
    %108 = arith.divf %106, %107 : vector<8x1xf32>
    %109 = arith.mulf %103, %103 : vector<8x1xf32>
    %110 = arith.subf %108, %109 : vector<8x1xf32>
    %cst_52 = arith.constant 0.000000e+00 : f32
    %111 = vector.broadcast %cst_52 : f32 to vector<8x1xf32>
    %112 = arith.maximumf %110, %111 : vector<8x1xf32>
    %113 = vector.broadcast %103 : vector<8x1xf32> to vector<8x32xf32>
    %114 = arith.subf %99, %113 : vector<8x32xf32>
    %cst_53 = arith.constant 9.99999974E-6 : f32
    %115 = vector.broadcast %cst_53 : f32 to vector<8x1xf32>
    %116 = arith.addf %112, %115 : vector<8x1xf32>
    %117 = math.rsqrt %116 : vector<8x1xf32>
    %118 = vector.broadcast %117 : vector<8x1xf32> to vector<8x32xf32>
    %119 = arith.mulf %114, %118 : vector<8x32xf32>
    %c0_54 = arith.constant 0 : index
    %c0_55 = arith.constant 0 : index
    %120 = vector.load %arg13[%c0_54, %c0_55] : memref<1x32xf32, #tpu.memory_space<vmem>>, vector<1x32xf32>
    %121 = vector.shape_cast %120 : vector<1x32xf32> to vector<32xf32>
    %122 = vector.shape_cast %121 : vector<32xf32> to vector<1x32xf32>
    %123 = vector.broadcast %122 : vector<1x32xf32> to vector<8x32xf32>
    %124 = arith.mulf %119, %123 : vector<8x32xf32>
    %c0_56 = arith.constant 0 : index
    %c0_57 = arith.constant 0 : index
    %125 = vector.load %arg14[%c0_56, %c0_57] : memref<1x32xf32, #tpu.memory_space<vmem>>, vector<1x32xf32>
    %126 = vector.shape_cast %125 : vector<1x32xf32> to vector<32xf32>
    %127 = vector.shape_cast %126 : vector<32xf32> to vector<1x32xf32>
    %128 = vector.broadcast %127 : vector<1x32xf32> to vector<8x32xf32>
    %129 = arith.addf %124, %128 : vector<8x32xf32>
    %c0_58 = arith.constant 0 : index
    %c0_59 = arith.constant 0 : index
    %130 = vector.load %arg15[%c0_58, %c0_59] : memref<8x32xf32, #tpu.memory_space<vmem>>, vector<8x32xf32>
    tpu.vector_store %arg15[%c0_58, %c0_59], %129 {strides = array<i32>} : memref<8x32xf32, #tpu.memory_space<vmem>>, vector<8x32xf32>,
    return
  }
  func.func @transform_0(%arg0: i32) -> (i32, i32) {
    %c0_i32 = arith.constant 0 : i32
    %c0_i32_0 = arith.constant 0 : i32
    return %arg0, %c0_i32 : i32, i32
  }
  func.func @transform_1(%arg0: i32) -> (i32, i32) {
    %c0_i32 = arith.constant 0 : i32
    %c0_i32_0 = arith.constant 0 : i32
    %c0_i32_1 = arith.constant 0 : i32
    return %c0_i32, %c0_i32_0 : i32, i32
  }
  func.func @transform_2(%arg0: i32) -> (i32, i32) {
    %c0_i32 = arith.constant 0 : i32
    %c0_i32_0 = arith.constant 0 : i32
    %c0_i32_1 = arith.constant 0 : i32
    return %c0_i32, %c0_i32_0 : i32, i32
  }
  func.func @transform_3(%arg0: i32) -> (i32, i32) {
    %c0_i32 = arith.constant 0 : i32
    %c0_i32_0 = arith.constant 0 : i32
    %c0_i32_1 = arith.constant 0 : i32
    return %c0_i32, %c0_i32_0 : i32, i32
  }
  func.func @transform_4(%arg0: i32) -> (i32, i32) {
    %c0_i32 = arith.constant 0 : i32
    %c0_i32_0 = arith.constant 0 : i32
    %c0_i32_1 = arith.constant 0 : i32
    return %c0_i32, %c0_i32_0 : i32, i32
  }
  func.func @transform_5(%arg0: i32) -> (i32, i32) {
    %c0_i32 = arith.constant 0 : i32
    %c0_i32_0 = arith.constant 0 : i32
    %c0_i32_1 = arith.constant 0 : i32
    return %c0_i32, %c0_i32_0 : i32, i32
  }
  func.func @transform_6(%arg0: i32) -> (i32, i32) {
    %c0_i32 = arith.constant 0 : i32
    %c0_i32_0 = arith.constant 0 : i32
    %c0_i32_1 = arith.constant 0 : i32
    return %c0_i32, %c0_i32_0 : i32, i32
  }
  func.func @transform_7(%arg0: i32) -> (i32, i32) {
    %c0_i32 = arith.constant 0 : i32
    %c0_i32_0 = arith.constant 0 : i32
    %c0_i32_1 = arith.constant 0 : i32
    return %c0_i32, %c0_i32_0 : i32, i32
  }
  func.func @transform_8(%arg0: i32) -> (i32, i32) {
    %c0_i32 = arith.constant 0 : i32
    %c0_i32_0 = arith.constant 0 : i32
    %c0_i32_1 = arith.constant 0 : i32
    return %c0_i32, %c0_i32_0 : i32, i32
  }
  func.func @transform_9(%arg0: i32) -> (i32, i32) {
    %c0_i32 = arith.constant 0 : i32
    %c0_i32_0 = arith.constant 0 : i32
    %c0_i32_1 = arith.constant 0 : i32
    return %c0_i32, %c0_i32_0 : i32, i32
  }
  func.func @transform_10(%arg0: i32) -> (i32, i32) {
    %c0_i32 = arith.constant 0 : i32
    %c0_i32_0 = arith.constant 0 : i32
    %c0_i32_1 = arith.constant 0 : i32
    return %c0_i32, %c0_i32_0 : i32, i32
  }
  func.func @transform_11(%arg0: i32) -> (i32, i32) {
    %c0_i32 = arith.constant 0 : i32
    %c0_i32_0 = arith.constant 0 : i32
    %c0_i32_1 = arith.constant 0 : i32
    return %c0_i32, %c0_i32_0 : i32, i32
  }
  func.func @transform_12(%arg0: i32) -> (i32, i32) {
    %c0_i32 = arith.constant 0 : i32
    %c0_i32_0 = arith.constant 0 : i32
    %c0_i32_1 = arith.constant 0 : i32
    return %c0_i32, %c0_i32_0 : i32, i32
  }
  func.func @transform_13(%arg0: i32) -> (i32, i32) {
    %c0_i32 = arith.constant 0 : i32
    %c0_i32_0 = arith.constant 0 : i32
    %c0_i32_1 = arith.constant 0 : i32
    return %c0_i32, %c0_i32_0 : i32, i32
  }
  func.func @transform_14(%arg0: i32) -> (i32, i32) {
    %c0_i32 = arith.constant 0 : i32
    %c0_i32_0 = arith.constant 0 : i32
    return %arg0, %c0_i32 : i32, i32
  }
}

</mosaic_0001>

<bundles_post_ra>
// kernel: tpu_custom_call.1
= control target key start
LH: loop header
LB: loop body
LE: loop exit
PB: predicated region body
PF: predicated region fallthrough
CT: control target
= control target key end

     0   :  { %s3348_s0 = inlined_call_operand.hbm [shape: f32[16,32], index: 0, kind: input, shape index: {}]   ;;  %s3349_s1 = inlined_call_operand.hbm [shape: f32[32,64], index: 1, kind: input, shape index: {}]   ;;  %s3350_s2 = inlined_call_operand.hbm [shape: f32[32,64], index: 2, kind: input, shape index: {}]   ;;  %s3351_s3 = inlined_call_operand.hbm [shape: f32[32,64], index: 3, kind: input, shape index: {}]   ;;  %s3352_s4 = inlined_call_operand.hbm [shape: f32[64,32], index: 4, kind: input, shape index: {}]   ;;  %s3353_s5 = inlined_call_operand.hbm [shape: f32[1,32], index: 5, kind: input, shape index: {}]   ;;  %s3354_s6 = inlined_call_operand.hbm [shape: f32[1,32], index: 6, kind: input, shape index: {}]   ;;  %s3355_s7 = inlined_call_operand.hbm [shape: f32[1,32], index: 7, kind: input, shape index: {}]   ;;  %s3356_s8 = inlined_call_operand.hbm [shape: f32[32,64], index: 8, kind: input, shape index: {}]   ;;  %s3357_s9 = inlined_call_operand.hbm [shape: f32[1,64], index: 9, kind: input, shape index: {}]   ;;  %s3358_s10 = inlined_call_operand.hbm [shape: f32[64,32], index: 10, kind: input, shape index: {}]   ;;  %s3359_s11 = inlined_call_operand.hbm [shape: f32[1,32], index: 11, kind: input, shape index: {}]   ;;  %s3360_s12 = inlined_call_operand.hbm [shape: f32[1,32], index: 12, kind: input, shape index: {}]   ;;  %s3361_s13 = inlined_call_operand.hbm [shape: f32[1,32], index: 13, kind: input, shape index: {}]   ;;  %s3362_s14 = inlined_call_operand.hbm [shape: f32[16,32], index: 14, kind: output, shape index: {}]  }
   0x1   :  { %3375 = sst [smem:[#allocation40_spill]] %s3348_s0 }
   0x2   :  { %3376 = sst [smem:[#allocation41_spill]] %s3349_s1 }
   0x3   :  { %3377 = sst [smem:[#allocation42_spill]] %s3350_s2 }
   0x4   :  { %3378 = sst [smem:[#allocation43_spill]] %s3362_s14 }
   0x5   :  { %19 = vsyncpa [#allocation4], 0 }
   0x6   :  { %21 = vsyncpa [#allocation4 + $0x1], 0 }
   0x7   :  { %22 = vsyncpa [#allocation7], 0 }
   0x8   :  { %23 = vsyncpa [#allocation10], 0 }
   0x9   :  { %24 = vsyncpa [#allocation13], 0 }
   0xa   :  { %25 = vsyncpa [#allocation16], 0 }
   0xb   :  { %26 = vsyncpa [#allocation19], 0 }
   0xc   :  { %27 = vsyncpa [#allocation22], 0 }
   0xd   :  { %28 = vsyncpa [#allocation25], 0 }
   0xe   :  { %29 = vsyncpa [#allocation5], 0 }
   0xf   :  { %31 = vsyncpa [#allocation5 + $0x1], 0  ;;  %s2795_s29 = smov 0   ;;  %s2797_s30 = smov 0  }
  0x10   :  { %s2799_s15 = smov 0   ;;  %s2801_s16 = smov 0  }
  0x11 LB: > { %3379 = sst [smem:[#allocation36_spill]] %s2684_s29  ;;  %s2698_s17 = smov [#allocation6]   ;;  %s2696_s16 = sphi %s2801_s16, %s3424_s16   ;;  %s2692_s15 = sphi %s2799_s15, %s3423_s15   ;;  %s2688_s30 = sphi %s2797_s30, %s3422_s30   ;;  %s2684_s29 = sphi %s2795_s29, %s3421_s29  }
  0x12   : > { %3380 = sst [smem:[#allocation37_spill]] %s2688_s30  ;;  %s379_s18 = sshll.u32 %s2698_s17, 4  ;;  %s2821_s18 = int_to_ptr.vmem [resolvable:$true] %s379_s18 }
  0x13   : > { %s2816_s19 = sadd.s32 4294967295, %s2696_s16   ;;  %p1760_p0 = scmp.ge.s32.totalorder %s2696_s16, 1 }
  0x14   : > { %3381 = sst [smem:[#allocation38_spill]] %s2816_s19  ;;  %p3372_p1 = scmp.eq.s32.totalorder %s2816_s19, 0 }
  0x15   : > { %p367_p2 = scmp.lt.s32.totalorder %s2696_s16, 3  ;;  %s2699_s21 = smov [#allocation9]  }
  0x16   : > { %s405_s22 = sshll.u32 %s2699_s21, 4  ;;  %s2700_s24 = smov [#allocation12]   ;;  %s2836_s22 = int_to_ptr.vmem [resolvable:$true] %s405_s22 }
  0x17   : > { %p2823_p3 = pnand %p1760_p0, %p367_p2  ;;  %s432_s25 = sshll.u32 %s2700_s24, 4  ;;  %s2838_s25 = int_to_ptr.vmem [resolvable:$true] %s432_s25 }
  0x18   : > { %s3385_s1 = sld [smem:[#allocation41_spill]] }
  0x19   : > { %s3382_s20 = scalar_select %p2823_p3, 1, 0 }
  0x1a   : > { %p2068_p5 = pneg %p2823_p3 }
  0x1b   : > { %3383 = sst [smem:[#allocation39_spill]] %s3382_s20 }
  0x1c   : > { %p2832_p6 = pnand %p2068_p5, %p3372_p1 }
  0x1e   : > { %s2208_s28 = scalar_lea.hbm %s3385_s1, 512  ;;  %p2848_p8 = pneg %p2832_p6 }
  0x1f   : > { %p2209_p7 = scmp.ne.s32.totalorder %s3385_s1, %s2208_s28  ;;  %p2215_p11 = scmp.lt.u32.totalorder %s2208_s28, %s3385_s1 }
  0x21   : > { %p2211_p9 = pnand %p2848_p8, %p2209_p7 }
  0x23   : > { %p2212_p10 = pneg %p2211_p9 }
  0x25   : > { %p2217_p12 = pnand %p2215_p11, %p2212_p10 }
  0x27   : > { %2220 = shalt.err (!%p2217_p12)
}
  0x28   : > { %s2221_s14 = scalar_lea.vmem %s2821_s18, 512  ;;  %p2229_p5 = scmp.lt.s32.totalorder %s2821_s18, %s2821_s18 }
  0x29   : > { %p2222_p13 = scmp.ne.s32.totalorder %s2821_s18, %s2221_s14  ;;  %p2230_p4 = scmp.lt.s32.totalorder %s2221_s14, %s2221_s14 }
  0x2b   : > { %p2224_p0 = pnand %p2222_p13, %p2848_p8  ;;  %p2231_p7 = por %p2230_p4, %p2229_p5 }
  0x2d   : > { %p2225_p2 = pneg %p2224_p0 }
  0x2f   : > { %p2232_p9 = pnand %p2231_p7, %p2225_p2 }
  0x31   : > { %2235 = shalt.err (!%p2232_p9)
}
  0x32   : > { %s3370_s26 = smov 128   ;;  %s2702_s20 = smov 8  }
  0x33   : > { %2071 = dma.hbm_to_vmem [thread:$0]  (!%p2832_p6), %s3385_s1, 512, %s2821_s18, [#allocation7], %s3370_s26, %s3370_s26, %s2702_s20  }
  0x34   : > { %s2236_s14 = scalar_lea.hbm %s3351_s3, 512 }
  0x35   : > { %p2237_p4 = scmp.ne.s32.totalorder %s3351_s3, %s2236_s14  ;;  %p2243_p12 = scmp.lt.u32.totalorder %s2236_s14, %s3351_s3 }
  0x37   : > { %p2239_p10 = pnand %p2237_p4, %p2848_p8 }
  0x39   : > { %p2240_p11 = pneg %p2239_p10 }
  0x3b   : > { %p2245_p13 = pnand %p2243_p12, %p2240_p11 }
  0x3d   : > { %2248 = shalt.err (!%p2245_p13)
}
  0x3e   : > { %s2249_s18 = scalar_lea.vmem %s2836_s22, 512  ;;  %p2257_p7 = scmp.lt.s32.totalorder %s2836_s22, %s2836_s22 }
  0x3f   : > { %p2250_p0 = scmp.ne.s32.totalorder %s2836_s22, %s2249_s18  ;;  %p2258_p9 = scmp.lt.s32.totalorder %s2249_s18, %s2249_s18 }
  0x41   : > { %p2252_p2 = pnand %p2250_p0, %p2848_p8  ;;  %p2259_p4 = por %p2258_p9, %p2257_p7 }
  0x43   : > { %p2253_p5 = pneg %p2252_p2 }
  0x45   : > { %p2260_p10 = pnand %p2259_p4, %p2253_p5 }
  0x47   : > { %2263 = shalt.err (!%p2260_p10)
}
  0x48   : > { %2077 = dma.hbm_to_vmem [thread:$0]  (!%p2832_p6), %s3351_s3, 512, %s2836_s22, [#allocation10], %s3370_s26, %s3370_s26, %s2702_s20  }
  0x49   : > { %s2264_s27 = scalar_lea.hbm %s3353_s5, 16 }
  0x4a   : > { %p2265_p11 = scmp.ne.s32.totalorder %s3353_s5, %s2264_s27  ;;  %p2271_p0 = scmp.lt.u32.totalorder %s2264_s27, %s3353_s5 }
  0x4c   : > { %p2267_p12 = pnand %p2265_p11, %p2848_p8 }
  0x4e   : > { %p2268_p13 = pneg %p2267_p12 }
  0x50   : > { %p2273_p2 = pnand %p2271_p0, %p2268_p13 }
  0x52   : > { %2276 = shalt.err (!%p2273_p2)
}
  0x53   : > { %s2277_s22 = scalar_lea.vmem %s2838_s25, 16  ;;  %s2284_s18 = scalar_lea.vmem %s2838_s25, 32 }
  0x54   : > { %p2278_p5 = scmp.ne.s32.totalorder %s2838_s25, %s2277_s22  ;;  %p2285_p4 = scmp.lt.s32.totalorder %s2838_s25, %s2838_s25 }
  0x55   : > { %p2286_p10 = scmp.lt.s32.totalorder %s2284_s18, %s2277_s22 }
  0x56   : > { %p2280_p7 = pnand %p2278_p5, %p2848_p8 }
  0x57   : > { %p2287_p11 = por %p2286_p10, %p2285_p4 }
  0x58   : > { %p2281_p9 = pneg %p2280_p7 }
  0x5a   : > { %p2288_p12 = pnand %p2287_p11, %p2281_p9 }
  0x5c   : > { %2291 = shalt.err (!%p2288_p12)
}
  0x5d   : > { %2083 = dma.hbm_to_vmem [thread:$0]  (!%p2832_p6), %s3353_s5, 16, %s2838_s25, [#allocation13]  }
  0x5e   : > { %s2703_s30 = smov [#allocation15]   ;;  %s2704_s27 = smov [#allocation18]  }
  0x5f   : > { %s454_s19 = sshll.u32 %s2703_s30, 4  ;;  %s478_s28 = sshll.u32 %s2704_s27, 4  ;;  %s455_s19 = int_to_ptr.vmem [resolvable:$true] %s454_s19  ;;  %s479_s28 = int_to_ptr.vmem [resolvable:$true] %s478_s28 }
  0x60   : > { %s2292_s14 = scalar_lea.hbm %s3355_s7, 16 }
  0x61   : > { %p2293_p13 = scmp.ne.s32.totalorder %s3355_s7, %s2292_s14  ;;  %p2299_p5 = scmp.lt.u32.totalorder %s2292_s14, %s3355_s7 }
  0x63   : > { %p2295_p0 = pnand %p2293_p13, %p2848_p8 }
  0x65   : > { %p2296_p2 = pneg %p2295_p0 }
  0x67   : > { %p2301_p7 = pnand %p2299_p5, %p2296_p2 }
  0x69   : > { %2304 = shalt.err (!%p2301_p7)
}
  0x6a   : > { %s2305_s25 = scalar_lea.vmem %s455_s19, 16  ;;  %s2312_s29 = scalar_lea.vmem %s455_s19, 32 }
  0x6b   : > { %p2306_p9 = scmp.ne.s32.totalorder %s455_s19, %s2305_s25  ;;  %p2313_p11 = scmp.lt.s32.totalorder %s455_s19, %s455_s19 }
  0x6c   : > { %p2314_p12 = scmp.lt.s32.totalorder %s2312_s29, %s2305_s25 }
  0x6d   : > { %p2308_p4 = pnand %p2306_p9, %p2848_p8 }
  0x6e   : > { %p2315_p1 = por %p2314_p12, %p2313_p11 }
  0x6f   : > { %p2309_p10 = pneg %p2308_p4 }
  0x71   : > { %p2316_p3 = pnand %p2315_p1, %p2309_p10 }
  0x73   : > { %2319 = shalt.err (!%p2316_p3)
}
  0x74   : > { %2089 = dma.hbm_to_vmem [thread:$0]  (!%p2832_p6), %s3355_s7, 16, %s455_s19, [#allocation16]  }
  0x75   : > { %s2320_s24 = scalar_lea.hbm %s3357_s9, 16 }
  0x76   : > { %p2321_p13 = scmp.ne.s32.totalorder %s3357_s9, %s2320_s24  ;;  %p2327_p3 = scmp.lt.u32.totalorder %s2320_s24, %s3357_s9 }
  0x78   : > { %p2323_p0 = pnand %p2321_p13, %p2848_p8 }
  0x7a   : > { %p2324_p1 = pneg %p2323_p0 }
  0x7c   : > { %p2329_p2 = pnand %p2327_p3, %p2324_p1 }
  0x7e   : > { %2332 = shalt.err (!%p2329_p2)
}
  0x7f   : > { %s2333_s25 = scalar_lea.vmem %s479_s28, 16  ;;  %s2340_s19 = scalar_lea.vmem %s479_s28, 32 }
  0x80   : > { %p2334_p5 = scmp.ne.s32.totalorder %s479_s28, %s2333_s25  ;;  %p2341_p4 = scmp.lt.s32.totalorder %s479_s28, %s479_s28 }
  0x81   : > { %p2342_p10 = scmp.lt.s32.totalorder %s2340_s19, %s2333_s25 }
  0x82   : > { %p2336_p7 = pnand %p2334_p5, %p2848_p8 }
  0x83   : > { %p2343_p11 = por %p2342_p10, %p2341_p4 }
  0x84   : > { %p2337_p9 = pneg %p2336_p7 }
  0x86   : > { %p2344_p12 = pnand %p2343_p11, %p2337_p9 }
  0x88   : > { %2347 = shalt.err (!%p2344_p12)
}
  0x89   : > { %2095 = dma.hbm_to_vmem [thread:$0]  (!%p2832_p6), %s3357_s9, 16, %s479_s28, [#allocation19]  }
  0x8a   : > { %s2705_s27 = smov [#allocation21]   ;;  %s2706_s17 = smov [#allocation8]  }
  0x8b   : > { %s502_s26 = sshll.u32 %s2705_s27, 4  ;;  %s392_s24 = sshll.u32 %s2706_s17, 4  ;;  %s503_s26 = int_to_ptr.vmem [resolvable:$true] %s502_s26  ;;  %s393_s24 = int_to_ptr.vmem [resolvable:$true] %s392_s24 }
  0x8c   : > { %s2348_s18 = scalar_lea.hbm %s3359_s11, 16 }
  0x8d   : > { %p2349_p13 = scmp.ne.s32.totalorder %s3359_s11, %s2348_s18  ;;  %p2355_p3 = scmp.lt.u32.totalorder %s2348_s18, %s3359_s11 }
  0x8f   : > { %p2351_p0 = pnand %p2349_p13, %p2848_p8 }
  0x91   : > { %p2352_p1 = pneg %p2351_p0 }
  0x93   : > { %p2357_p2 = pnand %p2355_p3, %p2352_p1 }
  0x95   : > { %2360 = shalt.err (!%p2357_p2)
}
  0x96   : > { %s2361_s28 = scalar_lea.vmem %s503_s26, 16  ;;  %s2368_s30 = scalar_lea.vmem %s503_s26, 32 }
  0x97   : > { %p2362_p5 = scmp.ne.s32.totalorder %s503_s26, %s2361_s28  ;;  %p2369_p4 = scmp.lt.s32.totalorder %s503_s26, %s503_s26 }
  0x98   : > { %p2370_p10 = scmp.lt.s32.totalorder %s2368_s30, %s2361_s28 }
  0x99   : > { %p2364_p7 = pnand %p2362_p5, %p2848_p8 }
  0x9a   : > { %p2371_p11 = por %p2370_p10, %p2369_p4 }
  0x9b   : > { %p2365_p9 = pneg %p2364_p7 }
  0x9d   : > { %p2372_p12 = pnand %p2371_p11, %p2365_p9 }
  0x9f   : > { %2375 = shalt.err (!%p2372_p12)
}
  0xa0   : > { %2101 = dma.hbm_to_vmem [thread:$0]  (!%p2832_p6), %s3359_s11, 16, %s503_s26, [#allocation22]  }
  0xa1   : > { %s3387_s2 = sld [smem:[#allocation42_spill]] }
  0xa7   : > { %s2376_s18 = scalar_lea.hbm %s3387_s2, 512 }
  0xa8   : > { %p2377_p13 = scmp.ne.s32.totalorder %s3387_s2, %s2376_s18  ;;  %p2383_p3 = scmp.lt.u32.totalorder %s2376_s18, %s3387_s2 }
  0xaa   : > { %p2379_p0 = pnand %p2377_p13, %p2848_p8 }
  0xac   : > { %p2380_p1 = pneg %p2379_p0 }
  0xae   : > { %p2385_p2 = pnand %p2383_p3, %p2380_p1 }
  0xb0   : > { %2388 = shalt.err (!%p2385_p2)
}
  0xb1   : > { %s2389_s28 = scalar_lea.vmem %s393_s24, 512  ;;  %p2397_p4 = scmp.lt.s32.totalorder %s393_s24, %s393_s24 }
  0xb2   : > { %p2390_p5 = scmp.ne.s32.totalorder %s393_s24, %s2389_s28  ;;  %p2398_p10 = scmp.lt.s32.totalorder %s2389_s28, %s2389_s28 }
  0xb4   : > { %p2392_p7 = pnand %p2390_p5, %p2848_p8  ;;  %p2399_p11 = por %p2398_p10, %p2397_p4 }
  0xb6   : > { %p2393_p9 = pneg %p2392_p7 }
  0xb8   : > { %p2400_p12 = pnand %p2399_p11, %p2393_p9 }
  0xba   : > { %2403 = shalt.err (!%p2400_p12)
}
  0xbb   : > { %s3388_s26 = smov 128   ;;  %s2707_s17 = smov [#allocation11]  }
  0xbc   : > { %2074 = dma.hbm_to_vmem [thread:$0]  (!%p2832_p6), %s3387_s2, 512, %s393_s24, [#allocation7], %s3388_s26, %s3388_s26, %s2702_s20  }
  0xbd   : > { %s418_s14 = sshll.u32 %s2707_s17, 4  ;;  %s2708_s22 = smov [#allocation14]   ;;  %s419_s14 = int_to_ptr.vmem [resolvable:$true] %s418_s14 }
  0xbe   : > { %s443_s18 = sshll.u32 %s2708_s22, 4  ;;  %s2404_s19 = scalar_lea.hbm %s3352_s4, 1024  ;;  %s444_s18 = int_to_ptr.vmem [resolvable:$true] %s443_s18 }
  0xbf   : > { %p2405_p13 = scmp.ne.s32.totalorder %s3352_s4, %s2404_s19  ;;  %p2411_p3 = scmp.lt.u32.totalorder %s2404_s19, %s3352_s4 }
  0xc1   : > { %p2407_p0 = pnand %p2405_p13, %p2848_p8 }
  0xc3   : > { %p2408_p1 = pneg %p2407_p0 }
  0xc5   : > { %p2413_p2 = pnand %p2411_p3, %p2408_p1 }
  0xc7   : > { %2416 = shalt.err (!%p2413_p2)
}
  0xc8   : > { %s2417_s24 = scalar_lea.vmem %s419_s14, 1024  ;;  %p2425_p4 = scmp.lt.s32.totalorder %s419_s14, %s419_s14 }
  0xc9   : > { %p2418_p5 = scmp.ne.s32.totalorder %s419_s14, %s2417_s24  ;;  %p2426_p10 = scmp.lt.s32.totalorder %s2417_s24, %s2417_s24 }
  0xcb   : > { %p2420_p7 = pnand %p2418_p5, %p2848_p8  ;;  %p2427_p11 = por %p2426_p10, %p2425_p4 }
  0xcd   : > { %p2421_p9 = pneg %p2420_p7 }
  0xcf   : > { %p2428_p12 = pnand %p2427_p11, %p2421_p9 }
  0xd1   : > { %2431 = shalt.err (!%p2428_p12)
}
  0xd2   : > { %2080 = dma.hbm_to_vmem [thread:$0]  (!%p2832_p6), %s3352_s4, 1024, %s419_s14, [#allocation10], %s3388_s26, %s3388_s26, %s2702_s20  }
  0xd3   : > { %s2432_s0 = scalar_lea.hbm %s3354_s6, 16 }
  0xd4   : > { %p2433_p13 = scmp.ne.s32.totalorder %s3354_s6, %s2432_s0  ;;  %p2439_p3 = scmp.lt.u32.totalorder %s2432_s0, %s3354_s6 }
  0xd6   : > { %p2435_p0 = pnand %p2433_p13, %p2848_p8 }
  0xd8   : > { %p2436_p1 = pneg %p2435_p0 }
  0xda   : > { %p2441_p2 = pnand %p2439_p3, %p2436_p1 }
  0xdc   : > { %2444 = shalt.err (!%p2441_p2)
}
  0xdd   : > { %s2445_s30 = scalar_lea.vmem %s444_s18, 16  ;;  %s2452_s14 = scalar_lea.vmem %s444_s18, 32 }
  0xde   : > { %p2446_p5 = scmp.ne.s32.totalorder %s444_s18, %s2445_s30  ;;  %p2453_p4 = scmp.lt.s32.totalorder %s444_s18, %s444_s18 }
  0xdf   : > { %p2454_p10 = scmp.lt.s32.totalorder %s2452_s14, %s2445_s30 }
  0xe0   : > { %p2448_p7 = pnand %p2446_p5, %p2848_p8 }
  0xe1   : > { %p2455_p11 = por %p2454_p10, %p2453_p4 }
  0xe2   : > { %p2449_p9 = pneg %p2448_p7 }
  0xe4   : > { %p2456_p12 = pnand %p2455_p11, %p2449_p9 }
  0xe6   : > { %2459 = shalt.err (!%p2456_p12)
}
  0xe7   : > { %2086 = dma.hbm_to_vmem [thread:$0]  (!%p2832_p6), %s3354_s6, 16, %s444_s18, [#allocation13]  }
  0xe8   : > { %s2709_s27 = smov [#allocation17]   ;;  %s2710_s22 = smov [#allocation20]  }
  0xe9   : > { %s464_s17 = sshll.u32 %s2709_s27, 4  ;;  %s488_s0 = sshll.u32 %s2710_s22, 4  ;;  %s465_s17 = int_to_ptr.vmem [resolvable:$true] %s464_s17  ;;  %s489_s0 = int_to_ptr.vmem [resolvable:$true] %s488_s0 }
  0xea   : > { %s2460_s29 = scalar_lea.hbm %s3356_s8, 512 }
  0xeb   : > { %p2461_p13 = scmp.ne.s32.totalorder %s3356_s8, %s2460_s29  ;;  %p2467_p3 = scmp.lt.u32.totalorder %s2460_s29, %s3356_s8 }
  0xed   : > { %p2463_p0 = pnand %p2461_p13, %p2848_p8 }
  0xef   : > { %p2464_p1 = pneg %p2463_p0 }
  0xf1   : > { %p2469_p2 = pnand %p2467_p3, %p2464_p1 }
  0xf3   : > { %2472 = shalt.err (!%p2469_p2)
}
  0xf4   : > { %s2473_s18 = scalar_lea.vmem %s465_s17, 512  ;;  %p2481_p4 = scmp.lt.s32.totalorder %s465_s17, %s465_s17 }
  0xf5   : > { %p2474_p5 = scmp.ne.s32.totalorder %s465_s17, %s2473_s18  ;;  %p2482_p10 = scmp.lt.s32.totalorder %s2473_s18, %s2473_s18 }
  0xf7   : > { %p2476_p7 = pnand %p2474_p5, %p2848_p8  ;;  %p2483_p11 = por %p2482_p10, %p2481_p4 }
  0xf9   : > { %p2477_p9 = pneg %p2476_p7 }
  0xfb   : > { %p2484_p12 = pnand %p2483_p11, %p2477_p9 }
  0xfd   : > { %2487 = shalt.err (!%p2484_p12)
}
  0xfe   : > { %2092 = dma.hbm_to_vmem [thread:$0]  (!%p2832_p6), %s3356_s8, 512, %s465_s17, [#allocation16], %s3388_s26, %s3388_s26, %s2702_s20  }
  0xff   : > { %s2488_s19 = scalar_lea.hbm %s3358_s10, 1024 }
 0x100   : > { %p2489_p13 = scmp.ne.s32.totalorder %s3358_s10, %s2488_s19  ;;  %p2495_p3 = scmp.lt.u32.totalorder %s2488_s19, %s3358_s10 }
 0x102   : > { %p2491_p0 = pnand %p2489_p13, %p2848_p8 }
 0x104   : > { %p2492_p1 = pneg %p2491_p0 }
 0x106   : > { %p2497_p2 = pnand %p2495_p3, %p2492_p1 }
 0x108   : > { %2500 = shalt.err (!%p2497_p2)
}
 0x109   : > { %s2501_s24 = scalar_lea.vmem %s489_s0, 1024  ;;  %p2509_p4 = scmp.lt.s32.totalorder %s489_s0, %s489_s0 }
 0x10a   : > { %p2502_p5 = scmp.ne.s32.totalorder %s489_s0, %s2501_s24  ;;  %p2510_p10 = scmp.lt.s32.totalorder %s2501_s24, %s2501_s24 }
 0x10c   : > { %p2504_p7 = pnand %p2502_p5, %p2848_p8  ;;  %p2511_p11 = por %p2510_p10, %p2509_p4 }
 0x10e   : > { %p2505_p9 = pneg %p2504_p7 }
 0x110   : > { %p2512_p12 = pnand %p2511_p11, %p2505_p9 }
 0x112   : > { %2515 = shalt.err (!%p2512_p12)
}
 0x113   : > { %2098 = dma.hbm_to_vmem [thread:$0]  (!%p2832_p6), %s3358_s10, 1024, %s489_s0, [#allocation19], %s3388_s26, %s3388_s26, %s2702_s20  }
 0x114   : > { %s2711_s1 = smov [#allocation23]   ;;  %s2712_s22 = smov [#allocation24]  }
 0x115   : > { %s513_s27 = sshll.u32 %s2711_s1, 4  ;;  %s524_s25 = sshll.u32 %s2712_s22, 4  ;;  %s514_s27 = int_to_ptr.vmem [resolvable:$true] %s513_s27  ;;  %s525_s25 = int_to_ptr.vmem [resolvable:$true] %s524_s25 }
 0x116   : > { %s2516_s28 = scalar_lea.hbm %s3360_s12, 16 }
 0x117   : > { %p2517_p13 = scmp.ne.s32.totalorder %s3360_s12, %s2516_s28  ;;  %p2523_p3 = scmp.lt.u32.totalorder %s2516_s28, %s3360_s12 }
 0x119   : > { %p2519_p0 = pnand %p2517_p13, %p2848_p8 }
 0x11b   : > { %p2520_p1 = pneg %p2519_p0 }
 0x11d   : > { %p2525_p2 = pnand %p2523_p3, %p2520_p1 }
 0x11f   : > { %2528 = shalt.err (!%p2525_p2)
}
 0x120   : > { %s2529_s20 = scalar_lea.vmem %s514_s27, 16  ;;  %s2536_s26 = scalar_lea.vmem %s514_s27, 32 }
 0x121   : > { %p2530_p5 = scmp.ne.s32.totalorder %s514_s27, %s2529_s20  ;;  %p2537_p4 = scmp.lt.s32.totalorder %s514_s27, %s514_s27 }
 0x122   : > { %p2538_p10 = scmp.lt.s32.totalorder %s2536_s26, %s2529_s20 }
 0x123   : > { %p2532_p7 = pnand %p2530_p5, %p2848_p8 }
 0x124   : > { %p2539_p11 = por %p2538_p10, %p2537_p4 }
 0x125   : > { %p2533_p9 = pneg %p2532_p7 }
 0x127   : > { %p2540_p12 = pnand %p2539_p11, %p2533_p9 }
 0x129   : > { %2543 = shalt.err (!%p2540_p12)
}
 0x12a   : > { %2104 = dma.hbm_to_vmem [thread:$0]  (!%p2832_p6), %s3360_s12, 16, %s514_s27, [#allocation22]  }
 0x12b   : > { %s2544_s19 = scalar_lea.hbm %s3361_s13, 16 }
 0x12c   : > { %p2545_p13 = scmp.ne.s32.totalorder %s3361_s13, %s2544_s19  ;;  %p2551_p3 = scmp.lt.u32.totalorder %s2544_s19, %s3361_s13 }
 0x12e   : > { %p2547_p0 = pnand %p2545_p13, %p2848_p8 }
 0x130   : > { %p2548_p1 = pneg %p2547_p0 }
 0x132   : > { %p2553_p2 = pnand %p2551_p3, %p2548_p1 }
 0x134   : > { %2556 = shalt.err (!%p2553_p2)
}
 0x135   : > { %s2557_s24 = scalar_lea.vmem %s525_s25, 16  ;;  %s2564_s27 = scalar_lea.vmem %s525_s25, 32 }
 0x136   : > { %p2558_p5 = scmp.ne.s32.totalorder %s525_s25, %s2557_s24  ;;  %p2565_p4 = scmp.lt.s32.totalorder %s525_s25, %s525_s25 }
 0x137   : > { %p2566_p10 = scmp.lt.s32.totalorder %s2564_s27, %s2557_s24 }
 0x138   : > { %p2560_p7 = pnand %p2558_p5, %p2848_p8 }
 0x139   : > { %p2567_p11 = por %p2566_p10, %p2565_p4 }
 0x13a   : > { %p2561_p9 = pneg %p2560_p7 }
 0x13c   : > { %p2568_p12 = pnand %p2567_p11, %p2561_p9 }
 0x13e   : > { %2571 = shalt.err (!%p2568_p12)
}
 0x13f   : > { %s3389_s26 = sld [smem:[#allocation37_spill]]  ;;  %s3390_s21 = sld [smem:[#allocation36_spill]] }
 0x140   : > { %s3391_s0 = sld [smem:[#allocation38_spill]]  ;;  %s1759_s18 = sadd.s32 4294967294, %s2696_s16  }
 0x141   : > { %2107 = dma.hbm_to_vmem [thread:$0]  (!%p2832_p6), %s3361_s13, 16, %s525_s25, [#allocation25]  }
 0x142   : > { %s3116_s23 = sadd.s32 1, %s2696_s16   ;;  %s44_s1 = sadd.s32 1, %s2692_s15 }
 0x143   : > { %s41_s22 = ssub.s32 %s2696_s16, %s3116_s23  ;;  %p52_p0 = scmp.eq.s32.totalorder %s2696_s16, 0 }
 0x144   : > { %p42_p13 = scmp.eq.s32.totalorder %s41_s22, 0  ;;  %p360_p9 = scmp.eq.s32.totalorder %s1759_s18, 1 }
 0x145   : > { %p51_p8 = scmp.ne.s32.totalorder %s2692_s15, %s3389_s26  ;;  %p57_p1 = scmp.ne.s32.totalorder %s3389_s26, %s3390_s21 }
 0x146   : > { %p354_p3 = scmp.eq.s32.totalorder %s3391_s0, 1  ;;  %p3392_p5 = scmp.eq.s32.totalorder %s3391_s0, 0 }
 0x147   : > { %s3128_s19 = scalar_select %p42_p13, %s2692_s15, %s44_s1  }
 0x148   : > { %p53_p2 = por %p52_p0, %p51_p8  ;;  %p3132_p7 = por %p3392_p5, %p57_p1 }
 0x149   : > { %p3136_p6 = por %p354_p3, %p51_p8  ;;  %p2129_p4 = scmp.lt.s32.totalorder %s2696_s16, 2 }
 0x14a   : > { %s535_s28 = sand.u32 1, %s2692_s15   ;;  %p3142_p10 = por %p360_p9, %p57_p1 }
 0x14b   : > { %s3394_s25 = scalar_select %p3136_p6, 1, 0 }
 0x14c   : > { %s3395_s30 = scalar_select %p3142_p10, 1, 0 }
 0x14d   : > { %s1775_s14 = sshll.u32 %s535_s28, 3  ;;  %s1776_s24 = sshll.u32 %s2696_s16, 7 }
 0x14e   : > { %s3396_s20 = sld [smem:[#allocation40_spill]]  ;;  %s539_s21 = scalar_lea.vmem [#allocation3], %s1775_s14 }
 0x14f   : > { %s546_s0 = sshll.u32 %s539_s21, 4  ;;  %p3152_p11 = pnand %p2129_p4, %p53_p2  ;;  %s3156_s0 = int_to_ptr.vmem [resolvable:$true] %s546_s0 }
 0x150   : > { %s536_s1 = scalar_lea.sflag [#allocation4], %s535_s28 }
 0x151   : > { %p2574_p8 = pneg %p3152_p11 }
 0x154   : > { %s3150_s26 = scalar_lea.hbm %s3396_s20, %s1776_s24  ;;  %s2577_s27 = scalar_lea.hbm %s3396_s20, 256 }
 0x155   : > { %s2572_s22 = scalar_lea.hbm %s3150_s26, 128  ;;  %p2578_p1 = scmp.lt.u32.totalorder %s3150_s26, %s3396_s20 }
 0x156   : > { %p2573_p12 = scmp.ne.s32.totalorder %s3150_s26, %s2572_s22  ;;  %p2579_p3 = scmp.lt.u32.totalorder %s2577_s27, %s2572_s22 }
 0x157   : > { %p2581_p5 = scmp.lt.u32.totalorder %s2572_s22, %s3150_s26 }
 0x158   : > { %p2575_p13 = pnand %p2574_p8, %p2573_p12  ;;  %p2580_p2 = por %p2579_p3, %p2578_p1 }
 0x15a   : > { %p2576_p0 = pneg %p2575_p13  ;;  %p2582_p9 = por %p2581_p5, %p2580_p2 }
 0x15c   : > { %p2583_p4 = pnand %p2582_p9, %p2576_p0 }
 0x15e   : > { %2586 = shalt.err (!%p2583_p4)
}
 0x15f   : > { %s2587_s28 = scalar_lea.vmem %s3156_s0, 128  ;;  %s2713_s24 = smov [#allocation3]  }
 0x160   : > { %p2588_p12 = scmp.ne.s32.totalorder %s3156_s0, %s2587_s28  ;;  %s2592_s14 = sshll.u32 %s2713_s24, 4  ;;  %s2593_s14 = int_to_ptr.vmem [resolvable:$false] %s2592_s14 }
 0x161   : > { %s2594_s17 = scalar_lea.vmem %s2593_s14, 256  ;;  %p2595_p6 = scmp.lt.s32.totalorder %s3156_s0, %s2593_s14 }
 0x162   : > { %p2590_p13 = pnand %p2588_p12, %p2574_p8  ;;  %p2596_p1 = scmp.lt.s32.totalorder %s2594_s17, %s2587_s28 }
 0x164   : > { %p2591_p10 = pneg %p2590_p13  ;;  %p2597_p3 = por %p2596_p1, %p2595_p6 }
 0x166   : > { %p2598_p2 = pnand %p2597_p3, %p2591_p10 }
 0x168   : > { %2601 = shalt.err (!%p2598_p2)
}
 0x169   : > { %2111 = dma.hbm_to_vmem [thread:$0]  (!%p3152_p11), %s3150_s26, 128, %s3156_s0, %s536_s1  }
 0x16a   : > { %s3398_s22 = sld [smem:[#allocation39_spill]] }
 0x170   : > { %p3399_p0 = scmp.ne.s32.totalorder %s3398_s22, 0 }
 0x171   : > { %s3400_s27 = sld [smem:[#allocation37_spill]] (!%p3399_p0) }
 0x172   : > { %555 = sbr.rel (%p3399_p0) target bundleno = 2613 (0xa35), region = 76 }
 0x177   : > { %s3186_s21 = sand.u32 (!%p3399_p0), 1, %s3400_s27  }
 0x178   : > { %s1778_s24 = sshll.u32 (!%p3399_p0), %s3186_s21, 3  ;;  %s558_s28 = scalar_lea.sflag (!%p3399_p0), [#allocation4], %s3186_s21 }
 0x179   : > { %s3192_s14 = scalar_lea.vmem [#allocation3], %s1778_s24 }
 0x17a   : > { %2647 = dma.done.wait (%p3132_p7), %s558_s28, 128  }
 0x17b   : > { %2649 = vsyncadd (%p3132_p7), %s558_s28, 4294967168  ;;  %s3401_s26 = sld [smem:[#allocation38_spill]] }
 0x181   : > { %p3402_p6 = scmp.eq.s32.totalorder %s3401_s26, 0 }
 0x183   : > { %2651 = dma.done.wait (%p3402_p6), [#allocation7], 1024   ;;  %p3403_p10 = pmov %p3402_p6 }
 0x184   : > { %p3404_p11 = pmov %p3402_p6 }
 0x185   : > { %2653 = vsyncadd (%p3403_p10), [#allocation7], 4294966272 }
 0x186   : > { %2655 = dma.done.wait (%p3404_p11), [#allocation10], 1536   ;;  %p3405_p8 = pmov %p3402_p6 }
 0x187   : > { %p3406_p5 = pmov %p3402_p6 }
 0x188   : > { %2657 = vsyncadd (%p3405_p8), [#allocation10], 4294965760 }
 0x189   : > { %2659 = dma.done.wait (%p3406_p5), [#allocation13], 32   ;;  %p3407_p9 = pmov %p3406_p5 }
 0x18a   : > { %p3408_p7 = pmov %p3406_p5 }
 0x18b   : > { %2661 = vsyncadd (%p3407_p9), [#allocation13], 4294967264 }
 0x18c   : > { %2663 = dma.done.wait (%p3408_p7), [#allocation16], 528   ;;  %p3409_p4 = pmov %p3406_p5 }
 0x18e   : > { %2665 = vsyncadd (%p3409_p4), [#allocation16], 4294966768  ;;  %p3410_p12 = pmov %p3409_p4 }
 0x18f   : > { %p3411_p13 = pmov %p3409_p4 }
 0x190   : > { %2667 = dma.done.wait (%p3410_p12), [#allocation19], 1040  }
 0x191   : > { %2669 = vsyncadd (%p3411_p13), [#allocation19], 4294966256  ;;  %p3412_p1 = pmov %p3409_p4 }
 0x193   : > { %2671 = dma.done.wait (%p3412_p1), [#allocation22], 32   ;;  %p3413_p3 = pmov %p3412_p1 }
 0x194   : > { %p3414_p2 = pmov %p3412_p1 }
 0x195   : > { %2673 = vsyncadd (%p3413_p3), [#allocation22], 4294967264 }
 0x196   : > { %2675 = dma.done.wait (%p3414_p2), [#allocation25], 16   ;;  %p3415_p0 = pmov %p3412_p1 }
 0x197   : > { %v2714_v0 = vmov 0.0|0.0   ;;  %vm2715_vm0 = vmmov 0   ;;  %v2716_v1 = vmov 0.0   ;;  %v737_v2 = vld [vmem:[#allocation8] sm:$0xff]  ;;  %v738_v3 = vld [vmem:[#allocation8 + $0x8] sm:$0xff]  ;;  %v739_v7 = vld [vmem:[#allocation8 + $0x10] sm:$0xff] }
 0x198   : > { %2677 = vsyncadd (%p3415_p0), [#allocation25], 4294967280  ;;  %1970 = vmatprep.subr.bf16.mxu1 %v2714_v0  ;;  %1964 = vmatprep.subr.bf16.mxu0 %v2714_v0  ;;  %v659_v4 = vld [vmem:[#allocation6] sm:$0xff]  ;;  %v1971_v5 = vpack.c.bf16 %v738_v3, %v737_v2  ;;  %v660_v6 = vld [vmem:[#allocation6 + $0x8] sm:$0xff]  ;;  %vm663_vm1 = vcmask 261120   ;;  %s2717_s29 = smov 96  }
 0x199   : > { %1881 = vmatprep.mubr.msk.f32.mxu1 %vm2715_vm0, %v2716_v1  ;;  %1870 = vmatprep.mubr.msk.f32.mxu0 %vm2715_vm0, %v2716_v1  ;;  %v740_v8 = vld [vmem:[#allocation8 + $0x18] sm:$0xff]  ;;  %v1965_v9 = vpack.c.bf16 %v660_v6, %v659_v4  ;;  %v661_v10 = vld [vmem:[#allocation6 + $0x10] sm:$0xff]  ;;  %v811_v14 = vld [vmem:[#allocation9] sm:$0xff]  ;;  %vm961_vm2 = vcmask 64512   ;;  %s2718_s0 = smov 32   ;;  %vm1217_vm3 = vcmask 523520  }
 0x19a   : > { %v662_v11 = vld [vmem:[#allocation6 + $0x18] sm:$0xff]  ;;  %1972 = vmatpush3.bf16.msra.mxu1 %v1971_v5  ;;  %v1974_v12 = vpack.c.bf16 %v740_v8, %v739_v7  ;;  %v812_v15 = vld [vmem:[#allocation9 + $0x8] sm:$0xff]  ;;  %v813_v18 = vld [vmem:[#allocation9 + $0x10] sm:$0xff]  ;;  %vm1228_vm4 = vcmask 523264   ;;  %s1813_s18 = sshll.u32 %s3401_s26, 7  ;;  %s657_s1 = scalar_lea.vmem [#allocation26], %s1778_s24 }
 0x19b   : > { %1966 = vmatpush3.bf16.msra.mxu0 %v1965_v9  ;;  %1973 = vmatprep.subr.bf16.mxu1 %v2714_v0  ;;  %v1968_v13 = vpack.c.bf16 %v662_v11, %v661_v10  ;;  %v3235_v16 = vld [vmem:[%s3192_s14] sm:$0xff]  ;;  %v1977_v17 = vpack.c.bf16 %v812_v15, %v811_v14  ;;  %v1220_v52 = vld [vmem:[#allocation11] sm:$0xff]  ;;  %v1221_v53 = vld [vmem:[#allocation11 + $0x8] sm:$0xff]  ;;  %s1565_s17 = sshll.u32 %s657_s1, 4  ;;  %s3416_s28 = sld [smem:[#allocation43_spill]]  ;;  %s3305_s17 = int_to_ptr.vmem [resolvable:$true] %s1565_s17 }
 0x19c   : > { %1967 = vmatprep.subr.bf16.mxu0 %v2714_v0  ;;  %v814_v19 = vld [vmem:[#allocation9 + $0x18] sm:$0xff]  ;;  %v1222_v54 = vld [vmem:[#allocation11 + $0x10] sm:$0xff]  ;;  %v1983_v55 = vpack.c.bf16 %v1221_v53, %v1220_v52  ;;  %v1224_v60 = vld [vmem:[#allocation11 + $0x20] sm:$0xff]  ;;  %p3417_p10 = scmp.ne.s32.totalorder %s3394_s25, 0  ;;  %s2719_s24 = smov [#allocation26]  }
 0x19d   : > { %v1980_v20 = vpack.c.bf16 %v814_v19, %v813_v18  ;;  %v1223_v56 = vld [vmem:[#allocation11 + $0x18] sm:$0xff]  ;;  %v1225_v61 = vld [vmem:[#allocation11 + $0x28] sm:$0xff]  ;;  %v1226_v63 = vld [vmem:[#allocation11 + $0x30] sm:$0xff]  ;;  %s2606_s26 = sshll.u32 %s2719_s24, 4  ;;  %s2607_s26 = int_to_ptr.vmem [resolvable:$false] %s2606_s26 }
 0x19e   : > { %1975 = vmatpush3.bf16.msra.mxu1 %v1974_v12  ;;  %v1986_v57 = vpack.c.bf16 %v1223_v56, %v1222_v54  ;;  %v1989_v62 = vpack.c.bf16 %v1225_v61, %v1224_v60  ;;  %v1227_v2 = vld [vmem:[#allocation11 + $0x38] sm:$0xff]  ;;  %v1803_v9 = vld [vmem:[#allocation12] ss:$0 sm:$0xff]  ;;  %v1345_v18 = vld [vmem:[#allocation17 + $0x8] sm:$0xff]  ;;  %s2608_s2 = scalar_lea.vmem %s2607_s26, 256  ;;  %p2609_p5 = scmp.lt.s32.totalorder %s3305_s17, %s2607_s26 }
 0x19f   : > { %1969 = vmatpush3.bf16.msra.mxu0 %v1968_v13  ;;  %1900 = vmatprep.subr.mxu1 %v2716_v1  ;;  %v1992_v3 = vpack.c.bf16 %v1227_v2, %v1226_v63  ;;  %v1808_v53 = vld [vmem:[#allocation21] ss:$0 sm:$0xff] }
 0x1a0   : > { %1976 = vmatprep.subr.bf16.mxu0 %v2714_v0 }
 0x1a1   : > { %1882 = vmatmul.mubr.msk.f32.vlgmr.msra.gmra.mrb[0].mxu1 %vm663_vm1, %v3235_v16  ;;  %s3303_s14 = scalar_lea.hbm %s3416_s28, %s1813_s18 }
 0x1a2   : > { %1871 = vmatmul.mubr.msk.f32.vlgmr.msra.gmra.mrb[0].mxu0 %vm663_vm1, %v3235_v16  ;;  %1902 = vmatprep.mubr.msk.f32.mxu1 %vm2715_vm0, %v2716_v1 }
 0x1a3   : > { %1978 = vmatpush3.bf16.msra.mxu0 %v1977_v17  ;;  %1892 = vmatprep.mubr.msk.f32.mxu0 %vm2715_vm0, %v2716_v1  ;;  %v1344_v17 = vld [vmem:[#allocation17] sm:$0xff] }
 0x1a4   : > { %1979 = vmatprep.subr.bf16.mxu0 %v2714_v0  ;;  %v1995_v19 = vpack.c.bf16 %v1345_v18, %v1344_v17 }
 0x1a7   : > { %1981 = vmatpush3.bf16.msra.mxu0 %v1980_v20  ;;  %v1346_v20 = vld [vmem:[#allocation17 + $0x10] sm:$0xff] }
 0x1a8   : > { %1895 = vmatprep.subr.mxu0 %v2716_v1 }
 0x1aa   : > { %1893 = vmatmul.mubr.msk.f32.vlgmr.msra.gmra.mrb[2].mxu0 %vm663_vm1, %v3235_v16 }
 0x1ab   : > { %1897 = vmatprep.mubr.msk.f32.mxu0 %vm2715_vm0, %v2716_v1 }
 0x274   : > { %v807_v21 = vpop.f32.mrb[0].mxu1 }
 0x275   : > { %1049 = vrot.lane.b32.xlu0 %v807_v21, %s2717_s29  ;;  %v1883_v22 = vpop.f32.mrb[1].mxu1  ;;  %1896 = vmatpush3.xpose.msk.msra.mxu0 %vm663_vm1, %v807_v21  ;;  %v733_v23 = vpop.f32.mrb[0].mxu0  ;;  %v1347_v21 = vld [vmem:[#allocation17 + $0x18] sm:$0xff] }
 0x276   : > { %v1872_v24 = vpop.f32.mrb[1].mxu0  ;;  %1905 = vmatprep.subr.mxu0 %v2716_v1  ;;  %v1998_v22 = vpack.c.bf16 %v1347_v21, %v1346_v20 }
 0x278   : > { %1898 = vmatmul.mubr.msk.f32.vlgmr.msra.gmra.mrb[4].mxu0 %vm663_vm1, %v733_v23 }
 0x279   : > { %1047 = vrot.lane.b32.xlu0 %v733_v23, %s2717_s29  ;;  %1907 = vmatprep.mubr.msk.f32.mxu0 %vm2715_vm0, %v2716_v1 }
 0x27d   : > { %v881_v25 = vpop.f32.mrb[2].mxu0 }
 0x27e   : > { %v1894_v26 = vpop.f32.mrb[3].mxu0  ;;  %1901 = vmatpush3.msra.mxu1 %v881_v25 }
 0x27f   : > { %1910 = vmatprep.subr.mxu1 %v2716_v1 }
 0x2e7   : > { %v1050_v27 = vpop.permute.xlu0 %1049 }
 0x2e8   : > { %1906 = vmatpush3.xpose.msk.msra.mxu0 %vm663_vm1, %v1050_v27 }
 0x2e9   : > { %1982 = vmatprep.subr.bf16.mxu0 %v2714_v0 }
 0x2eb   : > { %v1048_v28 = vpop.permute.xlu0 %1047 }
 0x2ec   : > { %1908 = vmatmul.mubr.msk.f32.vlgmr.msra.gmra.mrb[6].mxu0 %vm663_vm1, %v1048_v28 }
 0x2ed   : > { %1931 = vmatprep.mubr.msk.f32.mxu0 %vm2715_vm0, %v2716_v1  ;;  %1984 = vmatpush3.bf16.msra.mxu0 %v1983_v55 }
 0x2ee   : > { %1985 = vmatprep.subr.bf16.mxu0 %v2714_v0 }
 0x2f1   : > { %1987 = vmatpush3.bf16.msra.mxu0 %v1986_v57 }
 0x2f2   : > { %1988 = vmatprep.subr.bf16.mxu0 %v2714_v0 }
 0x2f5   : > { %1990 = vmatpush3.bf16.msra.mxu0 %v1989_v62 }
 0x2f6   : > { %1991 = vmatprep.subr.bf16.mxu0 %v2714_v0 }
 0x2f9   : > { %1993 = vmatpush3.bf16.msra.mxu0 %v1992_v3 }
 0x34b   : > { %v957_v29 = vpop.f32.mrb[4].mxu0 }
 0x34c   : > { %v1899_v30 = vpop.f32.mrb[5].mxu0  ;;  %v962_v31 = vsel %vm961_vm2, %v957_v29, -inf }
 0x34d   : > { %963 = vmax.xlane.f32.xlu1 %v962_v31 }
 0x3bf   : > { %v1121_v32 = vpop.f32.mrb[6].mxu0 }
 0x3c0   : > { %v1909_v33 = vpop.f32.mrb[7].mxu0  ;;  %v1125_v34 = vsel %vm961_vm2, %v1121_v32, -inf }
 0x3c1   : > { %1126 = vmax.xlane.f32.xlu1 %v1125_v34  ;;  %v1429_v34 = vld [vmem:[#allocation20] sm:$0xff] }
 0x3da   : > { %v964_v35 = vpop.xlane.xlu1 %963 }
 0x3db   : > { %v965_v36 = vsub.f32 %v957_v29, %v964_v35  ;;  %v1430_v35 = vld [vmem:[#allocation20 + $0x8] sm:$0xff] }
 0x3dd   : > { %v966_v37 = vmul.f32 1.442695, %v965_v36  ;;  %v1805_v36 = vld [vmem:[#allocation15] ss:$0 sm:$0xff] }
 0x3df   : > { %2196 = vpow2.f32 %v966_v37 }
 0x3e9   : > { %v2197_v38 = vpop.eup %2196 }
 0x3ea   : > { %v968_v39 = vsel %vm961_vm2, %v2197_v38, 0.0 }
 0x3eb   : > { %969 = vadd.xlane.f32.xlu0 %v968_v39 }
 0x44e   : > { %v1127_v40 = vpop.xlane.xlu1 %1126 }
 0x44f   : > { %v1128_v41 = vsub.f32 %v1121_v32, %v1127_v40  ;;  %v1804_v32 = vld [vmem:[#allocation14] ss:$0 sm:$0xff]  ;;  %v1431_v40 = vld [vmem:[#allocation20 + $0x10] sm:$0xff] }
 0x451   : > { %v1129_v42 = vmul.f32 1.442695, %v1128_v41  ;;  %v1432_v41 = vld [vmem:[#allocation20 + $0x18] sm:$0xff] }
 0x453   : > { %2198 = vpow2.f32 %v1129_v42  ;;  %v2004_v42 = vpack.c.bf16 %v1432_v41, %v1431_v40 }
 0x45d   : > { %v2199_v43 = vpop.eup %2198 }
 0x45e   : > { %v1131_v44 = vsel %vm961_vm2, %v2199_v43, 0.0 }
 0x45f   : > { %1132 = vadd.xlane.f32.xlu1 %v1131_v44  ;;  %v1434_v44 = vld [vmem:[#allocation20 + $0x28] sm:$0xff] }
 0x470   : > { %1137 = vrot.lane.b32.xlu1 %v881_v25, %s2717_s29  ;;  %s1552_s29 = scalar_lea.sflag [#allocation5], %s3186_s21 }
 0x478   : > { %v970_v45 = vpop.xlane.xlu0 %969 }
 0x479   : > { %2200 = vrcp.f32 %v970_v45 }
 0x483   : > { %v2201_v46 = vpop.eup %2200 }
 0x484   : > { %v972_v47 = vmul.f32 %v2201_v46, %v2197_v38  ;;  %v2001_v38 = vpack.c.bf16 %v1430_v35, %v1429_v34  ;;  %v1435_v46 = vld [vmem:[#allocation20 + $0x30] sm:$0xff] }
 0x486   : > { %1903 = vmatmul.mubr.msk.f32.vlgmr.msra.gmra.mrb[2].mxu1 %vm961_vm2, %v972_v47  ;;  %v1436_v47 = vld [vmem:[#allocation20 + $0x38] sm:$0xff] }
 0x487   : > { %1912 = vmatprep.mubr.msk.f32.mxu1 %vm2715_vm0, %v2716_v1 }
 0x4ec   : > { %v1133_v48 = vpop.xlane.xlu1 %1132 }
 0x4ed   : > { %2202 = vrcp.f32 %v1133_v48  ;;  %v2010_v48 = vpack.c.bf16 %v1436_v47, %v1435_v46 }
 0x4f0   : > { %v1138_v49 = vpop.permute.xlu1 %1137 }
 0x4f1   : > { %1911 = vmatpush3.msra.mxu1 %v1138_v49  ;;  %v1806_v49 = vld [vmem:[#allocation18] ss:$0 sm:$0xff] }
 0x4f2   : > { %1994 = vmatprep.subr.bf16.mxu1 %v2714_v0 }
 0x4f7   : > { %v2203_v50 = vpop.eup %2202 }
 0x4f8   : > { %v1135_v51 = vmul.f32 %v2203_v50, %v2199_v43  ;;  %v1433_v43 = vld [vmem:[#allocation20 + $0x20] sm:$0xff] }
 0x4f9   : > { %v2007_v45 = vpack.c.bf16 %v1434_v44, %v1433_v43 }
 0x4fa   : > { %1913 = vmatmul.mubr.msk.f32.vlgmr.msra.gmra.mrb[4].mxu1 %vm961_vm2, %v1135_v51 }
 0x4fb   : > { %1942 = vmatprep.mubr.msk.f32.mxu1 %vm2715_vm0, %v2716_v1  ;;  %1996 = vmatpush3.bf16.msra.mxu1 %v1995_v19 }
 0x4fc   : > { %1997 = vmatprep.subr.bf16.mxu1 %v2714_v0 }
 0x4ff   : > { %1999 = vmatpush3.bf16.msra.mxu1 %v1998_v22 }
 0x500   : > { %2000 = vmatprep.subr.bf16.mxu1 %v2714_v0 }
 0x559   : > { %v1042_v58 = vpop.f32.mrb[2].mxu1 }
 0x55a   : > { %1046 = vst.msk [vmem:[#allocation2] sm:$0xff] %vm663_vm1, %v1042_v58  ;;  %v1904_v59 = vpop.f32.mrb[3].mxu1 }
 0x5cd   : > { %v1209_v4 = vpop.f32.mrb[4].mxu1 }
 0x5ce   : > { %1214 = vrot.lane.b32.xlu1 %v1209_v4, %s2718_s0  ;;  %v1914_v5 = vpop.f32.mrb[5].mxu1  ;;  %s2602_s0 = scalar_lea.vmem %s3305_s17, 128 }
 0x5cf   : > { %p2603_p6 = scmp.ne.s32.totalorder %s3305_s17, %s2602_s0  ;;  %p2610_p9 = scmp.lt.s32.totalorder %s2608_s2, %s2602_s0 }
 0x5d1   : > { %p2604_p11 = pnand %p2603_p6, %p3417_p10  ;;  %p2611_p7 = por %p2610_p9, %p2609_p5 }
 0x5d3   : > { %p2605_p8 = pneg %p2604_p11 }
 0x5d5   : > { %p2612_p4 = pnand %p2611_p7, %p2605_p8 }
 0x640   : > { %v1215_v6 = vpop.permute.xlu1 %1214 }
 0x641   : > { %1218 = vst.msk [vmem:[#allocation2] sm:$0xff] %vm1217_vm3, %v1215_v6 }
 0x648   : > { %v1219_v7 = vld [vmem:[#allocation2] sm:$0xff] }
 0x649   : > { %1932 = vmatmul.mubr.msk.f32.vlgmr.msra.gmra.mrb[8].mxu0 %vm1228_vm4, %v1219_v7 }
 0x71c   : > { %v1298_v8 = vpop.f32.mrb[8].mxu0 }
 0x71d   : > { %v1302_v10 = vadd.f32 %v1298_v8, %v3235_v16  ;;  %v1933_v11 = vpop.f32.mrb[9].mxu0  ;;  %v1810_v8 = vld [vmem:[#allocation23] ss:$0 sm:$0xff] }
 0x71f   : > { %v1310_v12 = vadd.f32 %v1803_v9, %v1302_v10  ;;  %v1811_v10 = vld [vmem:[#allocation24] ss:$0 sm:$0xff] }
 0x721   : > { %v1311_v13 = vsel %vm663_vm1, %v1310_v12, 0.0  ;;  %v1316_v14 = vmul.f32 %v1310_v12, %v1310_v12 }
 0x722   : > { %1312 = vadd.xlane.f32.xlu1 %v1311_v13 }
 0x723   : > { %v1317_v15 = vsel %vm663_vm1, %v1316_v14, 0.0 }
 0x724   : > { %1318 = vadd.xlane.f32.xlu0 %v1317_v15 }
 0x7af   : > { %v1313_v16 = vpop.xlane.xlu1 %1312 }
 0x7b0   : > { %v1315_v23 = vmul.f32 0.03125, %v1313_v16 }
 0x7b1   : > { %v1319_v24 = vpop.xlane.xlu0 %1318 }
 0x7b2   : > { %v1321_v25 = vmul.f32 %v1315_v23, %v1315_v23  ;;  %v1320_v26 = vmul.f32 0.03125, %v1319_v24  ;;  %v1324_v30 = vsub.f32 %v1310_v12, %v1315_v23 }
 0x7b4   : > { %v1322_v27 = vsub.f32 %v1320_v26, %v1321_v25 }
 0x7b6   : > { %v1323_v28 = vmax.f32 %v1322_v27, 0.0 }
 0x7b8   : > { %v1325_v29 = vadd.f32 1e-05, %v1323_v28 }
 0x7ba   : > { %2204 = vrsqrt.f32 %v1325_v29 }
 0x7c4   : > { %v2205_v31 = vpop.eup %2204 }
 0x7c5   : > { %v1327_v33 = vmul.f32 %v2205_v31, %v1324_v30 }
 0x7c7   : > { %v1335_v37 = vmul.f32 %v1804_v32, %v1327_v33 }
 0x7c9   : > { %v1343_v39 = vadd.f32 %v1805_v36, %v1335_v37 }
 0x7cb   : > { %1943 = vmatmul.mubr.msk.f32.vlgmr.msra.gmra.mrb[6].mxu1 %vm663_vm1, %v1343_v39 }
 0x7cc   : > { %2002 = vmatpush3.bf16.msra.mxu1 %v2001_v38  ;;  %1961 = vmatprep.mubr.msk.f32.mxu1 %vm2715_vm0, %v2716_v1 }
 0x7cd   : > { %2003 = vmatprep.subr.bf16.mxu1 %v2714_v0 }
 0x7d0   : > { %2005 = vmatpush3.bf16.msra.mxu1 %v2004_v42 }
 0x7d1   : > { %2006 = vmatprep.subr.bf16.mxu1 %v2714_v0 }
 0x7d4   : > { %2008 = vmatpush3.bf16.msra.mxu1 %v2007_v45 }
 0x7d5   : > { %2009 = vmatprep.subr.bf16.mxu1 %v2714_v0 }
 0x7d8   : > { %2011 = vmatpush3.bf16.msra.mxu1 %v2010_v48 }
 0x89e   : > { %v1424_v50 = vpop.f32.mrb[6].mxu1 }
 0x89f   : > { %v1425_v51 = vadd.f32 %v1806_v49, %v1424_v50  ;;  %v1944_v52 = vpop.f32.mrb[7].mxu1 }
 0x8a1   : > { %v1428_v1 = vmax.f32 %v1425_v51, 0.0 }
 0x8a3   : > { %1962 = vmatmul.mubr.msk.f32.vlgmr.msra.gmra.mrb[8].mxu1 %vm1228_vm4, %v1428_v1 }
 0x976   : > { %v1513_v54 = vpop.f32.mrb[8].mxu1 }
 0x977   : > { %v1514_v55 = vadd.f32 %v1808_v53, %v1513_v54  ;;  %v1963_v56 = vpop.f32.mrb[9].mxu1 }
 0x979   : > { %v1517_v57 = vadd.f32 %v1514_v55, %v1343_v39 }
 0x97b   : > { %v1518_v58 = vsel %vm663_vm1, %v1517_v57, 0.0  ;;  %v1522_v59 = vmul.f32 %v1517_v57, %v1517_v57 }
 0x97c   : > { %1519 = vadd.xlane.f32.xlu0 %v1518_v58 }
 0x97d   : > { %v1523_v0 = vsel %vm663_vm1, %v1522_v59, 0.0 }
 0x980   : > { %1524 = vadd.xlane.f32.xlu0 %v1523_v0 }
 0xa09   : > { %v1520_v60 = vpop.xlane.xlu0 %1519 }
 0xa0a   : > { %v1521_v61 = vmul.f32 0.03125, %v1520_v60 }
 0xa0c   : > { %v1527_v63 = vmul.f32 %v1521_v61, %v1521_v61  ;;  %v1530_v6 = vsub.f32 %v1517_v57, %v1521_v61 }
 0xa0d   : > { %v1525_v62 = vpop.xlane.xlu0 %1524 }
 0xa0e   : > { %v1526_v2 = vmul.f32 0.03125, %v1525_v62 }
 0xa10   : > { %v1528_v3 = vsub.f32 %v1526_v2, %v1527_v63 }
 0xa12   : > { %v1529_v4 = vmax.f32 %v1528_v3, 0.0 }
 0xa14   : > { %v1531_v5 = vadd.f32 1e-05, %v1529_v4 }
 0xa16   : > { %2206 = vrsqrt.f32 %v1531_v5 }
 0xa20   : > { %v2207_v7 = vpop.eup %2206 }
 0xa21   : > { %v1533_v9 = vmul.f32 %v2207_v7, %v1530_v6 }
 0xa23   : > { %v1541_v11 = vmul.f32 %v1810_v8, %v1533_v9 }
 0xa25   : > { %v1549_v12 = vadd.f32 %v1811_v10, %v1541_v11 }
 0xa27   : > { %1550 = vst.msk [vmem:[%s657_s1] sm:$0xff] %vm663_vm1, %v1549_v12 }
 0xa28   : > { %2615 = shalt.err (!%p2612_p4)
}
 0xa29   : > { %s2616_s21 = scalar_lea.hbm %s3303_s14, 128  ;;  %s2620_s22 = scalar_lea.hbm %s3416_s28, 256 }
 0xa2a   : > { %p2617_p12 = scmp.ne.s32.totalorder %s3303_s14, %s2616_s21  ;;  %p2621_p3 = scmp.lt.u32.totalorder %s3303_s14, %s3416_s28 }
 0xa2b   : > { %p2622_p2 = scmp.lt.u32.totalorder %s2620_s22, %s2616_s21  ;;  %p2624_p6 = scmp.lt.u32.totalorder %s2616_s21, %s3303_s14 }
 0xa2c   : > { %p2618_p13 = pnand %p2617_p12, %p3417_p10 }
 0xa2d   : > { %p2623_p0 = por %p2622_p2, %p2621_p3 }
 0xa2e   : > { %p2619_p1 = pneg %p2618_p13 }
 0xa2f   : > { %p2625_p11 = por %p2624_p6, %p2623_p0 }
 0xa31   : > { %p2626_p8 = pnand %p2625_p11, %p2619_p1 }
 0xa33   : > { %2629 = shalt.err (!%p2626_p8)
}
 0xa34   : > { %2066 = dma.vmem_to_hbm [thread:$0]  (%p3417_p10), %s3305_s17, 128, %s3303_s14, %s1552_s29  }
 0xa35 PF: > { %s3418_s2 = sld [smem:[#allocation36_spill]]  ;;  %p3419_p5 = scmp.ne.s32.totalorder %s3395_s30, 0 }
 0xa36   : > { %p3420_p9 = scmp.ge.s32.totalorder %s2696_s16, 2 }
 0xa38   : > { %p2113_p7 = pnand %p3420_p9, %p3419_p5 }
 0xa3b   : > { %s1577_s0 = sand.u32 1, %s3418_s2  }
 0xa3c   : > { %s1578_s26 = scalar_lea.sflag [#allocation5], %s1577_s0 }
 0xa3d   : > { %2679 = dma.done.wait (!%p2113_p7), %s1578_s26, 128  }
 0xa3e   : > { %2681 = vsyncadd (!%p2113_p7), %s1578_s26, 4294967168  ;;  %s3421_s29 = sld [smem:[#allocation37_spill]]  ;;  %p34_p4 = scmp.ge.s32.totalorder %s3116_s23, 4  }
 0xa3f   : > { %s3422_s30 = smov %s2692_s15  ;;  %s3423_s15 = smov %s3128_s19 }
 0xa40   : > { %s3424_s16 = smov %s3116_s23  ;;  %36 = sbr.rel (!%p34_p4) target bundleno = 17 (0x11), region = 173 }
 0xa47   :  { %1583 = vsyncpa [#allocation4], 1 }
 0xa48   :  { %1585 = vsyncpa [#allocation4 + $0x1], 1 }
 0xa49   :  { %1586 = vsyncpa [#allocation7], 1 }
 0xa4a   :  { %1587 = vsyncpa [#allocation10], 1 }
 0xa4b   :  { %1588 = vsyncpa [#allocation13], 1 }
 0xa4c   :  { %1589 = vsyncpa [#allocation16], 1 }
 0xa4d   :  { %1590 = vsyncpa [#allocation19], 1 }
 0xa4e   :  { %1591 = vsyncpa [#allocation22], 1 }
 0xa4f   :  { %1592 = vsyncpa [#allocation25], 1 }
 0xa50   :  { %1593 = vsyncpa [#allocation5], 1 }
 0xa51   :  { %1595 = vsyncpa [#allocation5 + $0x1], 1 }

// kernel: tpu_custom_call.1
= control target key start
LH: loop header
LB: loop body
LE: loop exit
PB: predicated region body
PF: predicated region fallthrough
CT: control target
= control target key end

     0   :  { %s3348_s0 = inlined_call_operand.hbm [shape: f32[16,32], index: 0, kind: input, shape index: {}]   ;;  %s3349_s1 = inlined_call_operand.hbm [shape: f32[32,64], index: 1, kind: input, shape index: {}]   ;;  %s3350_s2 = inlined_call_operand.hbm [shape: f32[32,64], index: 2, kind: input, shape index: {}]   ;;  %s3351_s3 = inlined_call_operand.hbm [shape: f32[32,64], index: 3, kind: input, shape index: {}]   ;;  %s3352_s4 = inlined_call_operand.hbm [shape: f32[64,32], index: 4, kind: input, shape index: {}]   ;;  %s3353_s5 = inlined_call_operand.hbm [shape: f32[1,32], index: 5, kind: input, shape index: {}]   ;;  %s3354_s6 = inlined_call_operand.hbm [shape: f32[1,32], index: 6, kind: input, shape index: {}]   ;;  %s3355_s7 = inlined_call_operand.hbm [shape: f32[1,32], index: 7, kind: input, shape index: {}]   ;;  %s3356_s8 = inlined_call_operand.hbm [shape: f32[32,64], index: 8, kind: input, shape index: {}]   ;;  %s3357_s9 = inlined_call_operand.hbm [shape: f32[1,64], index: 9, kind: input, shape index: {}]   ;;  %s3358_s10 = inlined_call_operand.hbm [shape: f32[64,32], index: 10, kind: input, shape index: {}]   ;;  %s3359_s11 = inlined_call_operand.hbm [shape: f32[1,32], index: 11, kind: input, shape index: {}]   ;;  %s3360_s12 = inlined_call_operand.hbm [shape: f32[1,32], index: 12, kind: input, shape index: {}]   ;;  %s3361_s13 = inlined_call_operand.hbm [shape: f32[1,32], index: 13, kind: input, shape index: {}]   ;;  %s3362_s14 = inlined_call_operand.hbm [shape: f32[16,32], index: 14, kind: output, shape index: {}]  }
   0x1   :  { %3375 = sst [smem:[#allocation40_spill]] %s3348_s0 }
   0x2   :  { %3376 = sst [smem:[#allocation41_spill]] %s3349_s1 }
   0x3   :  { %3377 = sst [smem:[#allocation42_spill]] %s3350_s2 }
   0x4   :  { %3378 = sst [smem:[#allocation43_spill]] %s3362_s14 }
   0x5   :  { %19 = vsyncpa [#allocation4], 0 }
   0x6   :  { %21 = vsyncpa [#allocation4 + $0x1], 0 }
   0x7   :  { %22 = vsyncpa [#allocation7], 0 }
   0x8   :  { %23 = vsyncpa [#allocation10], 0 }
   0x9   :  { %24 = vsyncpa [#allocation13], 0 }
   0xa   :  { %25 = vsyncpa [#allocation16], 0 }
   0xb   :  { %26 = vsyncpa [#allocation19], 0 }
   0xc   :  { %27 = vsyncpa [#allocation22], 0 }
   0xd   :  { %28 = vsyncpa [#allocation25], 0 }
   0xe   :  { %29 = vsyncpa [#allocation5], 0 }
   0xf   :  { %31 = vsyncpa [#allocation5 + $0x1], 0  ;;  %s2795_s29 = smov 0   ;;  %s2797_s30 = smov 0  }
  0x10   :  { %s2799_s15 = smov 0   ;;  %s2801_s16 = smov 0  }
  0x11 LB: > { %3379 = sst [smem:[#allocation36_spill]] %s2684_s29  ;;  %s2698_s17 = smov [#allocation6]   ;;  %s2696_s16 = sphi %s2801_s16, %s3424_s16   ;;  %s2692_s15 = sphi %s2799_s15, %s3423_s15   ;;  %s2688_s30 = sphi %s2797_s30, %s3422_s30   ;;  %s2684_s29 = sphi %s2795_s29, %s3421_s29  }
  0x12   : > { %3380 = sst [smem:[#allocation37_spill]] %s2688_s30  ;;  %s379_s18 = sshll.u32 %s2698_s17, 4  ;;  %s2821_s18 = int_to_ptr.vmem [resolvable:$true] %s379_s18 }
  0x13   : > { %s2816_s19 = sadd.s32 4294967295, %s2696_s16   ;;  %p1760_p0 = scmp.ge.s32.totalorder %s2696_s16, 1 }
  0x14   : > { %3381 = sst [smem:[#allocation38_spill]] %s2816_s19  ;;  %p3372_p1 = scmp.eq.s32.totalorder %s2816_s19, 0 }
  0x15   : > { %p367_p2 = scmp.lt.s32.totalorder %s2696_s16, 3  ;;  %s2699_s21 = smov [#allocation9]  }
  0x16   : > { %s405_s22 = sshll.u32 %s2699_s21, 4  ;;  %s2700_s24 = smov [#allocation12]   ;;  %s2836_s22 = int_to_ptr.vmem [resolvable:$true] %s405_s22 }
  0x17   : > { %p2823_p3 = pnand %p1760_p0, %p367_p2  ;;  %s432_s25 = sshll.u32 %s2700_s24, 4  ;;  %s2838_s25 = int_to_ptr.vmem [resolvable:$true] %s432_s25 }
  0x18   : > { %s3385_s1 = sld [smem:[#allocation41_spill]] }
  0x19   : > { %s3382_s20 = scalar_select %p2823_p3, 1, 0 }
  0x1a   : > { %p2068_p5 = pneg %p2823_p3 }
  0x1b   : > { %3383 = sst [smem:[#allocation39_spill]] %s3382_s20 }
  0x1c   : > { %p2832_p6 = pnand %p2068_p5, %p3372_p1 }
  0x1e   : > { %s2208_s28 = scalar_lea.hbm %s3385_s1, 512  ;;  %p2848_p8 = pneg %p2832_p6 }
  0x1f   : > { %p2209_p7 = scmp.ne.s32.totalorder %s3385_s1, %s2208_s28  ;;  %p2215_p11 = scmp.lt.u32.totalorder %s2208_s28, %s3385_s1 }
  0x21   : > { %p2211_p9 = pnand %p2848_p8, %p2209_p7 }
  0x23   : > { %p2212_p10 = pneg %p2211_p9 }
  0x25   : > { %p2217_p12 = pnand %p2215_p11, %p2212_p10 }
  0x27   : > { %2220 = shalt.err (!%p2217_p12)
}
  0x28   : > { %s2221_s14 = scalar_lea.vmem %s2821_s18, 512  ;;  %p2229_p5 = scmp.lt.s32.totalorder %s2821_s18, %s2821_s18 }
  0x29   : > { %p2222_p13 = scmp.ne.s32.totalorder %s2821_s18, %s2221_s14  ;;  %p2230_p4 = scmp.lt.s32.totalorder %s2221_s14, %s2221_s14 }
  0x2b   : > { %p2224_p0 = pnand %p2222_p13, %p2848_p8  ;;  %p2231_p7 = por %p2230_p4, %p2229_p5 }
  0x2d   : > { %p2225_p2 = pneg %p2224_p0 }
  0x2f   : > { %p2232_p9 = pnand %p2231_p7, %p2225_p2 }
  0x31   : > { %2235 = shalt.err (!%p2232_p9)
}
  0x32   : > { %s3370_s26 = smov 128   ;;  %s2702_s20 = smov 8  }
  0x33   : > { %2071 = dma.hbm_to_vmem [thread:$0]  (!%p2832_p6), %s3385_s1, 512, %s2821_s18, [#allocation7], %s3370_s26, %s3370_s26, %s2702_s20  }
  0x34   : > { %s2236_s14 = scalar_lea.hbm %s3351_s3, 512 }
  0x35   : > { %p2237_p4 = scmp.ne.s32.totalorder %s3351_s3, %s2236_s14  ;;  %p2243_p12 = scmp.lt.u32.totalorder %s2236_s14, %s3351_s3 }
  0x37   : > { %p2239_p10 = pnand %p2237_p4, %p2848_p8 }
  0x39   : > { %p2240_p11 = pneg %p2239_p10 }
  0x3b   : > { %p2245_p13 = pnand %p2243_p12, %p2240_p11 }
  0x3d   : > { %2248 = shalt.err (!%p2245_p13)
}
  0x3e   : > { %s2249_s18 = scalar_lea.vmem %s2836_s22, 512  ;;  %p2257_p7 = scmp.lt.s32.totalorder %s2836_s22, %s2836_s22 }
  0x3f   : > { %p2250_p0 = scmp.ne.s32.totalorder %s2836_s22, %s2249_s18  ;;  %p2258_p9 = scmp.lt.s32.totalorder %s2249_s18, %s2249_s18 }
  0x41   : > { %p2252_p2 = pnand %p2250_p0, %p2848_p8  ;;  %p2259_p4 = por %p2258_p9, %p2257_p7 }
  0x43   : > { %p2253_p5 = pneg %p2252_p2 }
  0x45   : > { %p2260_p10 = pnand %p2259_p4, %p2253_p5 }
  0x47   : > { %2263 = shalt.err (!%p2260_p10)
}
  0x48   : > { %2077 = dma.hbm_to_vmem [thread:$0]  (!%p2832_p6), %s3351_s3, 512, %s2836_s22, [#allocation10], %s3370_s26, %s3370_s26, %s2702_s20  }
  0x49   : > { %s2264_s27 = scalar_lea.hbm %s3353_s5, 16 }
  0x4a   : > { %p2265_p11 = scmp.ne.s32.totalorder %s3353_s5, %s2264_s27  ;;  %p2271_p0 = scmp.lt.u32.totalorder %s2264_s27, %s3353_s5 }
  0x4c   : > { %p2267_p12 = pnand %p2265_p11, %p2848_p8 }
  0x4e   : > { %p2268_p13 = pneg %p2267_p12 }
  0x50   : > { %p2273_p2 = pnand %p2271_p0, %p2268_p13 }
  0x52   : > { %2276 = shalt.err (!%p2273_p2)
}
  0x53   : > { %s2277_s22 = scalar_lea.vmem %s2838_s25, 16  ;;  %s2284_s18 = scalar_lea.vmem %s2838_s25, 32 }
  0x54   : > { %p2278_p5 = scmp.ne.s32.totalorder %s2838_s25, %s2277_s22  ;;  %p2285_p4 = scmp.lt.s32.totalorder %s2838_s25, %s2838_s25 }
  0x55   : > { %p2286_p10 = scmp.lt.s32.totalorder %s2284_s18, %s2277_s22 }
  0x56   : > { %p2280_p7 = pnand %p2278_p5, %p2848_p8 }
  0x57   : > { %p2287_p11 = por %p2286_p10, %p2285_p4 }
  0x58   : > { %p2281_p9 = pneg %p2280_p7 }
  0x5a   : > { %p2288_p12 = pnand %p2287_p11, %p2281_p9 }
  0x5c   : > { %2291 = shalt.err (!%p2288_p12)
}
  0x5d   : > { %2083 = dma.hbm_to_vmem [thread:$0]  (!%p2832_p6), %s3353_s5, 16, %s2838_s25, [#allocation13]  }
  0x5e   : > { %s2703_s30 = smov [#allocation15]   ;;  %s2704_s27 = smov [#allocation18]  }
  0x5f   : > { %s454_s19 = sshll.u32 %s2703_s30, 4  ;;  %s478_s28 = sshll.u32 %s2704_s27, 4  ;;  %s455_s19 = int_to_ptr.vmem [resolvable:$true] %s454_s19  ;;  %s479_s28 = int_to_ptr.vmem [resolvable:$true] %s478_s28 }
  0x60   : > { %s2292_s14 = scalar_lea.hbm %s3355_s7, 16 }
  0x61   : > { %p2293_p13 = scmp.ne.s32.totalorder %s3355_s7, %s2292_s14  ;;  %p2299_p5 = scmp.lt.u32.totalorder %s2292_s14, %s3355_s7 }
  0x63   : > { %p2295_p0 = pnand %p2293_p13, %p2848_p8 }
  0x65   : > { %p2296_p2 = pneg %p2295_p0 }
  0x67   : > { %p2301_p7 = pnand %p2299_p5, %p2296_p2 }
  0x69   : > { %2304 = shalt.err (!%p2301_p7)
}
  0x6a   : > { %s2305_s25 = scalar_lea.vmem %s455_s19, 16  ;;  %s2312_s29 = scalar_lea.vmem %s455_s19, 32 }
  0x6b   : > { %p2306_p9 = scmp.ne.s32.totalorder %s455_s19, %s2305_s25  ;;  %p2313_p11 = scmp.lt.s32.totalorder %s455_s19, %s455_s19 }
  0x6c   : > { %p2314_p12 = scmp.lt.s32.totalorder %s2312_s29, %s2305_s25 }
  0x6d   : > { %p2308_p4 = pnand %p2306_p9, %p2848_p8 }
  0x6e   : > { %p2315_p1 = por %p2314_p12, %p2313_p11 }
  0x6f   : > { %p2309_p10 = pneg %p2308_p4 }
  0x71   : > { %p2316_p3 = pnand %p2315_p1, %p2309_p10 }
  0x73   : > { %2319 = shalt.err (!%p2316_p3)
}
  0x74   : > { %2089 = dma.hbm_to_vmem [thread:$0]  (!%p2832_p6), %s3355_s7, 16, %s455_s19, [#allocation16]  }
  0x75   : > { %s2320_s24 = scalar_lea.hbm %s3357_s9, 16 }
  0x76   : > { %p2321_p13 = scmp.ne.s32.totalorder %s3357_s9, %s2320_s24  ;;  %p2327_p3 = scmp.lt.u32.totalorder %s2320_s24, %s3357_s9 }
  0x78   : > { %p2323_p0 = pnand %p2321_p13, %p2848_p8 }
  0x7a   : > { %p2324_p1 = pneg %p2323_p0 }
  0x7c   : > { %p2329_p2 = pnand %p2327_p3, %p2324_p1 }
  0x7e   : > { %2332 = shalt.err (!%p2329_p2)
}
  0x7f   : > { %s2333_s25 = scalar_lea.vmem %s479_s28, 16  ;;  %s2340_s19 = scalar_lea.vmem %s479_s28, 32 }
  0x80   : > { %p2334_p5 = scmp.ne.s32.totalorder %s479_s28, %s2333_s25  ;;  %p2341_p4 = scmp.lt.s32.totalorder %s479_s28, %s479_s28 }
  0x81   : > { %p2342_p10 = scmp.lt.s32.totalorder %s2340_s19, %s2333_s25 }
  0x82   : > { %p2336_p7 = pnand %p2334_p5, %p2848_p8 }
  0x83   : > { %p2343_p11 = por %p2342_p10, %p2341_p4 }
  0x84   : > { %p2337_p9 = pneg %p2336_p7 }
  0x86   : > { %p2344_p12 = pnand %p2343_p11, %p2337_p9 }
  0x88   : > { %2347 = shalt.err (!%p2344_p12)
}
  0x89   : > { %2095 = dma.hbm_to_vmem [thread:$0]  (!%p2832_p6), %s3357_s9, 16, %s479_s28, [#allocation19]  }
  0x8a   : > { %s2705_s27 = smov [#allocation21]   ;;  %s2706_s17 = smov [#allocation8]  }
  0x8b   : > { %s502_s26 = sshll.u32 %s2705_s27, 4  ;;  %s392_s24 = sshll.u32 %s2706_s17, 4  ;;  %s503_s26 = int_to_ptr.vmem [resolvable:$true] %s502_s26  ;;  %s393_s24 = int_to_ptr.vmem [resolvable:$true] %s392_s24 }
  0x8c   : > { %s2348_s18 = scalar_lea.hbm %s3359_s11, 16 }
  0x8d   : > { %p2349_p13 = scmp.ne.s32.totalorder %s3359_s11, %s2348_s18  ;;  %p2355_p3 = scmp.lt.u32.totalorder %s2348_s18, %s3359_s11 }
  0x8f   : > { %p2351_p0 = pnand %p2349_p13, %p2848_p8 }
  0x91   : > { %p2352_p1 = pneg %p2351_p0 }
  0x93   : > { %p2357_p2 = pnand %p2355_p3, %p2352_p1 }
  0x95   : > { %2360 = shalt.err (!%p2357_p2)
}
  0x96   : > { %s2361_s28 = scalar_lea.vmem %s503_s26, 16  ;;  %s2368_s30 = scalar_lea.vmem %s503_s26, 32 }
  0x97   : > { %p2362_p5 = scmp.ne.s32.totalorder %s503_s26, %s2361_s28  ;;  %p2369_p4 = scmp.lt.s32.totalorder %s503_s26, %s503_s26 }
  0x98   : > { %p2370_p10 = scmp.lt.s32.totalorder %s2368_s30, %s2361_s28 }
  0x99   : > { %p2364_p7 = pnand %p2362_p5, %p2848_p8 }
  0x9a   : > { %p2371_p11 = por %p2370_p10, %p2369_p4 }
  0x9b   : > { %p2365_p9 = pneg %p2364_p7 }
  0x9d   : > { %p2372_p12 = pnand %p2371_p11, %p2365_p9 }
  0x9f   : > { %2375 = shalt.err (!%p2372_p12)
}
  0xa0   : > { %2101 = dma.hbm_to_vmem [thread:$0]  (!%p2832_p6), %s3359_s11, 16, %s503_s26, [#allocation22]  }
  0xa1   : > { %s3387_s2 = sld [smem:[#allocation42_spill]] }
  0xa7   : > { %s2376_s18 = scalar_lea.hbm %s3387_s2, 512 }
  0xa8   : > { %p2377_p13 = scmp.ne.s32.totalorder %s3387_s2, %s2376_s18  ;;  %p2383_p3 = scmp.lt.u32.totalorder %s2376_s18, %s3387_s2 }
  0xaa   : > { %p2379_p0 = pnand %p2377_p13, %p2848_p8 }
  0xac   : > { %p2380_p1 = pneg %p2379_p0 }
  0xae   : > { %p2385_p2 = pnand %p2383_p3, %p2380_p1 }
  0xb0   : > { %2388 = shalt.err (!%p2385_p2)
}
  0xb1   : > { %s2389_s28 = scalar_lea.vmem %s393_s24, 512  ;;  %p2397_p4 = scmp.lt.s32.totalorder %s393_s24, %s393_s24 }
  0xb2   : > { %p2390_p5 = scmp.ne.s32.totalorder %s393_s24, %s2389_s28  ;;  %p2398_p10 = scmp.lt.s32.totalorder %s2389_s28, %s2389_s28 }
  0xb4   : > { %p2392_p7 = pnand %p2390_p5, %p2848_p8  ;;  %p2399_p11 = por %p2398_p10, %p2397_p4 }
  0xb6   : > { %p2393_p9 = pneg %p2392_p7 }
  0xb8   : > { %p2400_p12 = pnand %p2399_p11, %p2393_p9 }
  0xba   : > { %2403 = shalt.err (!%p2400_p12)
}
  0xbb   : > { %s3388_s26 = smov 128   ;;  %s2707_s17 = smov [#allocation11]  }
  0xbc   : > { %2074 = dma.hbm_to_vmem [thread:$0]  (!%p2832_p6), %s3387_s2, 512, %s393_s24, [#allocation7], %s3388_s26, %s3388_s26, %s2702_s20  }
  0xbd   : > { %s418_s14 = sshll.u32 %s2707_s17, 4  ;;  %s2708_s22 = smov [#allocation14]   ;;  %s419_s14 = int_to_ptr.vmem [resolvable:$true] %s418_s14 }
  0xbe   : > { %s443_s18 = sshll.u32 %s2708_s22, 4  ;;  %s2404_s19 = scalar_lea.hbm %s3352_s4, 1024  ;;  %s444_s18 = int_to_ptr.vmem [resolvable:$true] %s443_s18 }
  0xbf   : > { %p2405_p13 = scmp.ne.s32.totalorder %s3352_s4, %s2404_s19  ;;  %p2411_p3 = scmp.lt.u32.totalorder %s2404_s19, %s3352_s4 }
  0xc1   : > { %p2407_p0 = pnand %p2405_p13, %p2848_p8 }
  0xc3   : > { %p2408_p1 = pneg %p2407_p0 }
  0xc5   : > { %p2413_p2 = pnand %p2411_p3, %p2408_p1 }
  0xc7   : > { %2416 = shalt.err (!%p2413_p2)
}
  0xc8   : > { %s2417_s24 = scalar_lea.vmem %s419_s14, 1024  ;;  %p2425_p4 = scmp.lt.s32.totalorder %s419_s14, %s419_s14 }
  0xc9   : > { %p2418_p5 = scmp.ne.s32.totalorder %s419_s14, %s2417_s24  ;;  %p2426_p10 = scmp.lt.s32.totalorder %s2417_s24, %s2417_s24 }
  0xcb   : > { %p2420_p7 = pnand %p2418_p5, %p2848_p8  ;;  %p2427_p11 = por %p2426_p10, %p2425_p4 }
  0xcd   : > { %p2421_p9 = pneg %p2420_p7 }
  0xcf   : > { %p2428_p12 = pnand %p2427_p11, %p2421_p9 }
  0xd1   : > { %2431 = shalt.err (!%p2428_p12)
}
  0xd2   : > { %2080 = dma.hbm_to_vmem [thread:$0]  (!%p2832_p6), %s3352_s4, 1024, %s419_s14, [#allocation10], %s3388_s26, %s3388_s26, %s2702_s20  }
  0xd3   : > { %s2432_s0 = scalar_lea.hbm %s3354_s6, 16 }
  0xd4   : > { %p2433_p13 = scmp.ne.s32.totalorder %s3354_s6, %s2432_s0  ;;  %p2439_p3 = scmp.lt.u32.totalorder %s2432_s0, %s3354_s6 }
  0xd6   : > { %p2435_p0 = pnand %p2433_p13, %p2848_p8 }
  0xd8   : > { %p2436_p1 = pneg %p2435_p0 }
  0xda   : > { %p2441_p2 = pnand %p2439_p3, %p2436_p1 }
  0xdc   : > { %2444 = shalt.err (!%p2441_p2)
}
  0xdd   : > { %s2445_s30 = scalar_lea.vmem %s444_s18, 16  ;;  %s2452_s14 = scalar_lea.vmem %s444_s18, 32 }
  0xde   : > { %p2446_p5 = scmp.ne.s32.totalorder %s444_s18, %s2445_s30  ;;  %p2453_p4 = scmp.lt.s32.totalorder %s444_s18, %s444_s18 }
  0xdf   : > { %p2454_p10 = scmp.lt.s32.totalorder %s2452_s14, %s2445_s30 }
  0xe0   : > { %p2448_p7 = pnand %p2446_p5, %p2848_p8 }
  0xe1   : > { %p2455_p11 = por %p2454_p10, %p2453_p4 }
  0xe2   : > { %p2449_p9 = pneg %p2448_p7 }
  0xe4   : > { %p2456_p12 = pnand %p2455_p11, %p2449_p9 }
  0xe6   : > { %2459 = shalt.err (!%p2456_p12)
}
  0xe7   : > { %2086 = dma.hbm_to_vmem [thread:$0]  (!%p2832_p6), %s3354_s6, 16, %s444_s18, [#allocation13]  }
  0xe8   : > { %s2709_s27 = smov [#allocation17]   ;;  %s2710_s22 = smov [#allocation20]  }
  0xe9   : > { %s464_s17 = sshll.u32 %s2709_s27, 4  ;;  %s488_s0 = sshll.u32 %s2710_s22, 4  ;;  %s465_s17 = int_to_ptr.vmem [resolvable:$true] %s464_s17  ;;  %s489_s0 = int_to_ptr.vmem [resolvable:$true] %s488_s0 }
  0xea   : > { %s2460_s29 = scalar_lea.hbm %s3356_s8, 512 }
  0xeb   : > { %p2461_p13 = scmp.ne.s32.totalorder %s3356_s8, %s2460_s29  ;;  %p2467_p3 = scmp.lt.u32.totalorder %s2460_s29, %s3356_s8 }
  0xed   : > { %p2463_p0 = pnand %p2461_p13, %p2848_p8 }
  0xef   : > { %p2464_p1 = pneg %p2463_p0 }
  0xf1   : > { %p2469_p2 = pnand %p2467_p3, %p2464_p1 }
  0xf3   : > { %2472 = shalt.err (!%p2469_p2)
}
  0xf4   : > { %s2473_s18 = scalar_lea.vmem %s465_s17, 512  ;;  %p2481_p4 = scmp.lt.s32.totalorder %s465_s17, %s465_s17 }
  0xf5   : > { %p2474_p5 = scmp.ne.s32.totalorder %s465_s17, %s2473_s18  ;;  %p2482_p10 = scmp.lt.s32.totalorder %s2473_s18, %s2473_s18 }
  0xf7   : > { %p2476_p7 = pnand %p2474_p5, %p2848_p8  ;;  %p2483_p11 = por %p2482_p10, %p2481_p4 }
  0xf9   : > { %p2477_p9 = pneg %p2476_p7 }
  0xfb   : > { %p2484_p12 = pnand %p2483_p11, %p2477_p9 }
  0xfd   : > { %2487 = shalt.err (!%p2484_p12)
}
  0xfe   : > { %2092 = dma.hbm_to_vmem [thread:$0]  (!%p2832_p6), %s3356_s8, 512, %s465_s17, [#allocation16], %s3388_s26, %s3388_s26, %s2702_s20  }
  0xff   : > { %s2488_s19 = scalar_lea.hbm %s3358_s10, 1024 }
 0x100   : > { %p2489_p13 = scmp.ne.s32.totalorder %s3358_s10, %s2488_s19  ;;  %p2495_p3 = scmp.lt.u32.totalorder %s2488_s19, %s3358_s10 }
 0x102   : > { %p2491_p0 = pnand %p2489_p13, %p2848_p8 }
 0x104   : > { %p2492_p1 = pneg %p2491_p0 }
 0x106   : > { %p2497_p2 = pnand %p2495_p3, %p2492_p1 }
 0x108   : > { %2500 = shalt.err (!%p2497_p2)
}
 0x109   : > { %s2501_s24 = scalar_lea.vmem %s489_s0, 1024  ;;  %p2509_p4 = scmp.lt.s32.totalorder %s489_s0, %s489_s0 }
 0x10a   : > { %p2502_p5 = scmp.ne.s32.totalorder %s489_s0, %s2501_s24  ;;  %p2510_p10 = scmp.lt.s32.totalorder %s2501_s24, %s2501_s24 }
 0x10c   : > { %p2504_p7 = pnand %p2502_p5, %p2848_p8  ;;  %p2511_p11 = por %p2510_p10, %p2509_p4 }
 0x10e   : > { %p2505_p9 = pneg %p2504_p7 }
 0x110   : > { %p2512_p12 = pnand %p2511_p11, %p2505_p9 }
 0x112   : > { %2515 = shalt.err (!%p2512_p12)
}
 0x113   : > { %2098 = dma.hbm_to_vmem [thread:$0]  (!%p2832_p6), %s3358_s10, 1024, %s489_s0, [#allocation19], %s3388_s26, %s3388_s26, %s2702_s20  }
 0x114   : > { %s2711_s1 = smov [#allocation23]   ;;  %s2712_s22 = smov [#allocation24]  }
 0x115   : > { %s513_s27 = sshll.u32 %s2711_s1, 4  ;;  %s524_s25 = sshll.u32 %s2712_s22, 4  ;;  %s514_s27 = int_to_ptr.vmem [resolvable:$true] %s513_s27  ;;  %s525_s25 = int_to_ptr.vmem [resolvable:$true] %s524_s25 }
 0x116   : > { %s2516_s28 = scalar_lea.hbm %s3360_s12, 16 }
 0x117   : > { %p2517_p13 = scmp.ne.s32.totalorder %s3360_s12, %s2516_s28  ;;  %p2523_p3 = scmp.lt.u32.totalorder %s2516_s28, %s3360_s12 }
 0x119   : > { %p2519_p0 = pnand %p2517_p13, %p2848_p8 }
 0x11b   : > { %p2520_p1 = pneg %p2519_p0 }
 0x11d   : > { %p2525_p2 = pnand %p2523_p3, %p2520_p1 }
 0x11f   : > { %2528 = shalt.err (!%p2525_p2)
}
 0x120   : > { %s2529_s20 = scalar_lea.vmem %s514_s27, 16  ;;  %s2536_s26 = scalar_lea.vmem %s514_s27, 32 }
 0x121   : > { %p2530_p5 = scmp.ne.s32.totalorder %s514_s27, %s2529_s20  ;;  %p2537_p4 = scmp.lt.s32.totalorder %s514_s27, %s514_s27 }
 0x122   : > { %p2538_p10 = scmp.lt.s32.totalorder %s2536_s26, %s2529_s20 }
 0x123   : > { %p2532_p7 = pnand %p2530_p5, %p2848_p8 }
 0x124   : > { %p2539_p11 = por %p2538_p10, %p2537_p4 }
 0x125   : > { %p2533_p9 = pneg %p2532_p7 }
 0x127   : > { %p2540_p12 = pnand %p2539_p11, %p2533_p9 }
 0x129   : > { %2543 = shalt.err (!%p2540_p12)
}
 0x12a   : > { %2104 = dma.hbm_to_vmem [thread:$0]  (!%p2832_p6), %s3360_s12, 16, %s514_s27, [#allocation22]  }
 0x12b   : > { %s2544_s19 = scalar_lea.hbm %s3361_s13, 16 }
 0x12c   : > { %p2545_p13 = scmp.ne.s32.totalorder %s3361_s13, %s2544_s19  ;;  %p2551_p3 = scmp.lt.u32.totalorder %s2544_s19, %s3361_s13 }
 0x12e   : > { %p2547_p0 = pnand %p2545_p13, %p2848_p8 }
 0x130   : > { %p2548_p1 = pneg %p2547_p0 }
 0x132   : > { %p2553_p2 = pnand %p2551_p3, %p2548_p1 }
 0x134   : > { %2556 = shalt.err (!%p2553_p2)
}
 0x135   : > { %s2557_s24 = scalar_lea.vmem %s525_s25, 16  ;;  %s2564_s27 = scalar_lea.vmem %s525_s25, 32 }
 0x136   : > { %p2558_p5 = scmp.ne.s32.totalorder %s525_s25, %s2557_s24  ;;  %p2565_p4 = scmp.lt.s32.totalorder %s525_s25, %s525_s25 }
 0x137   : > { %p2566_p10 = scmp.lt.s32.totalorder %s2564_s27, %s2557_s24 }
 0x138   : > { %p2560_p7 = pnand %p2558_p5, %p2848_p8 }
 0x139   : > { %p2567_p11 = por %p2566_p10, %p2565_p4 }
 0x13a   : > { %p2561_p9 = pneg %p2560_p7 }
 0x13c   : > { %p2568_p12 = pnand %p2567_p11, %p2561_p9 }
 0x13e   : > { %2571 = shalt.err (!%p2568_p12)
}
 0x13f   : > { %s3389_s26 = sld [smem:[#allocation37_spill]]  ;;  %s3390_s21 = sld [smem:[#allocation36_spill]] }
 0x140   : > { %s3391_s0 = sld [smem:[#allocation38_spill]]  ;;  %s1759_s18 = sadd.s32 4294967294, %s2696_s16  }
 0x141   : > { %2107 = dma.hbm_to_vmem [thread:$0]  (!%p2832_p6), %s3361_s13, 16, %s525_s25, [#allocation25]  }
 0x142   : > { %s3116_s23 = sadd.s32 1, %s2696_s16   ;;  %s44_s1 = sadd.s32 1, %s2692_s15 }
 0x143   : > { %s41_s22 = ssub.s32 %s2696_s16, %s3116_s23  ;;  %p52_p0 = scmp.eq.s32.totalorder %s2696_s16, 0 }
 0x144   : > { %p42_p13 = scmp.eq.s32.totalorder %s41_s22, 0  ;;  %p360_p9 = scmp.eq.s32.totalorder %s1759_s18, 1 }
 0x145   : > { %p51_p8 = scmp.ne.s32.totalorder %s2692_s15, %s3389_s26  ;;  %p57_p1 = scmp.ne.s32.totalorder %s3389_s26, %s3390_s21 }
 0x146   : > { %p354_p3 = scmp.eq.s32.totalorder %s3391_s0, 1  ;;  %p3392_p5 = scmp.eq.s32.totalorder %s3391_s0, 0 }
 0x147   : > { %s3128_s19 = scalar_select %p42_p13, %s2692_s15, %s44_s1  }
 0x148   : > { %p53_p2 = por %p52_p0, %p51_p8  ;;  %p3132_p7 = por %p3392_p5, %p57_p1 }
 0x149   : > { %p3136_p6 = por %p354_p3, %p51_p8  ;;  %p2129_p4 = scmp.lt.s32.totalorder %s2696_s16, 2 }
 0x14a   : > { %s535_s28 = sand.u32 1, %s2692_s15   ;;  %p3142_p10 = por %p360_p9, %p57_p1 }
 0x14b   : > { %s3394_s25 = scalar_select %p3136_p6, 1, 0 }
 0x14c   : > { %s3395_s30 = scalar_select %p3142_p10, 1, 0 }
 0x14d   : > { %s1775_s14 = sshll.u32 %s535_s28, 3  ;;  %s1776_s24 = sshll.u32 %s2696_s16, 7 }
 0x14e   : > { %s3396_s20 = sld [smem:[#allocation40_spill]]  ;;  %s539_s21 = scalar_lea.vmem [#allocation3], %s1775_s14 }
 0x14f   : > { %s546_s0 = sshll.u32 %s539_s21, 4  ;;  %p3152_p11 = pnand %p2129_p4, %p53_p2  ;;  %s3156_s0 = int_to_ptr.vmem [resolvable:$true] %s546_s0 }
 0x150   : > { %s536_s1 = scalar_lea.sflag [#allocation4], %s535_s28 }
 0x151   : > { %p2574_p8 = pneg %p3152_p11 }
 0x154   : > { %s3150_s26 = scalar_lea.hbm %s3396_s20, %s1776_s24  ;;  %s2577_s27 = scalar_lea.hbm %s3396_s20, 256 }
 0x155   : > { %s2572_s22 = scalar_lea.hbm %s3150_s26, 128  ;;  %p2578_p1 = scmp.lt.u32.totalorder %s3150_s26, %s3396_s20 }
 0x156   : > { %p2573_p12 = scmp.ne.s32.totalorder %s3150_s26, %s2572_s22  ;;  %p2579_p3 = scmp.lt.u32.totalorder %s2577_s27, %s2572_s22 }
 0x157   : > { %p2581_p5 = scmp.lt.u32.totalorder %s2572_s22, %s3150_s26 }
 0x158   : > { %p2575_p13 = pnand %p2574_p8, %p2573_p12  ;;  %p2580_p2 = por %p2579_p3, %p2578_p1 }
 0x15a   : > { %p2576_p0 = pneg %p2575_p13  ;;  %p2582_p9 = por %p2581_p5, %p2580_p2 }
 0x15c   : > { %p2583_p4 = pnand %p2582_p9, %p2576_p0 }
 0x15e   : > { %2586 = shalt.err (!%p2583_p4)
}
 0x15f   : > { %s2587_s28 = scalar_lea.vmem %s3156_s0, 128  ;;  %s2713_s24 = smov [#allocation3]  }
 0x160   : > { %p2588_p12 = scmp.ne.s32.totalorder %s3156_s0, %s2587_s28  ;;  %s2592_s14 = sshll.u32 %s2713_s24, 4  ;;  %s2593_s14 = int_to_ptr.vmem [resolvable:$false] %s2592_s14 }
 0x161   : > { %s2594_s17 = scalar_lea.vmem %s2593_s14, 256  ;;  %p2595_p6 = scmp.lt.s32.totalorder %s3156_s0, %s2593_s14 }
 0x162   : > { %p2590_p13 = pnand %p2588_p12, %p2574_p8  ;;  %p2596_p1 = scmp.lt.s32.totalorder %s2594_s17, %s2587_s28 }
 0x164   : > { %p2591_p10 = pneg %p2590_p13  ;;  %p2597_p3 = por %p2596_p1, %p2595_p6 }
 0x166   : > { %p2598_p2 = pnand %p2597_p3, %p2591_p10 }
 0x168   : > { %2601 = shalt.err (!%p2598_p2)
}
 0x169   : > { %2111 = dma.hbm_to_vmem [thread:$0]  (!%p3152_p11), %s3150_s26, 128, %s3156_s0, %s536_s1  }
 0x16a   : > { %s3398_s22 = sld [smem:[#allocation39_spill]] }
 0x170   : > { %p3399_p0 = scmp.ne.s32.totalorder %s3398_s22, 0 }
 0x171   : > { %s3400_s27 = sld [smem:[#allocation37_spill]] (!%p3399_p0) }
 0x172   : > { %555 = sbr.rel (%p3399_p0) target bundleno = 2613 (0xa35), region = 76 }
 0x177   : > { %s3186_s21 = sand.u32 (!%p3399_p0), 1, %s3400_s27  }
 0x178   : > { %s1778_s24 = sshll.u32 (!%p3399_p0), %s3186_s21, 3  ;;  %s558_s28 = scalar_lea.sflag (!%p3399_p0), [#allocation4], %s3186_s21 }
 0x179   : > { %s3192_s14 = scalar_lea.vmem [#allocation3], %s1778_s24 }
 0x17a   : > { %2647 = dma.done.wait (%p3132_p7), %s558_s28, 128  }
 0x17b   : > { %2649 = vsyncadd (%p3132_p7), %s558_s28, 4294967168  ;;  %s3401_s26 = sld [smem:[#allocation38_spill]] }
 0x181   : > { %p3402_p6 = scmp.eq.s32.totalorder %s3401_s26, 0 }
 0x183   : > { %2651 = dma.done.wait (%p3402_p6), [#allocation7], 1024   ;;  %p3403_p10 = pmov %p3402_p6 }
 0x184   : > { %p3404_p11 = pmov %p3402_p6 }
 0x185   : > { %2653 = vsyncadd (%p3403_p10), [#allocation7], 4294966272 }
 0x186   : > { %2655 = dma.done.wait (%p3404_p11), [#allocation10], 1536   ;;  %p3405_p8 = pmov %p3402_p6 }
 0x187   : > { %p3406_p5 = pmov %p3402_p6 }
 0x188   : > { %2657 = vsyncadd (%p3405_p8), [#allocation10], 4294965760 }
 0x189   : > { %2659 = dma.done.wait (%p3406_p5), [#allocation13], 32   ;;  %p3407_p9 = pmov %p3406_p5 }
 0x18a   : > { %p3408_p7 = pmov %p3406_p5 }
 0x18b   : > { %2661 = vsyncadd (%p3407_p9), [#allocation13], 4294967264 }
 0x18c   : > { %2663 = dma.done.wait (%p3408_p7), [#allocation16], 528   ;;  %p3409_p4 = pmov %p3406_p5 }
 0x18e   : > { %2665 = vsyncadd (%p3409_p4), [#allocation16], 4294966768  ;;  %p3410_p12 = pmov %p3409_p4 }
 0x18f   : > { %p3411_p13 = pmov %p3409_p4 }
 0x190   : > { %2667 = dma.done.wait (%p3410_p12), [#allocation19], 1040  }
 0x191   : > { %2669 = vsyncadd (%p3411_p13), [#allocation19], 4294966256  ;;  %p3412_p1 = pmov %p3409_p4 }
 0x193   : > { %2671 = dma.done.wait (%p3412_p1), [#allocation22], 32   ;;  %p3413_p3 = pmov %p3412_p1 }
 0x194   : > { %p3414_p2 = pmov %p3412_p1 }
 0x195   : > { %2673 = vsyncadd (%p3413_p3), [#allocation22], 4294967264 }
 0x196   : > { %2675 = dma.done.wait (%p3414_p2), [#allocation25], 16   ;;  %p3415_p0 = pmov %p3412_p1 }
 0x197   : > { %v2714_v0 = vmov 0.0|0.0   ;;  %vm2715_vm0 = vmmov 0   ;;  %v2716_v1 = vmov 0.0   ;;  %v737_v2 = vld [vmem:[#allocation8] sm:$0xff]  ;;  %v738_v3 = vld [vmem:[#allocation8 + $0x8] sm:$0xff]  ;;  %v739_v7 = vld [vmem:[#allocation8 + $0x10] sm:$0xff] }
 0x198   : > { %2677 = vsyncadd (%p3415_p0), [#allocation25], 4294967280  ;;  %1970 = vmatprep.subr.bf16.mxu1 %v2714_v0  ;;  %1964 = vmatprep.subr.bf16.mxu0 %v2714_v0  ;;  %v659_v4 = vld [vmem:[#allocation6] sm:$0xff]  ;;  %v1971_v5 = vpack.c.bf16 %v738_v3, %v737_v2  ;;  %v660_v6 = vld [vmem:[#allocation6 + $0x8] sm:$0xff]  ;;  %vm663_vm1 = vcmask 261120   ;;  %s2717_s29 = smov 96  }
 0x199   : > { %1881 = vmatprep.mubr.msk.f32.mxu1 %vm2715_vm0, %v2716_v1  ;;  %1870 = vmatprep.mubr.msk.f32.mxu0 %vm2715_vm0, %v2716_v1  ;;  %v740_v8 = vld [vmem:[#allocation8 + $0x18] sm:$0xff]  ;;  %v1965_v9 = vpack.c.bf16 %v660_v6, %v659_v4  ;;  %v661_v10 = vld [vmem:[#allocation6 + $0x10] sm:$0xff]  ;;  %v811_v14 = vld [vmem:[#allocation9] sm:$0xff]  ;;  %vm961_vm2 = vcmask 64512   ;;  %s2718_s0 = smov 32   ;;  %vm1217_vm3 = vcmask 523520  }
 0x19a   : > { %v662_v11 = vld [vmem:[#allocation6 + $0x18] sm:$0xff]  ;;  %1972 = vmatpush3.bf16.msra.mxu1 %v1971_v5  ;;  %v1974_v12 = vpack.c.bf16 %v740_v8, %v739_v7  ;;  %v812_v15 = vld [vmem:[#allocation9 + $0x8] sm:$0xff]  ;;  %v813_v18 = vld [vmem:[#allocation9 + $0x10] sm:$0xff]  ;;  %vm1228_vm4 = vcmask 523264   ;;  %s1813_s18 = sshll.u32 %s3401_s26, 7  ;;  %s657_s1 = scalar_lea.vmem [#allocation26], %s1778_s24 }
 0x19b   : > { %1966 = vmatpush3.bf16.msra.mxu0 %v1965_v9  ;;  %1973 = vmatprep.subr.bf16.mxu1 %v2714_v0  ;;  %v1968_v13 = vpack.c.bf16 %v662_v11, %v661_v10  ;;  %v3235_v16 = vld [vmem:[%s3192_s14] sm:$0xff]  ;;  %v1977_v17 = vpack.c.bf16 %v812_v15, %v811_v14  ;;  %v1220_v52 = vld [vmem:[#allocation11] sm:$0xff]  ;;  %v1221_v53 = vld [vmem:[#allocation11 + $0x8] sm:$0xff]  ;;  %s1565_s17 = sshll.u32 %s657_s1, 4  ;;  %s3416_s28 = sld [smem:[#allocation43_spill]]  ;;  %s3305_s17 = int_to_ptr.vmem [resolvable:$true] %s1565_s17 }
 0x19c   : > { %1967 = vmatprep.subr.bf16.mxu0 %v2714_v0  ;;  %v814_v19 = vld [vmem:[#allocation9 + $0x18] sm:$0xff]  ;;  %v1222_v54 = vld [vmem:[#allocation11 + $0x10] sm:$0xff]  ;;  %v1983_v55 = vpack.c.bf16 %v1221_v53, %v1220_v52  ;;  %v1224_v60 = vld [vmem:[#allocation11 + $0x20] sm:$0xff]  ;;  %p3417_p10 = scmp.ne.s32.totalorder %s3394_s25, 0  ;;  %s2719_s24 = smov [#allocation26]  }
 0x19d   : > { %v1980_v20 = vpack.c.bf16 %v814_v19, %v813_v18  ;;  %v1223_v56 = vld [vmem:[#allocation11 + $0x18] sm:$0xff]  ;;  %v1225_v61 = vld [vmem:[#allocation11 + $0x28] sm:$0xff]  ;;  %v1226_v63 = vld [vmem:[#allocation11 + $0x30] sm:$0xff]  ;;  %s2606_s26 = sshll.u32 %s2719_s24, 4  ;;  %s2607_s26 = int_to_ptr.vmem [resolvable:$false] %s2606_s26 }
 0x19e   : > { %1975 = vmatpush3.bf16.msra.mxu1 %v1974_v12  ;;  %v1986_v57 = vpack.c.bf16 %v1223_v56, %v1222_v54  ;;  %v1989_v62 = vpack.c.bf16 %v1225_v61, %v1224_v60  ;;  %v1227_v2 = vld [vmem:[#allocation11 + $0x38] sm:$0xff]  ;;  %v1803_v9 = vld [vmem:[#allocation12] ss:$0 sm:$0xff]  ;;  %v1345_v18 = vld [vmem:[#allocation17 + $0x8] sm:$0xff]  ;;  %s2608_s2 = scalar_lea.vmem %s2607_s26, 256  ;;  %p2609_p5 = scmp.lt.s32.totalorder %s3305_s17, %s2607_s26 }
 0x19f   : > { %1969 = vmatpush3.bf16.msra.mxu0 %v1968_v13  ;;  %1900 = vmatprep.subr.mxu1 %v2716_v1  ;;  %v1992_v3 = vpack.c.bf16 %v1227_v2, %v1226_v63  ;;  %v1808_v53 = vld [vmem:[#allocation21] ss:$0 sm:$0xff] }
 0x1a0   : > { %1976 = vmatprep.subr.bf16.mxu0 %v2714_v0 }
 0x1a1   : > { %1882 = vmatmul.mubr.msk.f32.vlgmr.msra.gmra.mrb[0].mxu1 %vm663_vm1, %v3235_v16  ;;  %s3303_s14 = scalar_lea.hbm %s3416_s28, %s1813_s18 }
 0x1a2   : > { %1871 = vmatmul.mubr.msk.f32.vlgmr.msra.gmra.mrb[0].mxu0 %vm663_vm1, %v3235_v16  ;;  %1902 = vmatprep.mubr.msk.f32.mxu1 %vm2715_vm0, %v2716_v1 }
 0x1a3   : > { %1978 = vmatpush3.bf16.msra.mxu0 %v1977_v17  ;;  %1892 = vmatprep.mubr.msk.f32.mxu0 %vm2715_vm0, %v2716_v1  ;;  %v1344_v17 = vld [vmem:[#allocation17] sm:$0xff] }
 0x1a4   : > { %1979 = vmatprep.subr.bf16.mxu0 %v2714_v0  ;;  %v1995_v19 = vpack.c.bf16 %v1345_v18, %v1344_v17 }
 0x1a7   : > { %1981 = vmatpush3.bf16.msra.mxu0 %v1980_v20  ;;  %v1346_v20 = vld [vmem:[#allocation17 + $0x10] sm:$0xff] }
 0x1a8   : > { %1895 = vmatprep.subr.mxu0 %v2716_v1 }
 0x1aa   : > { %1893 = vmatmul.mubr.msk.f32.vlgmr.msra.gmra.mrb[2].mxu0 %vm663_vm1, %v3235_v16 }
 0x1ab   : > { %1897 = vmatprep.mubr.msk.f32.mxu0 %vm2715_vm0, %v2716_v1 }
 0x274   : > { %v807_v21 = vpop.f32.mrb[0].mxu1 }
 0x275   : > { %1049 = vrot.lane.b32.xlu0 %v807_v21, %s2717_s29  ;;  %v1883_v22 = vpop.f32.mrb[1].mxu1  ;;  %1896 = vmatpush3.xpose.msk.msra.mxu0 %vm663_vm1, %v807_v21  ;;  %v733_v23 = vpop.f32.mrb[0].mxu0  ;;  %v1347_v21 = vld [vmem:[#allocation17 + $0x18] sm:$0xff] }
 0x276   : > { %v1872_v24 = vpop.f32.mrb[1].mxu0  ;;  %1905 = vmatprep.subr.mxu0 %v2716_v1  ;;  %v1998_v22 = vpack.c.bf16 %v1347_v21, %v1346_v20 }
 0x278   : > { %1898 = vmatmul.mubr.msk.f32.vlgmr.msra.gmra.mrb[4].mxu0 %vm663_vm1, %v733_v23 }
 0x279   : > { %1047 = vrot.lane.b32.xlu0 %v733_v23, %s2717_s29  ;;  %1907 = vmatprep.mubr.msk.f32.mxu0 %vm2715_vm0, %v2716_v1 }
 0x27d   : > { %v881_v25 = vpop.f32.mrb[2].mxu0 }
 0x27e   : > { %v1894_v26 = vpop.f32.mrb[3].mxu0  ;;  %1901 = vmatpush3.msra.mxu1 %v881_v25 }
 0x27f   : > { %1910 = vmatprep.subr.mxu1 %v2716_v1 }
 0x2e7   : > { %v1050_v27 = vpop.permute.xlu0 %1049 }
 0x2e8   : > { %1906 = vmatpush3.xpose.msk.msra.mxu0 %vm663_vm1, %v1050_v27 }
 0x2e9   : > { %1982 = vmatprep.subr.bf16.mxu0 %v2714_v0 }
 0x2eb   : > { %v1048_v28 = vpop.permute.xlu0 %1047 }
 0x2ec   : > { %1908 = vmatmul.mubr.msk.f32.vlgmr.msra.gmra.mrb[6].mxu0 %vm663_vm1, %v1048_v28 }
 0x2ed   : > { %1931 = vmatprep.mubr.msk.f32.mxu0 %vm2715_vm0, %v2716_v1  ;;  %1984 = vmatpush3.bf16.msra.mxu0 %v1983_v55 }
 0x2ee   : > { %1985 = vmatprep.subr.bf16.mxu0 %v2714_v0 }
 0x2f1   : > { %1987 = vmatpush3.bf16.msra.mxu0 %v1986_v57 }
 0x2f2   : > { %1988 = vmatprep.subr.bf16.mxu0 %v2714_v0 }
 0x2f5   : > { %1990 = vmatpush3.bf16.msra.mxu0 %v1989_v62 }
 0x2f6   : > { %1991 = vmatprep.subr.bf16.mxu0 %v2714_v0 }
 0x2f9   : > { %1993 = vmatpush3.bf16.msra.mxu0 %v1992_v3 }
 0x34b   : > { %v957_v29 = vpop.f32.mrb[4].mxu0 }
 0x34c   : > { %v1899_v30 = vpop.f32.mrb[5].mxu0  ;;  %v962_v31 = vsel %vm961_vm2, %v957_v29, -inf }
 0x34d   : > { %963 = vmax.xlane.f32.xlu1 %v962_v31 }
 0x3bf   : > { %v1121_v32 = vpop.f32.mrb[6].mxu0 }
 0x3c0   : > { %v1909_v33 = vpop.f32.mrb[7].mxu0  ;;  %v1125_v34 = vsel %vm961_vm2, %v1121_v32, -inf }
 0x3c1   : > { %1126 = vmax.xlane.f32.xlu1 %v1125_v34  ;;  %v1429_v34 = vld [vmem:[#allocation20] sm:$0xff] }
 0x3da   : > { %v964_v35 = vpop.xlane.xlu1 %963 }
 0x3db   : > { %v965_v36 = vsub.f32 %v957_v29, %v964_v35  ;;  %v1430_v35 = vld [vmem:[#allocation20 + $0x8] sm:$0xff] }
 0x3dd   : > { %v966_v37 = vmul.f32 1.442695, %v965_v36  ;;  %v1805_v36 = vld [vmem:[#allocation15] ss:$0 sm:$0xff] }
 0x3df   : > { %2196 = vpow2.f32 %v966_v37 }
 0x3e9   : > { %v2197_v38 = vpop.eup %2196 }
 0x3ea   : > { %v968_v39 = vsel %vm961_vm2, %v2197_v38, 0.0 }
 0x3eb   : > { %969 = vadd.xlane.f32.xlu0 %v968_v39 }
 0x44e   : > { %v1127_v40 = vpop.xlane.xlu1 %1126 }
 0x44f   : > { %v1128_v41 = vsub.f32 %v1121_v32, %v1127_v40  ;;  %v1804_v32 = vld [vmem:[#allocation14] ss:$0 sm:$0xff]  ;;  %v1431_v40 = vld [vmem:[#allocation20 + $0x10] sm:$0xff] }
 0x451   : > { %v1129_v42 = vmul.f32 1.442695, %v1128_v41  ;;  %v1432_v41 = vld [vmem:[#allocation20 + $0x18] sm:$0xff] }
 0x453   : > { %2198 = vpow2.f32 %v1129_v42  ;;  %v2004_v42 = vpack.c.bf16 %v1432_v41, %v1431_v40 }
 0x45d   : > { %v2199_v43 = vpop.eup %2198 }
 0x45e   : > { %v1131_v44 = vsel %vm961_vm2, %v2199_v43, 0.0 }
 0x45f   : > { %1132 = vadd.xlane.f32.xlu1 %v1131_v44  ;;  %v1434_v44 = vld [vmem:[#allocation20 + $0x28] sm:$0xff] }
 0x470   : > { %1137 = vrot.lane.b32.xlu1 %v881_v25, %s2717_s29  ;;  %s1552_s29 = scalar_lea.sflag [#allocation5], %s3186_s21 }
 0x478   : > { %v970_v45 = vpop.xlane.xlu0 %969 }
 0x479   : > { %2200 = vrcp.f32 %v970_v45 }
 0x483   : > { %v2201_v46 = vpop.eup %2200 }
 0x484   : > { %v972_v47 = vmul.f32 %v2201_v46, %v2197_v38  ;;  %v2001_v38 = vpack.c.bf16 %v1430_v35, %v1429_v34  ;;  %v1435_v46 = vld [vmem:[#allocation20 + $0x30] sm:$0xff] }
 0x486   : > { %1903 = vmatmul.mubr.msk.f32.vlgmr.msra.gmra.mrb[2].mxu1 %vm961_vm2, %v972_v47  ;;  %v1436_v47 = vld [vmem:[#allocation20 + $0x38] sm:$0xff] }
 0x487   : > { %1912 = vmatprep.mubr.msk.f32.mxu1 %vm2715_vm0, %v2716_v1 }
 0x4ec   : > { %v1133_v48 = vpop.xlane.xlu1 %1132 }
 0x4ed   : > { %2202 = vrcp.f32 %v1133_v48  ;;  %v2010_v48 = vpack.c.bf16 %v1436_v47, %v1435_v46 }
 0x4f0   : > { %v1138_v49 = vpop.permute.xlu1 %1137 }
 0x4f1   : > { %1911 = vmatpush3.msra.mxu1 %v1138_v49  ;;  %v1806_v49 = vld [vmem:[#allocation18] ss:$0 sm:$0xff] }
 0x4f2   : > { %1994 = vmatprep.subr.bf16.mxu1 %v2714_v0 }
 0x4f7   : > { %v2203_v50 = vpop.eup %2202 }
 0x4f8   : > { %v1135_v51 = vmul.f32 %v2203_v50, %v2199_v43  ;;  %v1433_v43 = vld [vmem:[#allocation20 + $0x20] sm:$0xff] }
 0x4f9   : > { %v2007_v45 = vpack.c.bf16 %v1434_v44, %v1433_v43 }
 0x4fa   : > { %1913 = vmatmul.mubr.msk.f32.vlgmr.msra.gmra.mrb[4].mxu1 %vm961_vm2, %v1135_v51 }
 0x4fb   : > { %1942 = vmatprep.mubr.msk.f32.mxu1 %vm2715_vm0, %v2716_v1  ;;  %1996 = vmatpush3.bf16.msra.mxu1 %v1995_v19 }
 0x4fc   : > { %1997 = vmatprep.subr.bf16.mxu1 %v2714_v0 }
 0x4ff   : > { %1999 = vmatpush3.bf16.msra.mxu1 %v1998_v22 }
 0x500   : > { %2000 = vmatprep.subr.bf16.mxu1 %v2714_v0 }
 0x559   : > { %v1042_v58 = vpop.f32.mrb[2].mxu1 }
 0x55a   : > { %1046 = vst.msk [vmem:[#allocation2] sm:$0xff] %vm663_vm1, %v1042_v58  ;;  %v1904_v59 = vpop.f32.mrb[3].mxu1 }
 0x5cd   : > { %v1209_v4 = vpop.f32.mrb[4].mxu1 }
 0x5ce   : > { %1214 = vrot.lane.b32.xlu1 %v1209_v4, %s2718_s0  ;;  %v1914_v5 = vpop.f32.mrb[5].mxu1  ;;  %s2602_s0 = scalar_lea.vmem %s3305_s17, 128 }
 0x5cf   : > { %p2603_p6 = scmp.ne.s32.totalorder %s3305_s17, %s2602_s0  ;;  %p2610_p9 = scmp.lt.s32.totalorder %s2608_s2, %s2602_s0 }
 0x5d1   : > { %p2604_p11 = pnand %p2603_p6, %p3417_p10  ;;  %p2611_p7 = por %p2610_p9, %p2609_p5 }
 0x5d3   : > { %p2605_p8 = pneg %p2604_p11 }
 0x5d5   : > { %p2612_p4 = pnand %p2611_p7, %p2605_p8 }
 0x640   : > { %v1215_v6 = vpop.permute.xlu1 %1214 }
 0x641   : > { %1218 = vst.msk [vmem:[#allocation2] sm:$0xff] %vm1217_vm3, %v1215_v6 }
 0x648   : > { %v1219_v7 = vld [vmem:[#allocation2] sm:$0xff] }
 0x649   : > { %1932 = vmatmul.mubr.msk.f32.vlgmr.msra.gmra.mrb[8].mxu0 %vm1228_vm4, %v1219_v7 }
 0x71c   : > { %v1298_v8 = vpop.f32.mrb[8].mxu0 }
 0x71d   : > { %v1302_v10 = vadd.f32 %v1298_v8, %v3235_v16  ;;  %v1933_v11 = vpop.f32.mrb[9].mxu0  ;;  %v1810_v8 = vld [vmem:[#allocation23] ss:$0 sm:$0xff] }
 0x71f   : > { %v1310_v12 = vadd.f32 %v1803_v9, %v1302_v10  ;;  %v1811_v10 = vld [vmem:[#allocation24] ss:$0 sm:$0xff] }
 0x721   : > { %v1311_v13 = vsel %vm663_vm1, %v1310_v12, 0.0  ;;  %v1316_v14 = vmul.f32 %v1310_v12, %v1310_v12 }
 0x722   : > { %1312 = vadd.xlane.f32.xlu1 %v1311_v13 }
 0x723   : > { %v1317_v15 = vsel %vm663_vm1, %v1316_v14, 0.0 }
 0x724   : > { %1318 = vadd.xlane.f32.xlu0 %v1317_v15 }
 0x7af   : > { %v1313_v16 = vpop.xlane.xlu1 %1312 }
 0x7b0   : > { %v1315_v23 = vmul.f32 0.03125, %v1313_v16 }
 0x7b1   : > { %v1319_v24 = vpop.xlane.xlu0 %1318 }
 0x7b2   : > { %v1321_v25 = vmul.f32 %v1315_v23, %v1315_v23  ;;  %v1320_v26 = vmul.f32 0.03125, %v1319_v24  ;;  %v1324_v30 = vsub.f32 %v1310_v12, %v1315_v23 }
 0x7b4   : > { %v1322_v27 = vsub.f32 %v1320_v26, %v1321_v25 }
 0x7b6   : > { %v1323_v28 = vmax.f32 %v1322_v27, 0.0 }
 0x7b8   : > { %v1325_v29 = vadd.f32 1e-05, %v1323_v28 }
 0x7ba   : > { %2204 = vrsqrt.f32 %v1325_v29 }
 0x7c4   : > { %v2205_v31 = vpop.eup %2204 }
 0x7c5   : > { %v1327_v33 = vmul.f32 %v2205_v31, %v1324_v30 }
 0x7c7   : > { %v1335_v37 = vmul.f32 %v1804_v32, %v1327_v33 }
 0x7c9   : > { %v1343_v39 = vadd.f32 %v1805_v36, %v1335_v37 }
 0x7cb   : > { %1943 = vmatmul.mubr.msk.f32.vlgmr.msra.gmra.mrb[6].mxu1 %vm663_vm1, %v1343_v39 }
 0x7cc   : > { %2002 = vmatpush3.bf16.msra.mxu1 %v2001_v38  ;;  %1961 = vmatprep.mubr.msk.f32.mxu1 %vm2715_vm0, %v2716_v1 }
 0x7cd   : > { %2003 = vmatprep.subr.bf16.mxu1 %v2714_v0 }
 0x7d0   : > { %2005 = vmatpush3.bf16.msra.mxu1 %v2004_v42 }
 0x7d1   : > { %2006 = vmatprep.subr.bf16.mxu1 %v2714_v0 }
 0x7d4   : > { %2008 = vmatpush3.bf16.msra.mxu1 %v2007_v45 }
 0x7d5   : > { %2009 = vmatprep.subr.bf16.mxu1 %v2714_v0 }
 0x7d8   : > { %2011 = vmatpush3.bf16.msra.mxu1 %v2010_v48 }
 0x89e   : > { %v1424_v50 = vpop.f32.mrb[6].mxu1 }
 0x89f   : > { %v1425_v51 = vadd.f32 %v1806_v49, %v1424_v50  ;;  %v1944_v52 = vpop.f32.mrb[7].mxu1 }
 0x8a1   : > { %v1428_v1 = vmax.f32 %v1425_v51, 0.0 }
 0x8a3   : > { %1962 = vmatmul.mubr.msk.f32.vlgmr.msra.gmra.mrb[8].mxu1 %vm1228_vm4, %v1428_v1 }
 0x976   : > { %v1513_v54 = vpop.f32.mrb[8].mxu1 }
 0x977   : > { %v1514_v55 = vadd.f32 %v1808_v53, %v1513_v54  ;;  %v1963_v56 = vpop.f32.mrb[9].mxu1 }
 0x979   : > { %v1517_v57 = vadd.f32 %v1514_v55, %v1343_v39 }
 0x97b   : > { %v1518_v58 = vsel %vm663_vm1, %v1517_v57, 0.0  ;;  %v1522_v59 = vmul.f32 %v1517_v57, %v1517_v57 }
 0x97c   : > { %1519 = vadd.xlane.f32.xlu0 %v1518_v58 }
 0x97d   : > { %v1523_v0 = vsel %vm663_vm1, %v1522_v59, 0.0 }
 0x980   : > { %1524 = vadd.xlane.f32.xlu0 %v1523_v0 }
 0xa09   : > { %v1520_v60 = vpop.xlane.xlu0 %1519 }
 0xa0a   : > { %v1521_v61 = vmul.f32 0.03125, %v1520_v60 }
 0xa0c   : > { %v1527_v63 = vmul.f32 %v1521_v61, %v1521_v61  ;;  %v1530_v6 = vsub.f32 %v1517_v57, %v1521_v61 }
 0xa0d   : > { %v1525_v62 = vpop.xlane.xlu0 %1524 }
 0xa0e   : > { %v1526_v2 = vmul.f32 0.03125, %v1525_v62 }
 0xa10   : > { %v1528_v3 = vsub.f32 %v1526_v2, %v1527_v63 }
 0xa12   : > { %v1529_v4 = vmax.f32 %v1528_v3, 0.0 }
 0xa14   : > { %v1531_v5 = vadd.f32 1e-05, %v1529_v4 }
 0xa16   : > { %2206 = vrsqrt.f32 %v1531_v5 }
 0xa20   : > { %v2207_v7 = vpop.eup %2206 }
 0xa21   : > { %v1533_v9 = vmul.f32 %v2207_v7, %v1530_v6 }
 0xa23   : > { %v1541_v11 = vmul.f32 %v1810_v8, %v1533_v9 }
 0xa25   : > { %v1549_v12 = vadd.f32 %v1811_v10, %v1541_v11 }
 0xa27   : > { %1550 = vst.msk [vmem:[%s657_s1] sm:$0xff] %vm663_vm1, %v1549_v12 }
 0xa28   : > { %2615 = shalt.err (!%p2612_p4)
}
 0xa29   : > { %s2616_s21 = scalar_lea.hbm %s3303_s14, 128  ;;  %s2620_s22 = scalar_lea.hbm %s3416_s28, 256 }
 0xa2a   : > { %p2617_p12 = scmp.ne.s32.totalorder %s3303_s14, %s2616_s21  ;;  %p2621_p3 = scmp.lt.u32.totalorder %s3303_s14, %s3416_s28 }
 0xa2b   : > { %p2622_p2 = scmp.lt.u32.totalorder %s2620_s22, %s2616_s21  ;;  %p2624_p6 = scmp.lt.u32.totalorder %s2616_s21, %s3303_s14 }
 0xa2c   : > { %p2618_p13 = pnand %p2617_p12, %p3417_p10 }
 0xa2d   : > { %p2623_p0 = por %p2622_p2, %p2621_p3 }
 0xa2e   : > { %p2619_p1 = pneg %p2618_p13 }
 0xa2f   : > { %p2625_p11 = por %p2624_p6, %p2623_p0 }
 0xa31   : > { %p2626_p8 = pnand %p2625_p11, %p2619_p1 }
 0xa33   : > { %2629 = shalt.err (!%p2626_p8)
}
 0xa34   : > { %2066 = dma.vmem_to_hbm [thread:$0]  (%p3417_p10), %s3305_s17, 128, %s3303_s14, %s1552_s29  }
 0xa35 PF: > { %s3418_s2 = sld [smem:[#allocation36_spill]]  ;;  %p3419_p5 = scmp.ne.s32.totalorder %s3395_s30, 0 }
 0xa36   : > { %p3420_p9 = scmp.ge.s32.totalorder %s2696_s16, 2 }
 0xa38   : > { %p2113_p7 = pnand %p3420_p9, %p3419_p5 }
 0xa3b   : > { %s1577_s0 = sand.u32 1, %s3418_s2  }
 0xa3c   : > { %s1578_s26 = scalar_lea.sflag [#allocation5], %s1577_s0 }
 0xa3d   : > { %2679 = dma.done.wait (!%p2113_p7), %s1578_s26, 128  }
 0xa3e   : > { %2681 = vsyncadd (!%p2113_p7), %s1578_s26, 4294967168  ;;  %s3421_s29 = sld [smem:[#allocation37_spill]]  ;;  %p34_p4 = scmp.ge.s32.totalorder %s3116_s23, 4  }
 0xa3f   : > { %s3422_s30 = smov %s2692_s15  ;;  %s3423_s15 = smov %s3128_s19 }
 0xa40   : > { %s3424_s16 = smov %s3116_s23  ;;  %36 = sbr.rel (!%p34_p4) target bundleno = 17 (0x11), region = 173 }
 0xa47   :  { %1583 = vsyncpa [#allocation4], 1 }
 0xa48   :  { %1585 = vsyncpa [#allocation4 + $0x1], 1 }
 0xa49   :  { %1586 = vsyncpa [#allocation7], 1 }
 0xa4a   :  { %1587 = vsyncpa [#allocation10], 1 }
 0xa4b   :  { %1588 = vsyncpa [#allocation13], 1 }
 0xa4c   :  { %1589 = vsyncpa [#allocation16], 1 }
 0xa4d   :  { %1590 = vsyncpa [#allocation19], 1 }
 0xa4e   :  { %1591 = vsyncpa [#allocation22], 1 }
 0xa4f   :  { %1592 = vsyncpa [#allocation25], 1 }
 0xa50   :  { %1593 = vsyncpa [#allocation5], 1 }
 0xa51   :  { %1595 = vsyncpa [#allocation5 + $0x1], 1 }

</bundles_post_ra>
